<compile_context>
chip_gen: v5e
topology: v5e:2x2
jax: 0.10.0
libtpu: 0.0.40
codegen_flags: <defaults>
</compile_context>

<pallas_src>
import jax
import jax.numpy as jnp
from jax import lax
from jax.experimental import pallas as pl
from jax.experimental.pallas import tpu as pltpu

OUT_PAD = 128   # lane-padded width of the 36-wide output


def make_stn3d_kernel(tb: int, n: int):
    """Build the kernel for a static tile of TB batch elements x N points."""

    def kernel(x_ref,
               w1, s1, t1,
               w2, s2, t2,
               w3, s3, t3,
               w4, s4, t4,
               w5, s5, t5,
               w6, t6,
               out_ref,
               pooled_ref):
        bf16 = jnp.bfloat16

        # ---- conv1 (1x1, K=6) + bn1 + relu --------------------------------
        # x_ref[0, b] is the channel-major (6, N) slab; contracting dim 0 of
        # both operands folds the NCL->NLC transpose into the matmul itself.
        # K=6 is <1% of total FLOPs, so it stays f32.
        w1v = w1[...]
        parts = []
        for b in range(tb):
            parts.append(
                lax.dot_general(x_ref[0, b], w1v,
                                (((0,), (0,)), ((), ())),
                                preferred_element_type=jnp.float32))     # (N, 64)
        h = parts[0] if tb == 1 else jnp.concatenate(parts, axis=0)       # (TB*N, 64)
        h = jnp.maximum(h * s1[...] + t1[...], 0.0).astype(bf16)

        # ---- conv2 (1x1) + bn2 + relu --------------------------------------
        h = jnp.dot(h, w2[...], preferred_element_type=jnp.float32)       # (TB*N, 128)
        h = jnp.maximum(h * s2[...] + t2[...], 0.0).astype(bf16)

        # ---- conv3 (1x1) + bn3 + relu --------------------------------------
        h = jnp.dot(h, w3[...], preferred_element_type=jnp.float32)       # (TB*N, 1024)
        h = jnp.maximum(h * s3[...] + t3[...], 0.0)                        # keep f32

        # ---- global max pooling over points (torch.max(x, 2)) --------------
        for b in range(tb):
            pooled_ref[b] = jnp.max(h[b * n:(b + 1) * n], axis=0)          # (1024,)
        g = pooled_ref[...].astype(bf16)                                    # (TB, 1024)

        # ---- fc1 + bn4 + relu ----------------------------------------------
        f = jnp.dot(g, w4[...], preferred_element_type=jnp.float32)        # (TB, 512)
        f = jnp.maximum(f * s4[...] + t4[...], 0.0).astype(bf16)
        # ---- fc2 + bn5 + relu ----------------------------------------------
        f = jnp.dot(f, w5[...], preferred_element_type=jnp.float32)        # (TB, 256)
        f = jnp.maximum(f * s5[...] + t5[...], 0.0).astype(bf16)
        # ---- fc3 + bias + flattened 6x6 identity (folded into t6) ----------
        o = jnp.dot(f, w6[...], preferred_element_type=jnp.float32) + t6[...]
        out_ref[0] = o                                                      # (TB, 128)

    return kernel


def _fold_bn(gamma, beta, mean, var, bias, eps=1e-5):
    """Fold eval-mode BatchNorm + preceding bias into per-channel scale/shift."""
    scale = gamma / jnp.sqrt(var + eps)
    shift = (bias - mean) * scale + beta
    return scale.reshape(1, -1), shift.reshape(1, -1)


def init_params(key):
    """Deterministic synthetic parameters matching STN3d.__init__ shapes."""
    ks = iter(jax.random.split(key, 48))

    def lin(cin, cout):
        w = 0.05 * jax.random.normal(next(ks), (cin, cout), jnp.float32)
        b = 0.05 * jax.random.normal(next(ks), (cout,), jnp.float32)
        return w, b

    def bn(c):
        gamma = 1.0 + 0.1 * jax.random.normal(next(ks), (c,), jnp.float32)
        beta = 0.1 * jax.random.normal(next(ks), (c,), jnp.float32)
        mean = 0.1 * jax.random.normal(next(ks), (c,), jnp.float32)
        var = jnp.abs(1.0 + 0.1 * jax.random.normal(next(ks), (c,), jnp.float32))
        return gamma, beta, mean, var

    # conv1/2/3 (kernel size 1 -> plain matmuls) and fc1/2/3, with their BNs
    layers = [lin(6, 64), lin(64, 128), lin(128, 1024),
              lin(1024, 512), lin(512, 256), lin(256, 36)]
    bns = [bn(64), bn(128), bn(1024), bn(512), bn(256)]

    flat = []
    for li, ((w, b), (g, be, m, v)) in enumerate(zip(layers[:5], bns)):
        scale, shift = _fold_bn(g, be, m, v, b)           # f32 scale/shift
        wq = w if li == 0 else w.astype(jnp.bfloat16)     # conv1 weight stays f32
        flat += [wq, scale, shift]

    w6, b6 = layers[5]
    iden = jnp.eye(6, dtype=jnp.float32).reshape(1, 36)   # the hard-coded identity
    w6p = jnp.pad(w6, ((0, 0), (0, OUT_PAD - 36))).astype(jnp.bfloat16)
    t6p = jnp.pad(b6.reshape(1, -1) + iden, ((0, 0), (0, OUT_PAD - 36)))
    flat += [w6p, t6p]
    return flat


def stn3d_forward(x, flat_params, *, rows_per_step=2048, tb_cap=32):
    """x: (B, 6, N) float32 (PyTorch NCL).  Returns (B, 6, 6) float32."""
    B, C, N = x.shape
    assert C == 6
    assert N % 8 == 0, "N must be a multiple of 8 (sublane tile)"

    # Batch-block size: as many batch elements per grid step as fit the VMEM
    # row budget for the 1024-wide conv3 activation (f32 + transients).
    tb = max(1, min(B, rows_per_step // N, tb_cap))
    nb = pl.cdiv(B, tb)
    b_pad = nb * tb
    if b_pad != B:
        x = jnp.pad(x, ((0, b_pad - B), (0, 0), (0, 0)))
    x4 = x.reshape(nb, tb, C, N)          # metadata-only reshape, no transpose

    in_specs = [pl.BlockSpec((1, tb, C, N), lambda i: (i, 0, 0, 0))]
    for a in flat_params:
        in_specs.append(pl.BlockSpec(a.shape, lambda i: (0, 0)))

    flops = (2 * b_pad * N * (6 * 64 + 64 * 128 + 128 * 1024)
             + 2 * b_pad * (1024 * 512 + 512 * 256 + 256 * OUT_PAD))
    bytes_accessed = (x4.size * 4 + b_pad * OUT_PAD * 4
                      + sum(a.size * a.dtype.itemsize for a in flat_params))

    out = pl.pallas_call(
        make_stn3d_kernel(tb, N),
        out_shape=jax.ShapeDtypeStruct((nb, tb, OUT_PAD), jnp.float32),
        grid_spec=pltpu.PrefetchScalarGridSpec(
            num_scalar_prefetch=0,
            grid=(nb,),
            in_specs=in_specs,
            out_specs=pl.BlockSpec((1, tb, OUT_PAD), lambda i: (i, 0, 0)),
            scratch_shapes=[pltpu.VMEM((tb, 1024), jnp.float32)],
        ),
        compiler_params=pltpu.CompilerParams(
            dimension_semantics=("parallel",),
            vmem_limit_bytes=32 * 1024 * 1024),
        cost_estimate=pl.CostEstimate(
            flops=int(flops), transcendentals=0,
            bytes_accessed=int(bytes_accessed)),
    )(x4, *flat_params)

    return out.reshape(b_pad, OUT_PAD)[:B, :36].reshape(B, 6, 6)


if __name__ == "__main__":
    key = jax.random.PRNGKey(0)
    k_param, k_x = jax.random.split(key)

    B, N = 2, 16                                            # small: 2 clouds, 16 points
    x = jax.random.normal(k_x, (B, 6, N), jnp.float32)      # PyTorch-style (B, C=6, L=N)

    params = init_params(k_param)
    y = stn3d_forward(x, params)
    y = jax.block_until_ready(y)

    assert y.shape == (B, 6, 6) and y.dtype == jnp.float32
    print("KERNEL_OK")
</pallas_src>

<mosaic_0001>
module attributes {stable_mosaic.version = 11 : i64} {
  func.func @kernel(%arg0: i32, %arg1: memref<1x2x6x16xf32, #tpu.memory_space<vmem>>, %arg2: memref<6x64xf32, #tpu.memory_space<vmem>>, %arg3: memref<1x64xf32, #tpu.memory_space<vmem>>, %arg4: memref<1x64xf32, #tpu.memory_space<vmem>>, %arg5: memref<64x128xbf16, #tpu.memory_space<vmem>>, %arg6: memref<1x128xf32, #tpu.memory_space<vmem>>, %arg7: memref<1x128xf32, #tpu.memory_space<vmem>>, %arg8: memref<128x1024xbf16, #tpu.memory_space<vmem>>, %arg9: memref<1x1024xf32, #tpu.memory_space<vmem>>, %arg10: memref<1x1024xf32, #tpu.memory_space<vmem>>, %arg11: memref<1024x512xbf16, #tpu.memory_space<vmem>>, %arg12: memref<1x512xf32, #tpu.memory_space<vmem>>, %arg13: memref<1x512xf32, #tpu.memory_space<vmem>>, %arg14: memref<512x256xbf16, #tpu.memory_space<vmem>>, %arg15: memref<1x256xf32, #tpu.memory_space<vmem>>, %arg16: memref<1x256xf32, #tpu.memory_space<vmem>>, %arg17: memref<256x128xbf16, #tpu.memory_space<vmem>>, %arg18: memref<1x128xf32, #tpu.memory_space<vmem>>, %arg19: memref<1x2x128xf32, #tpu.memory_space<vmem>>, %arg20: memref<2x1024xf32, #tpu.memory_space<vmem>>) attributes {dimension_semantics = [#tpu.dimension_semantics<parallel>], iteration_bounds = array<i64: 1>, scalar_prefetch = 0 : i64, scratch_operands = 1 : i64, tpu.core_type = #tpu.core_type<tc>, window_params = [{transform_indices = @transform_0, window_bounds = array<i64: 1, 2, 6, 16>}, {pipeline_mode = #tpu.pipeline_mode<synchronous>, transform_indices = @transform_1, window_bounds = array<i64: 6, 64>}, {pipeline_mode = #tpu.pipeline_mode<synchronous>, transform_indices = @transform_2, window_bounds = array<i64: 1, 64>}, {pipeline_mode = #tpu.pipeline_mode<synchronous>, transform_indices = @transform_3, window_bounds = array<i64: 1, 64>}, {pipeline_mode = #tpu.pipeline_mode<synchronous>, transform_indices = @transform_4, window_bounds = array<i64: 64, 128>}, {pipeline_mode = #tpu.pipeline_mode<synchronous>, transform_indices = @transform_5, window_bounds = array<i64: 1, 128>}, {pipeline_mode = #tpu.pipeline_mode<synchronous>, transform_indices = @transform_6, window_bounds = array<i64: 1, 128>}, {pipeline_mode = #tpu.pipeline_mode<synchronous>, transform_indices = @transform_7, window_bounds = array<i64: 128, 1024>}, {pipeline_mode = #tpu.pipeline_mode<synchronous>, transform_indices = @transform_8, window_bounds = array<i64: 1, 1024>}, {pipeline_mode = #tpu.pipeline_mode<synchronous>, transform_indices = @transform_9, window_bounds = array<i64: 1, 1024>}, {pipeline_mode = #tpu.pipeline_mode<synchronous>, transform_indices = @transform_10, window_bounds = array<i64: 1024, 512>}, {pipeline_mode = #tpu.pipeline_mode<synchronous>, transform_indices = @transform_11, window_bounds = array<i64: 1, 512>}, {pipeline_mode = #tpu.pipeline_mode<synchronous>, transform_indices = @transform_12, window_bounds = array<i64: 1, 512>}, {pipeline_mode = #tpu.pipeline_mode<synchronous>, transform_indices = @transform_13, window_bounds = array<i64: 512, 256>}, {pipeline_mode = #tpu.pipeline_mode<synchronous>, transform_indices = @transform_14, window_bounds = array<i64: 1, 256>}, {pipeline_mode = #tpu.pipeline_mode<synchronous>, transform_indices = @transform_15, window_bounds = array<i64: 1, 256>}, {pipeline_mode = #tpu.pipeline_mode<synchronous>, transform_indices = @transform_16, window_bounds = array<i64: 256, 128>}, {pipeline_mode = #tpu.pipeline_mode<synchronous>, transform_indices = @transform_17, window_bounds = array<i64: 1, 128>}, {transform_indices = @transform_18, window_bounds = array<i64: 1, 2, 128>}]} {
    %c0 = arith.constant 0 : index
    %c0_0 = arith.constant 0 : index
    %0 = vector.load %arg2[%c0, %c0_0] : memref<6x64xf32, #tpu.memory_space<vmem>>, vector<6x64xf32>
    %c0_1 = arith.constant 0 : index
    %c0_2 = arith.constant 0 : index
    %c0_3 = arith.constant 0 : index
    %c0_4 = arith.constant 0 : index
    %1 = vector.load %arg1[%c0_1, %c0_2, %c0_3, %c0_4] : memref<1x2x6x16xf32, #tpu.memory_space<vmem>>, vector<1x1x6x16xf32>
    %2 = vector.shape_cast %1 : vector<1x1x6x16xf32> to vector<6x16xf32>
    %cst = arith.constant dense<0.000000e+00> : vector<16x64xf32>
    %3 = tpu.matmul %2, %0, %cst {dimension_numbers = #tpu.dot_dimension_numbers<[0], [0], [1], [1], [0, 1, 1, 1], [], []>} : vector<6x16xf32>, vector<6x64xf32>, vector<16x64xf32> -> vector<16x64xf32>
    %c0_5 = arith.constant 0 : index
    %c1 = arith.constant 1 : index
    %c0_6 = arith.constant 0 : index
    %c0_7 = arith.constant 0 : index
    %4 = vector.load %arg1[%c0_5, %c1, %c0_6, %c0_7] : memref<1x2x6x16xf32, #tpu.memory_space<vmem>>, vector<1x1x6x16xf32>
    %5 = vector.shape_cast %4 : vector<1x1x6x16xf32> to vector<6x16xf32>
    %cst_8 = arith.constant dense<0.000000e+00> : vector<16x64xf32>
    %6 = tpu.matmul %5, %0, %cst_8 {dimension_numbers = #tpu.dot_dimension_numbers<[0], [0], [1], [1], [0, 1, 1, 1], [], []>} : vector<6x16xf32>, vector<6x64xf32>, vector<16x64xf32> -> vector<16x64xf32>
    %7 = tpu.concatenate %3, %6 in 0 : vector<16x64xf32>, vector<16x64xf32> -> vector<32x64xf32>
    %c0_9 = arith.constant 0 : index
    %c0_10 = arith.constant 0 : index
    %8 = vector.load %arg3[%c0_9, %c0_10] : memref<1x64xf32, #tpu.memory_space<vmem>>, vector<1x64xf32>
    %9 = vector.broadcast %8 : vector<1x64xf32> to vector<32x64xf32>
    %10 = arith.mulf %7, %9 : vector<32x64xf32>
    %c0_11 = arith.constant 0 : index
    %c0_12 = arith.constant 0 : index
    %11 = vector.load %arg4[%c0_11, %c0_12] : memref<1x64xf32, #tpu.memory_space<vmem>>, vector<1x64xf32>
    %12 = vector.broadcast %11 : vector<1x64xf32> to vector<32x64xf32>
    %13 = arith.addf %10, %12 : vector<32x64xf32>
    %cst_13 = arith.constant 0.000000e+00 : f32
    %14 = vector.broadcast %cst_13 : f32 to vector<32x64xf32>
    %15 = arith.maximumf %13, %14 : vector<32x64xf32>
    %16 = arith.truncf %15 : vector<32x64xf32> to vector<32x64xbf16>
    %c0_14 = arith.constant 0 : index
    %c0_15 = arith.constant 0 : index
    %17 = vector.load %arg5[%c0_14, %c0_15] : memref<64x128xbf16, #tpu.memory_space<vmem>>, vector<64x128xbf16>
    %cst_16 = arith.constant dense<0.000000e+00> : vector<32x128xf32>
    %18 = tpu.matmul %16, %17, %cst_16 {dimension_numbers = #tpu.dot_dimension_numbers<[1], [0], [0], [1], [0, 0, 1, 1], [], []>} : vector<32x64xbf16>, vector<64x128xbf16>, vector<32x128xf32> -> vector<32x128xf32>
    %c0_17 = arith.constant 0 : index
    %c0_18 = arith.constant 0 : index
    %19 = vector.load %arg6[%c0_17, %c0_18] : memref<1x128xf32, #tpu.memory_space<vmem>>, vector<1x128xf32>
    %20 = vector.broadcast %19 : vector<1x128xf32> to vector<32x128xf32>
    %21 = arith.mulf %18, %20 : vector<32x128xf32>
    %c0_19 = arith.constant 0 : index
    %c0_20 = arith.constant 0 : index
    %22 = vector.load %arg7[%c0_19, %c0_20] : memref<1x128xf32, #tpu.memory_space<vmem>>, vector<1x128xf32>
    %23 = vector.broadcast %22 : vector<1x128xf32> to vector<32x128xf32>
    %24 = arith.addf %21, %23 : vector<32x128xf32>
    %cst_21 = arith.constant 0.000000e+00 : f32
    %25 = vector.broadcast %cst_21 : f32 to vector<32x128xf32>
    %26 = arith.maximumf %24, %25 : vector<32x128xf32>
    %27 = arith.truncf %26 : vector<32x128xf32> to vector<32x128xbf16>
    %c0_22 = arith.constant 0 : index
    %c0_23 = arith.constant 0 : index
    %28 = vector.load %arg8[%c0_22, %c0_23] : memref<128x1024xbf16, #tpu.memory_space<vmem>>, vector<128x1024xbf16>
    %cst_24 = arith.constant dense<0.000000e+00> : vector<32x1024xf32>
    %29 = tpu.matmul %27, %28, %cst_24 {dimension_numbers = #tpu.dot_dimension_numbers<[1], [0], [0], [1], [0, 0, 1, 1], [], []>} : vector<32x128xbf16>, vector<128x1024xbf16>, vector<32x1024xf32> -> vector<32x1024xf32>
    %c0_25 = arith.constant 0 : index
    %c0_26 = arith.constant 0 : index
    %30 = vector.load %arg9[%c0_25, %c0_26] : memref<1x1024xf32, #tpu.memory_space<vmem>>, vector<1x1024xf32>
    %31 = vector.broadcast %30 : vector<1x1024xf32> to vector<32x1024xf32>
    %32 = arith.mulf %29, %31 : vector<32x1024xf32>
    %c0_27 = arith.constant 0 : index
    %c0_28 = arith.constant 0 : index
    %33 = vector.load %arg10[%c0_27, %c0_28] : memref<1x1024xf32, #tpu.memory_space<vmem>>, vector<1x1024xf32>
    %34 = vector.broadcast %33 : vector<1x1024xf32> to vector<32x1024xf32>
    %35 = arith.addf %32, %34 : vector<32x1024xf32>
    %cst_29 = arith.constant 0.000000e+00 : f32
    %36 = vector.broadcast %cst_29 : f32 to vector<32x1024xf32>
    %37 = arith.maximumf %35, %36 : vector<32x1024xf32>
    %38 = vector.extract_strided_slice %37 {offsets = [0, 0], sizes = [16, 1024], strides = [1, 1]} : vector<32x1024xf32> to vector<16x1024xf32>
    %cst_30 = arith.constant dense<0xFF800000> : vector<1024xf32>
    %39 = vector.multi_reduction <maximumf>, %38, %cst_30 [0] : vector<16x1024xf32> to vector<1024xf32>
    %c0_31 = arith.constant 0 : index
    %c0_32 = arith.constant 0 : index
    %40 = vector.load %arg20[%c0_31, %c0_32] : memref<2x1024xf32, #tpu.memory_space<vmem>>, vector<1x1024xf32>
    %41 = vector.shape_cast %40 : vector<1x1024xf32> to vector<1024xf32>
    %42 = vector.shape_cast %39 : vector<1024xf32> to vector<1x1024xf32>
    tpu.vector_store %arg20[%c0_31, %c0_32], %42 {strides = array<i32>} : memref<2x1024xf32, #tpu.memory_space<vmem>>, vector<1x1024xf32>,
    %43 = vector.extract_strided_slice %37 {offsets = [16, 0], sizes = [16, 1024], strides = [1, 1]} : vector<32x1024xf32> to vector<16x1024xf32>
    %cst_33 = arith.constant dense<0xFF800000> : vector<1024xf32>
    %44 = vector.multi_reduction <maximumf>, %43, %cst_33 [0] : vector<16x1024xf32> to vector<1024xf32>
    %c1_34 = arith.constant 1 : index
    %c0_35 = arith.constant 0 : index
    %45 = vector.load %arg20[%c1_34, %c0_35] : memref<2x1024xf32, #tpu.memory_space<vmem>>, vector<1x1024xf32>
    %46 = vector.shape_cast %45 : vector<1x1024xf32> to vector<1024xf32>
    %47 = vector.shape_cast %44 : vector<1024xf32> to vector<1x1024xf32>
    tpu.vector_store %arg20[%c1_34, %c0_35], %47 {strides = array<i32>} : memref<2x1024xf32, #tpu.memory_space<vmem>>, vector<1x1024xf32>,
    %c0_36 = arith.constant 0 : index
    %c0_37 = arith.constant 0 : index
    %48 = vector.load %arg20[%c0_36, %c0_37] : memref<2x1024xf32, #tpu.memory_space<vmem>>, vector<2x1024xf32>
    %49 = arith.truncf %48 : vector<2x1024xf32> to vector<2x1024xbf16>
    %c0_38 = arith.constant 0 : index
    %c0_39 = arith.constant 0 : index
    %50 = vector.load %arg11[%c0_38, %c0_39] : memref<1024x512xbf16, #tpu.memory_space<vmem>>, vector<1024x512xbf16>
    %cst_40 = arith.constant dense<0.000000e+00> : vector<2x512xf32>
    %51 = tpu.matmul %49, %50, %cst_40 {dimension_numbers = #tpu.dot_dimension_numbers<[1], [0], [0], [1], [0, 0, 1, 1], [], []>} : vector<2x1024xbf16>, vector<1024x512xbf16>, vector<2x512xf32> -> vector<2x512xf32>
    %c0_41 = arith.constant 0 : index
    %c0_42 = arith.constant 0 : index
    %52 = vector.load %arg12[%c0_41, %c0_42] : memref<1x512xf32, #tpu.memory_space<vmem>>, vector<1x512xf32>
    %53 = vector.broadcast %52 : vector<1x512xf32> to vector<2x512xf32>
    %54 = arith.mulf %51, %53 : vector<2x512xf32>
    %c0_43 = arith.constant 0 : index
    %c0_44 = arith.constant 0 : index
    %55 = vector.load %arg13[%c0_43, %c0_44] : memref<1x512xf32, #tpu.memory_space<vmem>>, vector<1x512xf32>
    %56 = vector.broadcast %55 : vector<1x512xf32> to vector<2x512xf32>
    %57 = arith.addf %54, %56 : vector<2x512xf32>
    %cst_45 = arith.constant 0.000000e+00 : f32
    %58 = vector.broadcast %cst_45 : f32 to vector<2x512xf32>
    %59 = arith.maximumf %57, %58 : vector<2x512xf32>
    %60 = arith.truncf %59 : vector<2x512xf32> to vector<2x512xbf16>
    %c0_46 = arith.constant 0 : index
    %c0_47 = arith.constant 0 : index
    %61 = vector.load %arg14[%c0_46, %c0_47] : memref<512x256xbf16, #tpu.memory_space<vmem>>, vector<512x256xbf16>
    %cst_48 = arith.constant dense<0.000000e+00> : vector<2x256xf32>
    %62 = tpu.matmul %60, %61, %cst_48 {dimension_numbers = #tpu.dot_dimension_numbers<[1], [0], [0], [1], [0, 0, 1, 1], [], []>} : vector<2x512xbf16>, vector<512x256xbf16>, vector<2x256xf32> -> vector<2x256xf32>
    %c0_49 = arith.constant 0 : index
    %c0_50 = arith.constant 0 : index
    %63 = vector.load %arg15[%c0_49, %c0_50] : memref<1x256xf32, #tpu.memory_space<vmem>>, vector<1x256xf32>
    %64 = vector.broadcast %63 : vector<1x256xf32> to vector<2x256xf32>
    %65 = arith.mulf %62, %64 : vector<2x256xf32>
    %c0_51 = arith.constant 0 : index
    %c0_52 = arith.constant 0 : index
    %66 = vector.load %arg16[%c0_51, %c0_52] : memref<1x256xf32, #tpu.memory_space<vmem>>, vector<1x256xf32>
    %67 = vector.broadcast %66 : vector<1x256xf32> to vector<2x256xf32>
    %68 = arith.addf %65, %67 : vector<2x256xf32>
    %cst_53 = arith.constant 0.000000e+00 : f32
    %69 = vector.broadcast %cst_53 : f32 to vector<2x256xf32>
    %70 = arith.maximumf %68, %69 : vector<2x256xf32>
    %71 = arith.truncf %70 : vector<2x256xf32> to vector<2x256xbf16>
    %c0_54 = arith.constant 0 : index
    %c0_55 = arith.constant 0 : index
    %72 = vector.load %arg17[%c0_54, %c0_55] : memref<256x128xbf16, #tpu.memory_space<vmem>>, vector<256x128xbf16>
    %cst_56 = arith.constant dense<0.000000e+00> : vector<2x128xf32>
    %73 = tpu.matmul %71, %72, %cst_56 {dimension_numbers = #tpu.dot_dimension_numbers<[1], [0], [0], [1], [0, 0, 1, 1], [], []>} : vector<2x256xbf16>, vector<256x128xbf16>, vector<2x128xf32> -> vector<2x128xf32>
    %c0_57 = arith.constant 0 : index
    %c0_58 = arith.constant 0 : index
    %74 = vector.load %arg18[%c0_57, %c0_58] : memref<1x128xf32, #tpu.memory_space<vmem>>, vector<1x128xf32>
    %75 = vector.broadcast %74 : vector<1x128xf32> to vector<2x128xf32>
    %76 = arith.addf %73, %75 : vector<2x128xf32>
    %c0_59 = arith.constant 0 : index
    %c0_60 = arith.constant 0 : index
    %c0_61 = arith.constant 0 : index
    %77 = vector.load %arg19[%c0_59, %c0_60, %c0_61] : memref<1x2x128xf32, #tpu.memory_space<vmem>>, vector<1x2x128xf32>
    %78 = vector.shape_cast %77 : vector<1x2x128xf32> to vector<2x128xf32>
    %79 = vector.shape_cast %76 : vector<2x128xf32> to vector<1x2x128xf32>
    tpu.vector_store %arg19[%c0_59, %c0_60, %c0_61], %79 {strides = array<i32>} : memref<1x2x128xf32, #tpu.memory_space<vmem>>, vector<1x2x128xf32>,
    return
  }
  func.func @transform_0(%arg0: i32) -> (i32, i32, i32, i32) {
    %c0_i32 = arith.constant 0 : i32
    %c0_i32_0 = arith.constant 0 : i32
    %c0_i32_1 = arith.constant 0 : i32
    %c0_i32_2 = arith.constant 0 : i32
    return %arg0, %c0_i32, %c0_i32_0, %c0_i32_1 : i32, i32, i32, i32
  }
  func.func @transform_1(%arg0: i32) -> (i32, i32) {
    %c0_i32 = arith.constant 0 : i32
    %c0_i32_0 = arith.constant 0 : i32
    %c0_i32_1 = arith.constant 0 : i32
    return %c0_i32, %c0_i32_0 : i32, i32
  }
  func.func @transform_2(%arg0: i32) -> (i32, i32) {
    %c0_i32 = arith.constant 0 : i32
    %c0_i32_0 = arith.constant 0 : i32
    %c0_i32_1 = arith.constant 0 : i32
    return %c0_i32, %c0_i32_0 : i32, i32
  }
  func.func @transform_3(%arg0: i32) -> (i32, i32) {
    %c0_i32 = arith.constant 0 : i32
    %c0_i32_0 = arith.constant 0 : i32
    %c0_i32_1 = arith.constant 0 : i32
    return %c0_i32, %c0_i32_0 : i32, i32
  }
  func.func @transform_4(%arg0: i32) -> (i32, i32) {
    %c0_i32 = arith.constant 0 : i32
    %c0_i32_0 = arith.constant 0 : i32
    %c0_i32_1 = arith.constant 0 : i32
    return %c0_i32, %c0_i32_0 : i32, i32
  }
  func.func @transform_5(%arg0: i32) -> (i32, i32) {
    %c0_i32 = arith.constant 0 : i32
    %c0_i32_0 = arith.constant 0 : i32
    %c0_i32_1 = arith.constant 0 : i32
    return %c0_i32, %c0_i32_0 : i32, i32
  }
  func.func @transform_6(%arg0: i32) -> (i32, i32) {
    %c0_i32 = arith.constant 0 : i32
    %c0_i32_0 = arith.constant 0 : i32
    %c0_i32_1 = arith.constant 0 : i32
    return %c0_i32, %c0_i32_0 : i32, i32
  }
  func.func @transform_7(%arg0: i32) -> (i32, i32) {
    %c0_i32 = arith.constant 0 : i32
    %c0_i32_0 = arith.constant 0 : i32
    %c0_i32_1 = arith.constant 0 : i32
    return %c0_i32, %c0_i32_0 : i32, i32
  }
  func.func @transform_8(%arg0: i32) -> (i32, i32) {
    %c0_i32 = arith.constant 0 : i32
    %c0_i32_0 = arith.constant 0 : i32
    %c0_i32_1 = arith.constant 0 : i32
    return %c0_i32, %c0_i32_0 : i32, i32
  }
  func.func @transform_9(%arg0: i32) -> (i32, i32) {
    %c0_i32 = arith.constant 0 : i32
    %c0_i32_0 = arith.constant 0 : i32
    %c0_i32_1 = arith.constant 0 : i32
    return %c0_i32, %c0_i32_0 : i32, i32
  }
  func.func @transform_10(%arg0: i32) -> (i32, i32) {
    %c0_i32 = arith.constant 0 : i32
    %c0_i32_0 = arith.constant 0 : i32
    %c0_i32_1 = arith.constant 0 : i32
    return %c0_i32, %c0_i32_0 : i32, i32
  }
  func.func @transform_11(%arg0: i32) -> (i32, i32) {
    %c0_i32 = arith.constant 0 : i32
    %c0_i32_0 = arith.constant 0 : i32
    %c0_i32_1 = arith.constant 0 : i32
    return %c0_i32, %c0_i32_0 : i32, i32
  }
  func.func @transform_12(%arg0: i32) -> (i32, i32) {
    %c0_i32 = arith.constant 0 : i32
    %c0_i32_0 = arith.constant 0 : i32
    %c0_i32_1 = arith.constant 0 : i32
    return %c0_i32, %c0_i32_0 : i32, i32
  }
  func.func @transform_13(%arg0: i32) -> (i32, i32) {
    %c0_i32 = arith.constant 0 : i32
    %c0_i32_0 = arith.constant 0 : i32
    %c0_i32_1 = arith.constant 0 : i32
    return %c0_i32, %c0_i32_0 : i32, i32
  }
  func.func @transform_14(%arg0: i32) -> (i32, i32) {
    %c0_i32 = arith.constant 0 : i32
    %c0_i32_0 = arith.constant 0 : i32
    %c0_i32_1 = arith.constant 0 : i32
    return %c0_i32, %c0_i32_0 : i32, i32
  }
  func.func @transform_15(%arg0: i32) -> (i32, i32) {
    %c0_i32 = arith.constant 0 : i32
    %c0_i32_0 = arith.constant 0 : i32
    %c0_i32_1 = arith.constant 0 : i32
    return %c0_i32, %c0_i32_0 : i32, i32
  }
  func.func @transform_16(%arg0: i32) -> (i32, i32) {
    %c0_i32 = arith.constant 0 : i32
    %c0_i32_0 = arith.constant 0 : i32
    %c0_i32_1 = arith.constant 0 : i32
    return %c0_i32, %c0_i32_0 : i32, i32
  }
  func.func @transform_17(%arg0: i32) -> (i32, i32) {
    %c0_i32 = arith.constant 0 : i32
    %c0_i32_0 = arith.constant 0 : i32
    %c0_i32_1 = arith.constant 0 : i32
    return %c0_i32, %c0_i32_0 : i32, i32
  }
  func.func @transform_18(%arg0: i32) -> (i32, i32, i32) {
    %c0_i32 = arith.constant 0 : i32
    %c0_i32_0 = arith.constant 0 : i32
    %c0_i32_1 = arith.constant 0 : i32
    return %arg0, %c0_i32, %c0_i32_0 : i32, i32, i32
  }
}

</mosaic_0001>

<bundles_post_ra>
// kernel: tpu_custom_call.1
= control target key start
LH: loop header
LB: loop body
LE: loop exit
PB: predicated region body
PF: predicated region fallthrough
CT: control target
= control target key end

     0   :  { %s6757_s0 = inlined_call_operand.vmem [shape: f32[1,2,6,16], index: 0, kind: input, shape index: {}]   ;;  %s6758_s1 = inlined_call_operand.vmem [shape: f32[6,64], index: 1, kind: input, shape index: {}]   ;;  %s6759_s2 = inlined_call_operand.hbm [shape: f32[1,64], index: 2, kind: input, shape index: {}]   ;;  %s6760_s3 = inlined_call_operand.hbm [shape: f32[1,64], index: 3, kind: input, shape index: {}]   ;;  %s6761_s4 = inlined_call_operand.hbm [shape: bf16[64,128], index: 4, kind: input, shape index: {}]   ;;  %s6762_s5 = inlined_call_operand.hbm [shape: f32[1,128], index: 5, kind: input, shape index: {}]   ;;  %s6763_s6 = inlined_call_operand.hbm [shape: f32[1,128], index: 6, kind: input, shape index: {}]   ;;  %s6764_s7 = inlined_call_operand.hbm [shape: bf16[128,1024], index: 7, kind: input, shape index: {}]   ;;  %s6765_s8 = inlined_call_operand.vmem [shape: f32[1,1024], index: 8, kind: input, shape index: {}]   ;;  %s6766_s9 = inlined_call_operand.vmem [shape: f32[1,1024], index: 9, kind: input, shape index: {}]   ;;  %s6767_s10 = inlined_call_operand.hbm [shape: bf16[1024,512], index: 10, kind: input, shape index: {}]   ;;  %s6768_s11 = inlined_call_operand.vmem [shape: f32[1,512], index: 11, kind: input, shape index: {}]   ;;  %s6769_s12 = inlined_call_operand.vmem [shape: f32[1,512], index: 12, kind: input, shape index: {}]   ;;  %s6770_s13 = inlined_call_operand.hbm [shape: bf16[512,256], index: 13, kind: input, shape index: {}]   ;;  %s6771_s14 = inlined_call_operand.vmem [shape: f32[1,256], index: 14, kind: input, shape index: {}]   ;;  %s6772_s15 = inlined_call_operand.vmem [shape: f32[1,256], index: 15, kind: input, shape index: {}]   ;;  %s6773_s16 = inlined_call_operand.hbm [shape: bf16[256,128], index: 16, kind: input, shape index: {}]   ;;  %s6774_s17 = inlined_call_operand.vmem [shape: f32[1,128], index: 17, kind: input, shape index: {}]   ;;  %s6775_s18 = inlined_call_operand.hbm [shape: f32[1,2,128], index: 18, kind: output, shape index: {}]  }
   0x1   :  { %6777 = sst [smem:[#allocation25_spill]] %s6757_s0 }
   0x2   :  { %6778 = sst [smem:[#allocation26_spill]] %s6758_s1 }
   0x3   :  { %6779 = sst [smem:[#allocation27_spill]] %s6759_s2 }
   0x4   :  { %23 = vsyncpa [#allocation4], 0 }
   0x5   :  { %24 = vsyncpa [#allocation7], 0 }
   0x6   :  { %25 = vsyncpa [#allocation10], 0 }
   0x7   :  { %26 = vsyncpa [#allocation13], 0 }
   0x8   :  { %27 = vsyncpa [#allocation16], 0  ;;  %s49_s29 = sshll.u32 %s6760_s3, 4  ;;  %s50_s29 = int_to_ptr.hbm [resolvable:$true] %s49_s29 }
   0x9   :  { %28 = vsyncpa [#allocation5], 0  ;;  %s6274_s30 = smov [#allocation6]   ;;  %s73_s20 = sshll.u32 %s6762_s5, 4  ;;  %s74_s20 = int_to_ptr.hbm [resolvable:$true] %s73_s20 }
   0xa   :  { %s51_s0 = sshll.u32 %s6274_s30, 4  ;;  %s6275_s21 = smov [#allocation9]   ;;  %s52_s0 = int_to_ptr.vmem [resolvable:$true] %s51_s0 }
   0xb   :  { %54 = dma.hbm_to_vmem [thread:$0]  %s50_s29, 16, %s52_s0, [#allocation7]  }
   0xc   :  { %s75_s22 = sshll.u32 %s6275_s21, 4  ;;  %s94_s24 = sshll.u32 %s6764_s7, 4  ;;  %s76_s22 = int_to_ptr.vmem [resolvable:$true] %s75_s22  ;;  %s95_s24 = int_to_ptr.hbm [resolvable:$true] %s94_s24 }
   0xd   :  { %78 = dma.hbm_to_vmem [thread:$0]  %s74_s20, 16, %s76_s22, [#allocation10]  }
   0xe   :  { %s6276_s3 = smov [#allocation12]   ;;  %s128_s28 = sshll.u32 %s6770_s13, 4  ;;  %s129_s28 = int_to_ptr.hbm [resolvable:$true] %s128_s28 }
   0xf   :  { %s96_s25 = sshll.u32 %s6276_s3, 4  ;;  %s6277_s30 = smov 512   ;;  %s97_s25 = int_to_ptr.vmem [resolvable:$true] %s96_s25 }
  0x10   :  { %s6278_s5 = smov 32   ;;  %s6279_s29 = smov [#allocation15]  }
  0x11   :  { %102 = dma.hbm_to_vmem [thread:$0]  %s95_s24, 8192, %s97_s25, [#allocation13], %s6277_s30, %s6277_s30, %s6278_s5  }
  0x12   :  { %s130_s0 = sshll.u32 %s6279_s29, 4  ;;  %s6280_s19 = smov 128   ;;  %s131_s0 = int_to_ptr.vmem [resolvable:$true] %s130_s0 }
  0x13   :  { %s6281_s1 = smov 8   ;;  %s6780_s20 = sld [smem:[#allocation27_spill]] }
  0x14   :  { %136 = dma.hbm_to_vmem [thread:$0]  %s129_s28, 8192, %s131_s0, [#allocation16], %s6280_s19, %s6280_s19, %s6281_s1  }
  0x15   :  { %s6282_s2 = smov [#allocation3]   ;;  %s59_s26 = sshll.u32 %s6761_s4, 4  ;;  %s60_s26 = int_to_ptr.hbm [resolvable:$true] %s59_s26 }
  0x16   :  { %s40_s23 = sshll.u32 %s6282_s2, 4  ;;  %s6283_s24 = smov [#allocation8]   ;;  %s41_s23 = int_to_ptr.vmem [resolvable:$true] %s40_s23 }
  0x17   :  { %s61_s25 = sshll.u32 %s6283_s24, 4  ;;  %s6284_s27 = smov 64   ;;  %s62_s25 = int_to_ptr.vmem [resolvable:$true] %s61_s25 }
  0x18   :  { %s6285_s30 = smov 4   ;;  %s84_s29 = sshll.u32 %s6763_s6, 4  ;;  %s85_s29 = int_to_ptr.hbm [resolvable:$true] %s84_s29 }
  0x19   :  { %s38_s22 = sshll.u32 %s6780_s20, 4  ;;  %s6286_s0 = smov [#allocation11]   ;;  %s39_s22 = int_to_ptr.hbm [resolvable:$true] %s38_s22 }
  0x1a   :  { %43 = dma.hbm_to_vmem [thread:$0]  %s39_s22, 16, %s41_s23, [#allocation4]  }
  0x1b   :  { %67 = dma.hbm_to_vmem [thread:$0]  %s60_s26, 512, %s62_s25, [#allocation7], %s6284_s27, %s6284_s27, %s6285_s30  }
  0x1c   :  { %s86_s19 = sshll.u32 %s6286_s0, 4  ;;  %s111_s4 = sshll.u32 %s6767_s10, 4  ;;  %s87_s19 = int_to_ptr.vmem [resolvable:$true] %s86_s19  ;;  %s112_s4 = int_to_ptr.hbm [resolvable:$true] %s111_s4 }
  0x1d   :  { %89 = dma.hbm_to_vmem [thread:$0]  %s85_s29, 16, %s87_s19, [#allocation10]  }
  0x1e   :  { %s6287_s21 = smov [#allocation14]   ;;  %s6288_s22 = smov 256  }
  0x1f   :  { %s113_s20 = sshll.u32 %s6287_s21, 4  ;;  %s6289_s2 = smov 16   ;;  %s114_s20 = int_to_ptr.vmem [resolvable:$true] %s113_s20 }
  0x20   :  { %119 = dma.hbm_to_vmem [thread:$0]  %s112_s4, 32768, %s114_s20, [#allocation13], %s6288_s22, %s6288_s22, %s6289_s2  }
  0x21   :  { %s145_s6 = sshll.u32 %s6773_s16, 4  ;;  %s6290_s13 = smov [#allocation17]   ;;  %s146_s6 = int_to_ptr.hbm [resolvable:$true] %s145_s6 }
  0x22   :  { %s147_s26 = sshll.u32 %s6290_s13, 4  ;;  %s148_s26 = int_to_ptr.vmem [resolvable:$true] %s147_s26 }
  0x23   :  { %153 = dma.hbm_to_vmem [thread:$0]  %s146_s6, 2048, %s148_s26, [#allocation16], %s6284_s27, %s6284_s27, %s6285_s30  }
  0x24   :  { %6262 = dma.done.wait [#allocation4], 16  }
  0x25   :  { %6263 = vsyncadd [#allocation4], 4294967280 }
  0x26   :  { %6264 = dma.done.wait [#allocation7], 528  }
  0x27   :  { %6265 = vsyncadd [#allocation7], 4294966768 }
  0x28   :  { %6266 = dma.done.wait [#allocation10], 32  }
  0x29   :  { %6267 = vsyncadd [#allocation10], 4294967264 }
  0x2a   :  { %6268 = dma.done.wait [#allocation13], 40960  }
  0x2b   :  { %6269 = vsyncadd [#allocation13], 4294926336 }
  0x2c   :  { %6270 = dma.done.wait [#allocation16], 10240  }
  0x2d   :  { %6271 = vsyncadd [#allocation16], 4294957056  ;;  %s6781_s25 = sld [smem:[#allocation25_spill]]  ;;  %vm234_vm0 = vcmask 1045504   ;;  %vm227_vm1 = vcmask 48128   ;;  %v5597_v7 = vld [vmem:[#allocation8 + $0x18] sm:$0xff] }
  0x2e   :  { %s6782_s5 = sld [smem:[#allocation26_spill]]  ;;  %389 = vmatpush.bf16.msra.mxu2 %v5597_v7  ;;  %v5596_v8 = vld [vmem:[#allocation8 + $0x10] sm:$0xff]  ;;  %v5595_v9 = vld [vmem:[#allocation8 + $0x8] sm:$0xff]  ;;  %v5594_v10 = vld [vmem:[#allocation8] sm:$0xff]  ;;  %vm378_vm2 = vcmask 523264   ;;  %vm1167_vm3 = vcmask 1042434  }
  0x2f   :  { %v6423_v12 = vld [vmem:[#allocation3] ss:$0 sm:$0xff]  ;;  %v4220_v13 = vld [vmem:[#allocation12 + $0x1c0] sm:$0xf]  ;;  %v5654_v15 = vld [vmem:[#allocation12 + $0x1c4] sm:$0xf] }
  0x30   :  { %v5658_v14 = vld [vmem:[#allocation12 + $0x1dc] sm:$0xf0]  ;;  %v6425_v16 = vld [vmem:[#allocation6] ss:$0 sm:$0xff]  ;;  %v4222_v18 = vld [vmem:[#allocation12 + $0x1e0] sm:$0xf0] }
  0x31   :  { %v4221_v17 = vor.u32 %v5658_v14, %v4220_v13  ;;  %v4228_v19 = vld [vmem:[#allocation12 + $0x1c8] sm:$0xf]  ;;  %v4225_v21 = vor.u32 %v5654_v15, %v4222_v18  ;;  %v5655_v23 = vld [vmem:[#allocation12 + $0x1cc] sm:$0xf]  ;;  %v4188_v25 = vld [vmem:[#allocation12 + $0x180] sm:$0xf] }
  0x32   :  { %390 = vmatpush.bf16.msra.mxu2 %v5596_v8  ;;  %v5659_v20 = vld [vmem:[#allocation12 + $0x1e4] sm:$0xf0]  ;;  %v4230_v24 = vld [vmem:[#allocation12 + $0x1e8] sm:$0xf0]  ;;  %v5650_v28 = vld [vmem:[#allocation12 + $0x19c] sm:$0xf0] }
  0x33   :  { %v194_v0 = vld [vmem:[%s6781_s25] sm:$0x3f]  ;;  %v3972_v1 = vld [vmem:[%s6781_s25 + $0x8] sm:$0x3f]  ;;  %v4229_v22 = vor.u32 %v5659_v20, %v4228_v19  ;;  %810 = vmatpush.bf16.msra.mxu3 %v4221_v17  ;;  %v4233_v27 = vor.u32 %v5655_v23, %v4230_v24  ;;  %829 = vmatpush.bf16.msra.mxu0 %v4225_v21  ;;  %v4189_v31 = vor.u32 %v5650_v28, %v4188_v25  ;;  %vm1165_vm4 = vcmask 1040384   ;;  %s6291_s22 = smov [#allocation18]  }
  0x34   :  { %195 = vxpose.xlu0.b32.start.end [1/1] (short) (narrow) %v194_v0, 16  ;;  %v193_v2 = vld [vmem:[%s6782_s5] sm:$0x3f]  ;;  %v4196_v33 = vld [vmem:[#allocation12 + $0x188] sm:$0xf]  ;;  %vm1169_vm5 = vcmask 1041408  }
  0x35   :  { %3969 = vmatpush.msk.msra.mxu1 %vm234_vm0, %v193_v2  ;;  %v5646_v29 = vld [vmem:[#allocation12 + $0x184] sm:$0xf]  ;;  %v5651_v34 = vld [vmem:[#allocation12 + $0x1a4] sm:$0xf0]  ;;  %v5647_v36 = vld [vmem:[#allocation12 + $0x18c] sm:$0xf] }
  0x36   :  { %391 = vmatpush.bf16.msra.mxu2 %v5595_v9  ;;  %v4190_v30 = vld [vmem:[#allocation12 + $0x1a0] sm:$0xf0]  ;;  %v4197_v35 = vor.u32 %v5651_v34, %v4196_v33  ;;  %v4198_v37 = vld [vmem:[#allocation12 + $0x1a8] sm:$0xf0]  ;;  %v4156_v38 = vld [vmem:[#allocation12 + $0x140] sm:$0xf] }
  0x37   :  { %3973 = vmatpush.msk.msrb.mxu1 %vm234_vm0, %v193_v2  ;;  %v4193_v32 = vor.u32 %v5646_v29, %v4190_v30  ;;  %v4201_v39 = vor.u32 %v5647_v36, %v4198_v37  ;;  %v5642_v40 = vld [vmem:[#allocation12 + $0x15c] sm:$0xf0]  ;;  %v5638_v41 = vld [vmem:[#allocation12 + $0x144] sm:$0xf]  ;;  %811 = vmatpush.bf16.msra.mxu3 %v4189_v31  ;;  %v4164_v46 = vld [vmem:[#allocation12 + $0x148] sm:$0xf] }
  0x38   :  { %v4158_v42 = vld [vmem:[#allocation12 + $0x160] sm:$0xf0]  ;;  %v4157_v45 = vor.u32 %v5642_v40, %v4156_v38  ;;  %v5643_v47 = vld [vmem:[#allocation12 + $0x164] sm:$0xf0]  ;;  %v5639_v48 = vld [vmem:[#allocation12 + $0x14c] sm:$0xf] }
  0x39   :  { %830 = vmatpush.bf16.msra.mxu0 %v4193_v32  ;;  %v4161_v50 = vor.u32 %v5638_v41, %v4158_v42  ;;  %v4165_v51 = vor.u32 %v5643_v47, %v4164_v46  ;;  %v4166_v52 = vld [vmem:[#allocation12 + $0x168] sm:$0xf0]  ;;  %v4124_v53 = vld [vmem:[#allocation12 + $0x100] sm:$0xf]  ;;  %v5630_v56 = vld [vmem:[#allocation12 + $0x104] sm:$0xf] }
  0x3a   :  { %392 = vmatpush.bf16.msra.mxu2 %v5594_v10  ;;  %v5634_v54 = vld [vmem:[#allocation12 + $0x11c] sm:$0xf0]  ;;  %v4169_v55 = vor.u32 %v5639_v48, %v4166_v52  ;;  %v4126_v57 = vld [vmem:[#allocation12 + $0x120] sm:$0xf0]  ;;  %v4132_v58 = vld [vmem:[#allocation12 + $0x108] sm:$0xf] }
  0x3b   :  { %v5635_v60 = vld [vmem:[#allocation12 + $0x124] sm:$0xf0]  ;;  %v5631_v61 = vld [vmem:[#allocation12 + $0x10c] sm:$0xf]  ;;  %812 = vmatpush.bf16.msra.mxu3 %v4157_v45  ;;  %v4125_v63 = vor.u32 %v5634_v54, %v4124_v53  ;;  %v4129_v2 = vor.u32 %v5630_v56, %v4126_v57  ;;  %v4092_v17 = vld [vmem:[#allocation12 + $0xc0] sm:$0xf] }
  0x3c   :  { %v4134_v62 = vld [vmem:[#allocation12 + $0x128] sm:$0xf0]  ;;  %v5626_v18 = vld [vmem:[#allocation12 + $0xdc] sm:$0xf0]  ;;  %v5622_v20 = vld [vmem:[#allocation12 + $0xc4] sm:$0xf] }
  0x3d   :  { %831 = vmatpush.bf16.msra.mxu0 %v4161_v50  ;;  %v4093_v19 = vor.u32 %v5626_v18, %v4092_v17  ;;  %v4094_v21 = vld [vmem:[#allocation12 + $0xe0] sm:$0xf0]  ;;  %v5627_v24 = vld [vmem:[#allocation12 + $0xe4] sm:$0xf0]  ;;  %v5623_v25 = vld [vmem:[#allocation12 + $0xcc] sm:$0xf] }
  0x3e   :  { %867 = vmatpush.bf16.msrb.mxu2 %v4233_v27  ;;  %v4097_v23 = vor.u32 %v5622_v20, %v4094_v21  ;;  %v4102_v27 = vld [vmem:[#allocation12 + $0xe8] sm:$0xf0]  ;;  %v5618_v28 = vld [vmem:[#allocation12 + $0x9c] sm:$0xf0]  ;;  %v5614_v29 = vld [vmem:[#allocation12 + $0x84] sm:$0xf] }
  0x3f   :  { %813 = vmatpush.bf16.msra.mxu3 %v4125_v63  ;;  %v4062_v31 = vld [vmem:[#allocation12 + $0xa0] sm:$0xf0]  ;;  %v4068_v32 = vld [vmem:[#allocation12 + $0x88] sm:$0xf]  ;;  %v5615_v36 = vld [vmem:[#allocation12 + $0x8c] sm:$0xf] }
  0x40   :  { %v5619_v33 = vld [vmem:[#allocation12 + $0xa4] sm:$0xf0]  ;;  %v4065_v34 = vor.u32 %v5614_v29, %v4062_v31  ;;  %v4070_v37 = vld [vmem:[#allocation12 + $0xa8] sm:$0xf0]  ;;  %v5610_v40 = vld [vmem:[#allocation12 + $0x5c] sm:$0xf0] }
  0x41   :  { %832 = vmatpush.bf16.msra.mxu0 %v4129_v2  ;;  %v4073_v38 = vor.u32 %v5615_v36, %v4070_v37  ;;  %v5606_v41 = vld [vmem:[#allocation12 + $0x44] sm:$0xf]  ;;  %v5611_v45 = vld [vmem:[#allocation12 + $0x64] sm:$0xf0]  ;;  %v5607_v48 = vld [vmem:[#allocation12 + $0x4c] sm:$0xf] }
  0x42   :  { %868 = vmatpush.bf16.msrb.mxu2 %v4201_v39  ;;  %v4028_v39 = vld [vmem:[#allocation12 + $0x40] sm:$0xf]  ;;  %v5598_v53 = vld [vmem:[#allocation12 + $0x4] sm:$0xf]  ;;  %v4004_v56 = vld [vmem:[#allocation12 + $0x8] sm:$0xf] }
  0x43   :  { %814 = vmatpush.bf16.msra.mxu3 %v4093_v19  ;;  %v4029_v42 = vor.u32 %v5610_v40, %v4028_v39  ;;  %v5602_v52 = vld [vmem:[#allocation12 + $0x1c] sm:$0xf0]  ;;  %v5603_v57 = vld [vmem:[#allocation12 + $0x24] sm:$0xf0]  ;;  %v4236_v63 = vld [vmem:[#allocation12 + $0x1d0] sm:$0xf] }
  0x44   :  { %263 = vxpose.xlu0.b32.start.end [1/1] (short) (narrow) %v3972_v1, 16  ;;  %v4206_v17 = vld [vmem:[#allocation12 + $0x1b0] sm:$0xf0]  ;;  %v4212_v18 = vld [vmem:[#allocation12 + $0x198] sm:$0xf]  ;;  %vm1171_vm6 = vcmask 1044484  }
  0x45   :  { %833 = vmatpush.bf16.msra.mxu0 %v4097_v23  ;;  %v5653_v19 = vld [vmem:[#allocation12 + $0x1b4] sm:$0xf0]  ;;  %v4214_v23 = vld [vmem:[#allocation12 + $0x1b8] sm:$0xf0]  ;;  %v5636_v36 = vld [vmem:[#allocation12 + $0x12c] sm:$0xf0] }
  0x46   :  { %869 = vmatpush.bf16.msrb.mxu2 %v4169_v55  ;;  %v3998_v55 = vld [vmem:[#allocation12 + $0x20] sm:$0xf0]  ;;  %v4213_v21 = vor.u32 %v5653_v19, %v4212_v18  ;;  %v5645_v29 = vld [vmem:[#allocation12 + $0x174] sm:$0xf0]  ;;  %v5632_v37 = vld [vmem:[#allocation12 + $0x114] sm:$0xf] }
  0x47   :  { %v4142_v39 = vld [vmem:[#allocation12 + $0x130] sm:$0xf0]  ;;  %v4148_v40 = vld [vmem:[#allocation12 + $0x118] sm:$0xf]  ;;  %vm1173_vm7 = vcmask 1046534   ;;  %vm1175_vm8 = vcmask 1045508  }
  0x48   :  { %v4052_v18 = vld [vmem:[#allocation12 + $0x58] sm:$0xf]  ;;  %vm1177_vm9 = vcmask 1043456   ;;  %s3953_s2 = sshll.u32 %s6291_s22, 4  ;;  %s3955_s6 = sshll.u32 %s6775_s18, 4  ;;  %s3954_s2 = int_to_ptr.vmem [resolvable:$true] %s3953_s2  ;;  %s3956_s6 = int_to_ptr.hbm [resolvable:$true] %s3955_s6 }
  0x49   :  { %834 = vmatpush.bf16.msra.mxu0 %v4065_v34  ;;  %v5613_v19 = vld [vmem:[#allocation12 + $0x74] sm:$0xf0] }
  0xd8   :  { %v211_v3 = vpop.trf.xlu0 }
  0xd9   :  { %3970 = vmatmul.msk.f32.vlgmr.msra.gmra.mxu1 %vm227_vm1, %v211_v3  ;;  %v4133_v3 = vor.u32 %v5635_v60, %v4132_v58  ;;  %v4001_v58 = vor.u32 %v5598_v53, %v3998_v55  ;;  %v5599_v60 = vld [vmem:[#allocation12 + $0xc] sm:$0xf]  ;;  %v4110_v53 = vld [vmem:[#allocation12 + $0xf0] sm:$0xf0]  ;;  %v5629_v55 = vld [vmem:[#allocation12 + $0xf4] sm:$0xf0] }
  0xda   :  { %848 = vmatpush.bf16.msra.mxu1 %v4229_v22  ;;  %v4100_v22 = vld [vmem:[#allocation12 + $0xc8] sm:$0xf] }
  0xde   :  { %849 = vmatpush.bf16.msra.mxu1 %v4197_v35  ;;  %v4069_v35 = vor.u32 %v5619_v33, %v4068_v32  ;;  %v5641_v32 = vld [vmem:[#allocation12 + $0x15c] sm:$0xf] }
  0xdf   :  { %v4182_v33 = vld [vmem:[#allocation12 + $0x178] sm:$0xf0] }
  0xe0   :  { %v212_v4 = vpop.trf.xlu0  ;;  %v4185_v34 = vor.u32 %v5641_v32, %v4182_v33 }
  0xe1   :  { %3971 = vmatmul.msk.f32.gmra.mxu1 %vm227_vm1, %v212_v4  ;;  %v4137_v4 = vor.u32 %v5631_v61, %v4134_v62  ;;  %v4006_v61 = vld [vmem:[#allocation12 + $0x28] sm:$0xf0] }
  0xe2   :  { %850 = vmatpush.bf16.msra.mxu1 %v4165_v51  ;;  %v3996_v51 = vld [vmem:[#allocation12] sm:$0xf]  ;;  %v4009_v62 = vor.u32 %v5599_v60, %v4006_v61  ;;  %v4076_v60 = vld [vmem:[#allocation12 + $0x90] sm:$0xf] }
  0xe3   :  { %870 = vmatpush.bf16.msrb.mxu2 %v4137_v4  ;;  %v3997_v54 = vor.u32 %v5602_v52, %v3996_v51  ;;  %v4244_v4 = vld [vmem:[#allocation12 + $0x1d8] sm:$0xf]  ;;  %v5624_v51 = vld [vmem:[#allocation12 + $0xd4] sm:$0xf] }
  0xe6   :  { %851 = vmatpush.bf16.msra.mxu1 %v4133_v3  ;;  %v4238_v3 = vld [vmem:[#allocation12 + $0x1f0] sm:$0xf0] }
  0xe8   :  { %v279_v5 = vpop.trf.xlu0 }
  0xe9   :  { %3974 = vmatmul.msk.f32.vlgmr.msrb.gmra.mxu1 %vm227_vm1, %v279_v5 }
  0xf0   :  { %v280_v6 = vpop.trf.xlu0 }
  0xf1   :  { %3975 = vmatmul.msk.f32.gmra.mxu1 %vm227_vm1, %v280_v6 }
 0x156   :  { %v255_v11 = vpop.f32.mrf.mxu1 }
 0x157   :  { %v328_v26 = vmul.f32 %v6423_v12, %v255_v11 }
 0x159   :  { %v336_v43 = vadd.f32 %v6425_v16, %v328_v26  ;;  %v4101_v26 = vor.u32 %v5627_v24, %v4100_v22  ;;  %v5649_v22 = vld [vmem:[#allocation12 + $0x19c] sm:$0xf] }
 0x15a   :  { %v4217_v24 = vor.u32 %v5649_v22, %v4214_v23  ;;  %v4053_v23 = vor.u32 %v5613_v19, %v4052_v18 }
 0x15b   :  { %v340_v0 = vmax.f32 %v336_v43, 0.0  ;;  %852 = vmatpush.bf16.msra.mxu1 %v4101_v26  ;;  %v4030_v43 = vld [vmem:[#allocation12 + $0x60] sm:$0xf0]  ;;  %v5644_v26 = vld [vmem:[#allocation12 + $0x16c] sm:$0xf0] }
 0x15c   :  { %v4033_v46 = vor.u32 %v5606_v41, %v4030_v43  ;;  %v5637_v41 = vld [vmem:[#allocation12 + $0x134] sm:$0xf0] }
 0x15d   :  { %v4149_v43 = vor.u32 %v5637_v41, %v4148_v40 }
 0x15e   :  { %v258_v44 = vpop.f32.mrf.mxu1  ;;  %835 = vmatpush.bf16.msra.mxu0 %v4033_v46  ;;  %v6437_v46 = vld [vmem:[#allocation9] ss:$0 sm:$0xff] }
 0x15f   :  { %v329_v49 = vmul.f32 %v6423_v12, %v258_v44  ;;  %853 = vmatpush.bf16.msra.mxu1 %v4069_v35  ;;  %v4036_v44 = vld [vmem:[#allocation12 + $0x48] sm:$0xf]  ;;  %v4140_v35 = vld [vmem:[#allocation12 + $0x110] sm:$0xf] }
 0x160   :  { %v4037_v47 = vor.u32 %v5611_v45, %v4036_v44  ;;  %v5633_v44 = vld [vmem:[#allocation12 + $0x11c] sm:$0xf] }
 0x161   :  { %v337_v59 = vadd.f32 %v6425_v16, %v329_v49  ;;  %v4038_v49 = vld [vmem:[#allocation12 + $0x68] sm:$0xf0]  ;;  %v4150_v45 = vld [vmem:[#allocation12 + $0x138] sm:$0xf0] }
 0x162   :  { %v4041_v50 = vor.u32 %v5607_v48, %v4038_v49  ;;  %836 = vmatpush.bf16.msra.mxu0 %v4001_v58  ;;  %v4108_v49 = vld [vmem:[#allocation12 + $0xd0] sm:$0xf]  ;;  %v5625_v58 = vld [vmem:[#allocation12 + $0xdc] sm:$0xf] }
 0x163   :  { %v341_v1 = vmax.f32 %v337_v59, 0.0  ;;  %854 = vmatpush.bf16.msra.mxu1 %v4037_v47  ;;  %v4005_v59 = vor.u32 %v5603_v57, %v4004_v56  ;;  %v4153_v47 = vor.u32 %v5633_v44, %v4150_v45  ;;  %v4113_v56 = vor.u32 %v5624_v51, %v4110_v53 }
 0x165   :  { %v344_v5 = vpack.c.bf16 %v341_v1, %v340_v0  ;;  %v5660_v0 = vld [vmem:[#allocation12 + $0x1ec] sm:$0xf0]  ;;  %v5656_v1 = vld [vmem:[#allocation12 + $0x1d4] sm:$0xf] }
 0x166   :  { %v318_v6 = vpop.f32.mrf.mxu1  ;;  %v4237_v2 = vor.u32 %v5660_v0, %v4236_v63  ;;  %v5616_v63 = vld [vmem:[#allocation12 + $0x94] sm:$0xf] }
 0x167   :  { %3992 = vmatmul.msk.bf16.vlgmr.msra.gmra.mxu2 %vm378_vm2, %v344_v5  ;;  %v330_v7 = vmul.f32 %v6423_v12, %v318_v6  ;;  %855 = vmatpush.bf16.msra.mxu1 %v4005_v59  ;;  %v5661_v5 = vld [vmem:[#allocation12 + $0x1f4] sm:$0xf0]  ;;  %v4241_v6 = vor.u32 %v5656_v1, %v4238_v3  ;;  %v4118_v59 = vld [vmem:[#allocation12 + $0xf8] sm:$0xf0]  ;;  %v4078_v0 = vld [vmem:[#allocation12 + $0xb0] sm:$0xf0] }
 0x168   :  { %v4121_v61 = vor.u32 %v5625_v58, %v4118_v59  ;;  %v4084_v3 = vld [vmem:[#allocation12 + $0x98] sm:$0xf] }
 0x169   :  { %v338_v9 = vadd.f32 %v6425_v16, %v330_v7  ;;  %v4245_v7 = vor.u32 %v5661_v5, %v4244_v4  ;;  %905 = vmatpush.bf16.msrb.mxu0 %v4241_v6  ;;  %v5621_v4 = vld [vmem:[#allocation12 + $0xb4] sm:$0xf0]  ;;  %v5617_v5 = vld [vmem:[#allocation12 + $0x9c] sm:$0xf] }
 0x16b   :  { %v342_v13 = vmax.f32 %v338_v9, 0.0  ;;  %v4246_v9 = vld [vmem:[#allocation12 + $0x1f8] sm:$0xf0]  ;;  %924 = vmatpush.bf16.msrb.mxu1 %v4245_v7 }
 0x16c   :  { %v6020_v7 = vld [vmem:[#allocation11] ss:$0 sm:$0xff] }
 0x16e   :  { %v321_v8 = vpop.f32.mrf.mxu1 }
 0x16f   :  { %v331_v10 = vmul.f32 %v6423_v12, %v321_v8  ;;  %v4105_v12 = vor.u32 %v5623_v25, %v4102_v27  ;;  %v5657_v8 = vld [vmem:[#allocation12 + $0x1dc] sm:$0xf]  ;;  %925 = vmatpush.bf16.msrb.mxu1 %v4213_v21  ;;  %v4172_v25 = vld [vmem:[#allocation12 + $0x150] sm:$0xf]  ;;  %v5640_v27 = vld [vmem:[#allocation12 + $0x154] sm:$0xf] }
 0x171   :  { %v339_v11 = vadd.f32 %v6425_v16, %v331_v10  ;;  %v4060_v16 = vld [vmem:[#allocation12 + $0x80] sm:$0xf]  ;;  %871 = vmatpush.bf16.msrb.mxu2 %v4105_v12  ;;  %v4249_v10 = vor.u32 %v5657_v8, %v4246_v9  ;;  %v4173_v12 = vor.u32 %v5644_v26, %v4172_v25  ;;  %v4085_v8 = vor.u32 %v5621_v4, %v4084_v3  ;;  %v4086_v9 = vld [vmem:[#allocation12 + $0xb8] sm:$0xf0]  ;;  %v4012_v25 = vld [vmem:[#allocation12 + $0x10] sm:$0xf] }
 0x172   :  { %v4061_v30 = vor.u32 %v5618_v28, %v4060_v16  ;;  %v4174_v16 = vld [vmem:[#allocation12 + $0x170] sm:$0xf0]  ;;  %v4180_v28 = vld [vmem:[#allocation12 + $0x158] sm:$0xf]  ;;  %v5604_v26 = vld [vmem:[#allocation12 + $0x2c] sm:$0xf0] }
 0x173   :  { %v343_v14 = vmax.f32 %v339_v11, 0.0  ;;  %v4204_v11 = vld [vmem:[#allocation12 + $0x190] sm:$0xf]  ;;  %v4181_v31 = vor.u32 %v5645_v29, %v4180_v28  ;;  %v5600_v28 = vld [vmem:[#allocation12 + $0x14] sm:$0xf]  ;;  %v4013_v33 = vor.u32 %v5604_v26, %v4012_v25 }
 0x174   :  { %815 = vmatpush.bf16.msra.mxu3 %v4061_v30  ;;  %v4177_v30 = vor.u32 %v5640_v27, %v4174_v16  ;;  %v4014_v29 = vld [vmem:[#allocation12 + $0x30] sm:$0xf0] }
 0x175   :  { %v345_v15 = vpack.c.bf16 %v343_v14, %v342_v13  ;;  %872 = vmatpush.bf16.msrb.mxu2 %v4073_v38  ;;  %v5652_v13 = vld [vmem:[#allocation12 + $0x1ac] sm:$0xf0]  ;;  %v5648_v14 = vld [vmem:[#allocation12 + $0x194] sm:$0xf]  ;;  %926 = vmatpush.bf16.msrb.mxu1 %v4181_v31  ;;  %v4141_v38 = vor.u32 %v5636_v36, %v4140_v35  ;;  %v5605_v31 = vld [vmem:[#allocation12 + $0x34] sm:$0xf0] }
 0x176   :  { %v4209_v20 = vor.u32 %v5648_v14, %v4206_v17  ;;  %v5608_v14 = vld [vmem:[#allocation12 + $0x54] sm:$0xf]  ;;  %v5601_v36 = vld [vmem:[#allocation12 + $0x1c] sm:$0xf] }
 0x177   :  { %3993 = vmatmul.msk.bf16.gmra.mxu2 %vm378_vm2, %v345_v15  ;;  %v4205_v15 = vor.u32 %v5652_v13, %v4204_v11  ;;  %v4089_v11 = vor.u32 %v5617_v5, %v4086_v9  ;;  %v5612_v13 = vld [vmem:[#allocation12 + $0x6c] sm:$0xf0] }
 0x178   :  { %816 = vmatpush.bf16.msra.mxu3 %v4029_v42  ;;  %906 = vmatpush.bf16.msrb.mxu0 %v4209_v20  ;;  %v4145_v42 = vor.u32 %v5632_v37, %v4142_v39  ;;  %v5609_v20 = vld [vmem:[#allocation12 + $0x5c] sm:$0xf] }
 0x179   :  { %873 = vmatpush.bf16.msrb.mxu2 %v4041_v50  ;;  %927 = vmatpush.bf16.msrb.mxu1 %v4149_v43  ;;  %v5628_v50 = vld [vmem:[#allocation12 + $0xec] sm:$0xf0]  ;;  %v4022_v37 = vld [vmem:[#allocation12 + $0x38] sm:$0xf0] }
 0x17a   :  { %v4109_v52 = vor.u32 %v5628_v50, %v4108_v49  ;;  %v4025_v41 = vor.u32 %v5601_v36, %v4022_v37  ;;  %v4748_v36 = vld [vmem:[#allocation14 + $0x3e0] sm:$0xf]  ;;  %v5788_v37 = vld [vmem:[#allocation14 + $0x3ec] sm:$0xf0] }
 0x17c   :  { %817 = vmatpush.bf16.msra.mxu3 %v3997_v54  ;;  %907 = vmatpush.bf16.msrb.mxu0 %v4177_v30  ;;  %v4116_v54 = vld [vmem:[#allocation12 + $0xd8] sm:$0xf] }
 0x17d   :  { %874 = vmatpush.bf16.msrb.mxu2 %v4009_v62  ;;  %v4117_v57 = vor.u32 %v5629_v55, %v4116_v54  ;;  %v5620_v62 = vld [vmem:[#allocation12 + $0xac] sm:$0xf0]  ;;  %v4020_v30 = vld [vmem:[#allocation12 + $0x18] sm:$0xf]  ;;  %v6454_v55 = vld [vmem:[%s6766_s9] sm:$0xff] }
 0x17e   :  { %v4077_v1 = vor.u32 %v5620_v62, %v4076_v60  ;;  %v4021_v35 = vor.u32 %v5605_v31, %v4020_v30  ;;  %v6461_v58 = vperm.slane %v6454_v55, 1  ;;  %v6476_v4 = vperm.slane %v6454_v55, 0 }
 0x17f   :  { %928 = vmatpush.bf16.msrb.mxu1 %v4117_v57 }
 0x180   :  { %886 = vmatpush.bf16.msrb.mxu3 %v4237_v2  ;;  %908 = vmatpush.bf16.msrb.mxu0 %v4145_v42  ;;  %v4081_v2 = vor.u32 %v5616_v63, %v4078_v0 }
 0x181   :  { %943 = vmatpush.bf16.msra.mxu2 %v4249_v10  ;;  %v4044_v10 = vld [vmem:[#allocation12 + $0x50] sm:$0xf] }
 0x182   :  { %v4045_v17 = vor.u32 %v5612_v13, %v4044_v10 }
 0x183   :  { %929 = vmatpush.bf16.msrb.mxu1 %v4085_v8 }
 0x184   :  { %887 = vmatpush.bf16.msrb.mxu3 %v4205_v15  ;;  %909 = vmatpush.bf16.msrb.mxu0 %v4113_v56  ;;  %v4046_v15 = vld [vmem:[#allocation12 + $0x70] sm:$0xf0] }
 0x185   :  { %944 = vmatpush.bf16.msra.mxu2 %v4217_v24  ;;  %v4049_v22 = vor.u32 %v5608_v14, %v4046_v15  ;;  %v4054_v24 = vld [vmem:[#allocation12 + $0x78] sm:$0xf0] }
 0x186   :  { %v4057_v16 = vor.u32 %v5609_v20, %v4054_v24  ;;  %v5692_v24 = vld [vmem:[#allocation14 + $0xec] sm:$0xf0] }
 0x187   :  { %930 = vmatpush.bf16.msrb.mxu1 %v4053_v23  ;;  %v4364_v23 = vld [vmem:[#allocation14 + $0xe0] sm:$0xf] }
 0x188   :  { %888 = vmatpush.bf16.msrb.mxu3 %v4173_v12  ;;  %910 = vmatpush.bf16.msrb.mxu0 %v4081_v2 }
 0x189   :  { %945 = vmatpush.bf16.msra.mxu2 %v4185_v34  ;;  %v4017_v34 = vor.u32 %v5600_v28, %v4014_v29  ;;  %v5724_v28 = vld [vmem:[#allocation14 + $0x1ec] sm:$0xf0]  ;;  %v4620_v29 = vld [vmem:[#allocation14 + $0x2e0] sm:$0xf] }
 0x18b   :  { %931 = vmatpush.bf16.msrb.mxu1 %v4021_v35  ;;  %v5756_v35 = vld [vmem:[#allocation14 + $0x2ec] sm:$0xf0] }
 0x18c   :  { %889 = vmatpush.bf16.msrb.mxu3 %v4141_v38  ;;  %911 = vmatpush.bf16.msrb.mxu0 %v4049_v22 }
 0x18d   :  { %946 = vmatpush.bf16.msra.mxu2 %v4153_v47 }
 0x190   :  { %890 = vmatpush.bf16.msrb.mxu3 %v4109_v52  ;;  %912 = vmatpush.bf16.msrb.mxu0 %v4017_v34 }
 0x191   :  { %947 = vmatpush.bf16.msra.mxu2 %v4121_v61  ;;  %v6468_v61 = vperm.slane %v6454_v55, 2 }
 0x194   :  { %891 = vmatpush.bf16.msrb.mxu3 %v4077_v1 }
 0x195   :  { %948 = vmatpush.bf16.msra.mxu2 %v4089_v11  ;;  %v6484_v11 = vperm.slane %v6454_v55, 3 }
 0x198   :  { %892 = vmatpush.bf16.msrb.mxu3 %v4045_v17 }
 0x199   :  { %949 = vmatpush.bf16.msra.mxu2 %v4057_v16  ;;  %v4492_v16 = vld [vmem:[#allocation14 + $0x1e0] sm:$0xf] }
 0x19a   :  { %v4493_v34 = vor.u32 %v5724_v28, %v4492_v16  ;;  %v4460_v16 = vld [vmem:[#allocation14 + $0x1a0] sm:$0xf]  ;;  %v5716_v28 = vld [vmem:[#allocation14 + $0x1ac] sm:$0xf0] }
 0x19c   :  { %893 = vmatpush.bf16.msrb.mxu3 %v4013_v33 }
 0x19d   :  { %950 = vmatpush.bf16.msra.mxu2 %v4025_v41 }
 0x1ea   :  { %v394_v48 = vpop.f32.mrf.mxu2 }
 0x1eb   :  { %v408_v6 = vmul.f32 %v6437_v46, %v394_v48 }
 0x1ed   :  { %v416_v27 = vadd.f32 %v6020_v7, %v408_v6 }
 0x1ef   :  { %v420_v38 = vmax.f32 %v416_v27, 0.0 }
 0x1f2   :  { %v396_v21 = vpop.f32.mrf.mxu2 }
 0x1f3   :  { %v409_v12 = vmul.f32 %v6437_v46, %v396_v21 }
 0x1f5   :  { %v417_v32 = vadd.f32 %v6020_v7, %v409_v12  ;;  %v4365_v12 = vor.u32 %v5692_v24, %v4364_v23  ;;  %v5684_v23 = vld [vmem:[#allocation14 + $0xac] sm:$0xf0] }
 0x1f7   :  { %v421_v39 = vmax.f32 %v417_v32, 0.0 }
 0x1f9   :  { %v424_v40 = vpack.c.bf16 %v421_v39, %v420_v38 }
 0x1fa   :  { %v399_v42 = vpop.f32.mrf.mxu2 }
 0x1fb   :  { %818 = vmatmul.bf16.vlgmr.msra.gmra.mxu3 %v424_v40  ;;  %837 = vmatmul.bf16.vlgmr.msra.gmra.mxu0 %v424_v40  ;;  %v410_v43 = vmul.f32 %v6437_v46, %v399_v42  ;;  %v4621_v42 = vor.u32 %v5756_v35, %v4620_v29 }
 0x1fc   :  { %856 = vmatmul.bf16.vlgmr.msra.gmra.mxu1 %v424_v40  ;;  %875 = vmatmul.bf16.vlgmr.msrb.gmra.mxu2 %v424_v40 }
 0x1fd   :  { %v418_v45 = vadd.f32 %v6020_v7, %v410_v43  ;;  %2829 = vmatpush.bf16.msra.mxu3 %v4365_v12  ;;  %2842 = vmatpush.bf16.msra.mxu0 %v4493_v34 }
 0x1fe   :  { %2855 = vmatpush.bf16.msra.mxu1 %v4621_v42 }
 0x1ff   :  { %v422_v49 = vmax.f32 %v418_v45, 0.0 }
 0x202   :  { %v401_v44 = vpop.f32.mrf.mxu2 }
 0x203   :  { %v411_v47 = vmul.f32 %v6437_v46, %v401_v44  ;;  %v6446_v46 = vld [vmem:[%s6765_s8] sm:$0xff] }
 0x204   :  { %v6449_v53 = vperm.slane %v6446_v46, 1  ;;  %v6457_v56 = vperm.slane %v6446_v46, 2  ;;  %v6464_v59 = vperm.slane %v6446_v46, 0  ;;  %v6471_v0 = vperm.slane %v6446_v46, 3 }
 0x205   :  { %v419_v48 = vadd.f32 %v6020_v7, %v411_v47  ;;  %v6488_v14 = vperm.slane %v6446_v46, 5  ;;  %v6492_v19 = vperm.slane %v6446_v46, 6  ;;  %v4749_v47 = vor.u32 %v5788_v37, %v4748_v36 }
 0x207   :  { %v423_v50 = vmax.f32 %v419_v48, 0.0  ;;  %v4348_v48 = vld [vmem:[#allocation14 + $0xc0] sm:$0xf]  ;;  %2868 = vmatpush.bf16.msrb.mxu2 %v4749_v47 }
 0x209   :  { %v425_v51 = vpack.c.bf16 %v423_v50, %v422_v49  ;;  %v5688_v49 = vld [vmem:[#allocation14 + $0xcc] sm:$0xf0] }
 0x20b   :  { %823 = vmatmul.bf16.gmra.mxu3 %v425_v51  ;;  %842 = vmatmul.bf16.gmra.mxu0 %v425_v51 }
 0x20c   :  { %861 = vmatmul.bf16.gmra.mxu1 %v425_v51  ;;  %880 = vmatmul.bf16.gmra.mxu2 %v425_v51 }
 0x21b   :  { %894 = vmatmul.bf16.vlgmr.msrb.gmra.mxu3 %v424_v40  ;;  %913 = vmatmul.bf16.vlgmr.msrb.gmra.mxu0 %v424_v40 }
 0x21c   :  { %932 = vmatmul.bf16.vlgmr.msrb.gmra.mxu1 %v424_v40  ;;  %951 = vmatmul.bf16.vlgmr.msra.gmra.mxu2 %v424_v40 }
 0x22b   :  { %899 = vmatmul.bf16.gmra.mxu3 %v425_v51  ;;  %918 = vmatmul.bf16.gmra.mxu0 %v425_v51 }
 0x22c   :  { %937 = vmatmul.bf16.gmra.mxu1 %v425_v51  ;;  %956 = vmatmul.bf16.gmra.mxu2 %v425_v51 }
 0x278   :  { %v838_v52 = vpop.f32.mrf.mxu0 }
 0x279   :  { %v857_v54 = vpop.f32.mrf.mxu1  ;;  %v981_v57 = vmul.f32 %v6449_v53, %v838_v52 }
 0x27a   :  { %v982_v60 = vmul.f32 %v6457_v56, %v857_v54  ;;  %v4349_v54 = vor.u32 %v5688_v49, %v4348_v48  ;;  %v4716_v49 = vld [vmem:[#allocation14 + $0x3a0] sm:$0xf] }
 0x27b   :  { %v1031_v2 = vadd.f32 %v6461_v58, %v981_v57  ;;  %v4476_v57 = vld [vmem:[#allocation14 + $0x1c0] sm:$0xf] }
 0x27c   :  { %v1032_v7 = vadd.f32 %v6468_v61, %v982_v60  ;;  %v5720_v60 = vld [vmem:[#allocation14 + $0x1cc] sm:$0xf0]  ;;  %2830 = vmatpush.bf16.msra.mxu3 %v4349_v54  ;;  %v4316_v54 = vld [vmem:[#allocation14 + $0x80] sm:$0xf] }
 0x27d   :  { %v1063_v15 = vmax.f32 %v1031_v2, 0.0  ;;  %v4477_v2 = vor.u32 %v5720_v60, %v4476_v57  ;;  %v5680_v57 = vld [vmem:[#allocation14 + $0x8c] sm:$0xf0] }
 0x27e   :  { %v819_v62 = vpop.f32.mrf.mxu3  ;;  %v1064_v20 = vmax.f32 %v1032_v7, 0.0 }
 0x27f   :  { %v876_v63 = vpop.f32.mrf.mxu2  ;;  %v980_v3 = vmul.f32 %v6464_v59, %v819_v62  ;;  %2843 = vmatpush.bf16.msra.mxu0 %v4477_v2  ;;  %v5712_v2 = vld [vmem:[#allocation14 + $0x18c] sm:$0xf0] }
 0x280   :  { %v840_v1 = vpop.f32.mrf.mxu0  ;;  %v983_v10 = vmul.f32 %v6471_v0, %v876_v63 }
 0x281   :  { %v989_v5 = vmul.f32 %v6449_v53, %v840_v1  ;;  %v859_v6 = vpop.f32.mrf.mxu1  ;;  %v1030_v17 = vadd.f32 %v6476_v4, %v980_v3  ;;  %v4604_v3 = vld [vmem:[#allocation14 + $0x2c0] sm:$0xf] }
 0x282   :  { %v990_v8 = vmul.f32 %v6457_v56, %v859_v6  ;;  %v1033_v30 = vadd.f32 %v6484_v11, %v983_v10  ;;  %v4732_v10 = vld [vmem:[#allocation14 + $0x3c0] sm:$0xf] }
 0x283   :  { %v1039_v9 = vadd.f32 %v6461_v58, %v989_v5  ;;  %v1062_v38 = vmax.f32 %v1030_v17, 0.0  ;;  %v5752_v5 = vld [vmem:[#allocation14 + $0x2cc] sm:$0xf0] }
 0x284   :  { %v1040_v13 = vadd.f32 %v6468_v61, %v990_v8  ;;  %v1065_v62 = vmax.f32 %v1033_v30, 0.0  ;;  %v6502_v8 = vperm.slane %v6454_v55, 5 }
 0x285   :  { %v1071_v18 = vmax.f32 %v1039_v9, 0.0  ;;  %v4605_v9 = vor.u32 %v5752_v5, %v4604_v3 }
 0x286   :  { %v1072_v21 = vmax.f32 %v1040_v13, 0.0  ;;  %v821_v22 = vpop.f32.mrf.mxu3  ;;  %v5784_v13 = vld [vmem:[#allocation14 + $0x3cc] sm:$0xf0] }
 0x287   :  { %v1101_v25 = vmax.f32 %v1063_v15, %v1071_v18  ;;  %v988_v26 = vmul.f32 %v6464_v59, %v821_v22  ;;  %v878_v27 = vpop.f32.mrf.mxu2  ;;  %v4332_v22 = vld [vmem:[#allocation14 + $0xa0] sm:$0xf]  ;;  %2856 = vmatpush.bf16.msra.mxu1 %v4605_v9 }
 0x288   :  { %v1108_v31 = vmax.f32 %v1064_v20, %v1072_v21  ;;  %v991_v32 = vmul.f32 %v6471_v0, %v878_v27  ;;  %v843_v33 = vpop.f32.mrf.mxu0  ;;  %v4733_v21 = vor.u32 %v5784_v13, %v4732_v10  ;;  %v6507_v27 = vperm.slane %v6454_v55, 6 }
 0x289   :  { %v1102_v39 = vrot.slane %v1101_v25, 4  ;;  %v1038_v40 = vadd.f32 %v6476_v4, %v988_v26  ;;  %v862_v41 = vpop.f32.mrf.mxu1  ;;  %v997_v45 = vmul.f32 %v6449_v53, %v843_v33  ;;  %v4333_v12 = vor.u32 %v5684_v23, %v4332_v22 }
 0x28a   :  { %v1109_v43 = vrot.slane %v1108_v31, 4  ;;  %v1041_v44 = vadd.f32 %v6484_v11, %v991_v32  ;;  %v998_v52 = vmul.f32 %v6457_v56, %v862_v41  ;;  %v6510_v32 = vperm.slane %v6446_v46, 4  ;;  %2869 = vmatpush.bf16.msrb.mxu2 %v4733_v21 }
 0x28b   :  { %v1103_v50 = vmax.f32 %v1101_v25, %v1102_v39  ;;  %v1070_v51 = vmax.f32 %v1038_v40, 0.0  ;;  %v1047_v18 = vadd.f32 %v6461_v58, %v997_v45  ;;  %v4461_v33 = vor.u32 %v5716_v28, %v4460_v16  ;;  %2831 = vmatpush.bf16.msra.mxu3 %v4333_v12 }
 0x28c   :  { %v1110_v63 = vmax.f32 %v1108_v31, %v1109_v43  ;;  %v1073_v1 = vmax.f32 %v1041_v44, 0.0  ;;  %v1048_v25 = vadd.f32 %v6468_v61, %v998_v52  ;;  %v4588_v43 = vld [vmem:[#allocation14 + $0x2a0] sm:$0xf]  ;;  %v5748_v44 = vld [vmem:[#allocation14 + $0x2ac] sm:$0xf0]  ;;  %v6524_v12 = vperm.slane %v6446_v46, 7 }
 0x28d   :  { %v1104_v6 = vrot.slane %v1103_v50, 2  ;;  %v1094_v7 = vmax.f32 %v1062_v38, %v1070_v51  ;;  %v1079_v40 = vmax.f32 %v1047_v18, 0.0  ;;  %2844 = vmatpush.bf16.msra.mxu0 %v4461_v33 }
 0x28e   :  { %v1111_v15 = vrot.slane %v1110_v63, 2  ;;  %v1115_v17 = vmax.f32 %v1065_v62, %v1073_v1  ;;  %v824_v20 = vpop.f32.mrf.mxu3  ;;  %v1080_v47 = vmax.f32 %v1048_v25, 0.0  ;;  %v4444_v1 = vld [vmem:[#allocation14 + $0x180] sm:$0xf] }
 0x28f   :  { %v1095_v24 = vrot.slane %v1094_v7, 4  ;;  %v881_v26 = vpop.f32.mrf.mxu2  ;;  %v1105_v29 = vmax.f32 %v1103_v50, %v1104_v6  ;;  %v996_v36 = vmul.f32 %v6464_v59, %v824_v20  ;;  %v5780_v50 = vld [vmem:[#allocation14 + $0x3ac] sm:$0xf0]  ;;  %v4445_v22 = vor.u32 %v5712_v2, %v4444_v1 }
 0x290   :  { %v1116_v30 = vrot.slane %v1115_v17, 4  ;;  %v845_v31 = vpop.f32.mrf.mxu0  ;;  %v1112_v34 = vmax.f32 %v1110_v63, %v1111_v15  ;;  %v999_v41 = vmul.f32 %v6471_v0, %v881_v26  ;;  %v4317_v15 = vor.u32 %v5680_v57, %v4316_v54 }
 0x291   :  { %v1096_v35 = vmax.f32 %v1094_v7, %v1095_v24  ;;  %v1005_v37 = vmul.f32 %v6449_v53, %v845_v31  ;;  %v864_v38 = vpop.f32.mrf.mxu1  ;;  %v1106_v51 = vrot.slane %v1105_v29, 1  ;;  %v1046_v62 = vadd.f32 %v6476_v4, %v996_v36  ;;  %2845 = vmatpush.bf16.msra.mxu0 %v4445_v22  ;;  %v5776_v22 = vld [vmem:[#allocation14 + $0x38c] sm:$0xf0] }
 0x292   :  { %v1117_v39 = vmax.f32 %v1115_v17, %v1116_v30  ;;  %v1006_v42 = vmul.f32 %v6457_v56, %v864_v38  ;;  %v1113_v60 = vrot.slane %v1112_v34, 1  ;;  %v4589_v56 = vor.u32 %v5748_v44, %v4588_v43  ;;  %2832 = vmatpush.bf16.msra.mxu3 %v4317_v15  ;;  %v4700_v15 = vld [vmem:[#allocation14 + $0x380] sm:$0xf] }
 0x293   :  { %v1097_v45 = vrot.slane %v1096_v35, 2  ;;  %v1055_v48 = vadd.f32 %v6461_v58, %v1005_v37  ;;  %v1049_v5 = vadd.f32 %v6484_v11, %v999_v41  ;;  %v4717_v7 = vor.u32 %v5780_v50, %v4716_v49 }
 0x294   :  { %v1118_v52 = vrot.slane %v1117_v39, 2  ;;  %v1056_v53 = vadd.f32 %v6468_v61, %v1006_v42  ;;  %2857 = vmatpush.bf16.msra.mxu1 %v4589_v56  ;;  %v1107_v23 = vmax.f32 %v1105_v29, %v1106_v51  ;;  %v1078_v16 = vmax.f32 %v1046_v62, 0.0 }
 0x295   :  { %v1087_v63 = vmax.f32 %v1055_v48, 0.0  ;;  %v1098_v9 = vmax.f32 %v1096_v35, %v1097_v45  ;;  %2870 = vmatpush.bf16.msrb.mxu2 %v4717_v7  ;;  %v1081_v31 = vmax.f32 %v1049_v5, 0.0 }
 0x296   :  { %v1119_v3 = vmax.f32 %v1117_v39, %v1118_v52  ;;  %v1088_v58 = vmax.f32 %v1056_v53, 0.0  ;;  %v826_v6 = vpop.f32.mrf.mxu3  ;;  %v1158_v44 = vrot.slane %v1107_v23, 7 }
 0x297   :  { %v1188_v10 = vmax.f32 %v1079_v40, %v1087_v63  ;;  %v1004_v61 = vmul.f32 %v6464_v59, %v826_v6  ;;  %v883_v13 = vpop.f32.mrf.mxu2  ;;  %v1099_v35 = vrot.slane %v1098_v9, 1  ;;  %v4572_v6 = vld [vmem:[#allocation14 + $0x280] sm:$0xf] }
 0x298   :  { %v1120_v17 = vrot.slane %v1119_v3, 1  ;;  %v1195_v18 = vmax.f32 %v1080_v47, %v1088_v58  ;;  %v1007_v20 = vmul.f32 %v6471_v0, %v883_v13  ;;  %v914_v21 = vpop.f32.mrf.mxu0  ;;  %v1114_v0 = vmax.f32 %v1112_v34, %v1113_v60  ;;  %v5744_v13 = vld [vmem:[#allocation14 + $0x28c] sm:$0xf0] }
 0x299   :  { %v1189_v24 = vrot.slane %v1188_v10, 4  ;;  %v1054_v25 = vadd.f32 %v6476_v4, %v1004_v61  ;;  %v933_v26 = vpop.f32.mrf.mxu1  ;;  %v985_v4 = vmul.f32 %v6488_v14, %v914_v21  ;;  %v6533_v34 = vperm.slane %v6454_v55, 7 }
 0x29a   :  { %v1121_v59 = vmax.f32 %v1119_v3, %v1120_v17  ;;  %v1196_v28 = vrot.slane %v1195_v18, 4  ;;  %v1057_v30 = vadd.f32 %v6484_v11, %v1007_v20  ;;  %v986_v40 = vmul.f32 %v6492_v19, %v933_v26 }
 0x29b   :  { %v1190_v33 = vmax.f32 %v1188_v10, %v1189_v24  ;;  %v1086_v29 = vmax.f32 %v1054_v25, 0.0  ;;  %v6530_v11 = vperm.slane %v6454_v55, 4  ;;  %v1159_v45 = vrot.slane %v1114_v0, 6 }
 0x29c   :  { %v1197_v36 = vmax.f32 %v1195_v18, %v1196_v28  ;;  %v1089_v37 = vmax.f32 %v1057_v30, 0.0  ;;  %v1160_v38 = vrot.slane %v1121_v59, 5  ;;  %v1100_v50 = vmax.f32 %v1098_v9, %v1099_v35 }
 0x29d   :  { %v1191_v46 = vrot.slane %v1190_v33, 2  ;;  %v1181_v39 = vmax.f32 %v1078_v16, %v1086_v29  ;;  %v1035_v52 = vadd.f32 %v6502_v8, %v985_v4  ;;  %v1036_v62 = vadd.f32 %v6507_v27, %v986_v40 }
 0x29e   :  { %v1198_v41 = vrot.slane %v1197_v36, 2  ;;  %v1202_v42 = vmax.f32 %v1081_v31, %v1089_v37  ;;  %v895_v43 = vpop.f32.mrf.mxu3  ;;  %v1168_v57 = vsel %vm1167_vm3, %v1159_v45, %v1160_v38  ;;  %v1166_v7 = vsel %vm1165_vm4, %v1100_v50, %v1158_v44  ;;  %v4300_v45 = vld [vmem:[#allocation14 + $0x60] sm:$0xf] }
 0x29f   :  { %v1192_v47 = vmax.f32 %v1190_v33, %v1191_v46  ;;  %v1182_v48 = vrot.slane %v1181_v39, 4  ;;  %v952_v49 = vpop.f32.mrf.mxu2  ;;  %v984_v53 = vmul.f32 %v6510_v32, %v895_v43  ;;  %v1067_v9 = vmax.f32 %v1035_v52, 0.0 }
 0x2a0   :  { %v1203_v51 = vrot.slane %v1202_v42, 4  ;;  %v916_v54 = vpop.f32.mrf.mxu0  ;;  %v6540_v56 = vmax.f32 %v1197_v36, %v1198_v41  ;;  %v987_v2 = vmul.f32 %v6524_v12, %v952_v49  ;;  %v6549_v17 = vsel %vm1169_vm5, %v1166_v7, %v1168_v57 }
 0x2a1   :  { %v1183_v60 = vmax.f32 %v1181_v39, %v1182_v48  ;;  %v993_v55 = vmul.f32 %v6488_v14, %v916_v54  ;;  %v935_v63 = vpop.f32.mrf.mxu1  ;;  %v1193_v5 = vrot.slane %v1192_v47, 1  ;;  %v1034_v10 = vadd.f32 %v6530_v11, %v984_v53 }
 0x2a2   :  { %v1204_v1 = vmax.f32 %v1202_v42, %v1203_v51  ;;  %v994_v3 = vmul.f32 %v6492_v19, %v935_v63  ;;  %v1068_v20 = vmax.f32 %v1036_v62, 0.0  ;;  %v1200_v23 = vrot.slane %v6540_v56, 1 }
 0x2a3   :  { %v1043_v58 = vadd.f32 %v6502_v8, %v993_v55  ;;  %v1184_v18 = vrot.slane %v1183_v60, 2  ;;  %v1037_v25 = vadd.f32 %v6533_v34, %v987_v2  ;;  %v6553_v16 = vmax.f32 %v1192_v47, %v1193_v5  ;;  %v5676_v47 = vld [vmem:[#allocation14 + $0x6c] sm:$0xf0] }
 0x2a4   :  { %v1044_v61 = vadd.f32 %v6507_v27, %v994_v3  ;;  %v1205_v24 = vrot.slane %v1204_v1, 2  ;;  %v4573_v31 = vor.u32 %v5744_v13, %v4572_v6  ;;  %v1066_v33 = vmax.f32 %v1034_v10, 0.0  ;;  %v5708_v2 = vld [vmem:[#allocation14 + $0x16c] sm:$0xf0] }
 0x2a5   :  { %v1075_v21 = vmax.f32 %v1043_v58, 0.0  ;;  %v4701_v37 = vor.u32 %v5776_v22, %v4700_v15  ;;  %v6557_v4 = vmax.f32 %v1183_v60, %v1184_v18  ;;  %v1069_v48 = vmax.f32 %v1037_v25, 0.0  ;;  %v4556_v25 = vld [vmem:[#allocation14 + $0x260] sm:$0xf] }
 0x2a6   :  { %v1076_v26 = vmax.f32 %v1044_v61, 0.0  ;;  %v897_v59 = vpop.f32.mrf.mxu3  ;;  %2858 = vmatpush.bf16.msra.mxu1 %v4573_v31  ;;  %v6561_v41 = vmax.f32 %v1204_v1, %v1205_v24  ;;  %v1245_v52 = vrot.slane %v6553_v16, 7  ;;  %v4301_v63 = vor.u32 %v5676_v47, %v4300_v45  ;;  %v4428_v1 = vld [vmem:[#allocation14 + $0x160] sm:$0xf]  ;;  %v5704_v45 = vld [vmem:[#allocation14 + $0x14c] sm:$0xf0] }
 0x2a7   :  { %v1129_v28 = vmax.f32 %v1067_v9, %v1075_v21  ;;  %v992_v30 = vmul.f32 %v6510_v32, %v897_v59  ;;  %v954_v0 = vpop.f32.mrf.mxu2  ;;  %2871 = vmatpush.bf16.msrb.mxu2 %v4701_v37  ;;  %v1186_v60 = vrot.slane %v6557_v4, 1  ;;  %v4429_v24 = vor.u32 %v5708_v2, %v4428_v1  ;;  %v4796_v16 = vld [vmem:[#allocation14 + $0x440] sm:$0xf] }
 0x2a8   :  { %v1136_v29 = vmax.f32 %v1068_v20, %v1076_v26  ;;  %v995_v35 = vmul.f32 %v6524_v12, %v954_v0  ;;  %v919_v36 = vpop.f32.mrf.mxu0  ;;  %v1207_v3 = vrot.slane %v6561_v41, 1  ;;  %2833 = vmatpush.bf16.msra.mxu3 %v4301_v63  ;;  %v5740_v26 = vld [vmem:[#allocation14 + $0x26c] sm:$0xf0]  ;;  %v4668_v63 = vld [vmem:[#allocation14 + $0x340] sm:$0xf] }
 0x2a9   :  { %v1130_v38 = vrot.slane %v1129_v28, 4  ;;  %v1042_v46 = vadd.f32 %v6530_v11, %v992_v30  ;;  %v1001_v39 = vmul.f32 %v6488_v14, %v919_v36  ;;  %v938_v40 = vpop.f32.mrf.mxu1  ;;  %2846 = vmatpush.bf16.msra.mxu0 %v4429_v24 }
 0x2aa   :  { %v1137_v42 = vrot.slane %v1136_v29, 4  ;;  %v1045_v43 = vadd.f32 %v6533_v34, %v995_v35  ;;  %v1002_v44 = vmul.f32 %v6492_v19, %v938_v40 }
 0x2ab   :  { %v1131_v49 = vmax.f32 %v1129_v28, %v1130_v38  ;;  %v1074_v50 = vmax.f32 %v1042_v46, 0.0  ;;  %v6566_v51 = vadd.f32 %v6502_v8, %v1001_v39  ;;  %v4284_v46 = vld [vmem:[#allocation14 + $0x40] sm:$0xf]  ;;  %v5672_v39 = vld [vmem:[#allocation14 + $0x4c] sm:$0xf0] }
 0x2ac   :  { %v1138_v53 = vmax.f32 %v1136_v29, %v1137_v42  ;;  %v1077_v54 = vmax.f32 %v1045_v43, 0.0  ;;  %v6570_v57 = vadd.f32 %v6507_v27, %v1002_v44  ;;  %v5772_v29 = vld [vmem:[#allocation14 + $0x36c] sm:$0xf0]  ;;  %v4412_v44 = vld [vmem:[#allocation14 + $0x140] sm:$0xf] }
 0x2ad   :  { %v1132_v62 = vrot.slane %v1131_v49, 2  ;;  %v1122_v55 = vmax.f32 %v1066_v33, %v1074_v50  ;;  %v1083_v6 = vmax.f32 %v6566_v51, 0.0  ;;  %v4684_v33 = vld [vmem:[#allocation14 + $0x360] sm:$0xf]  ;;  %v5736_v51 = vld [vmem:[#allocation14 + $0x24c] sm:$0xf0] }
 0x2ae   :  { %v1139_v5 = vrot.slane %v1138_v53, 2  ;;  %v1143_v58 = vmax.f32 %v1069_v48, %v1077_v54  ;;  %v900_v7 = vpop.f32.mrf.mxu3  ;;  %v1084_v61 = vmax.f32 %v6570_v57, 0.0  ;;  %v4540_v50 = vld [vmem:[#allocation14 + $0x240] sm:$0xf] }
 0x2af   :  { %v1133_v9 = vmax.f32 %v1131_v49, %v1132_v62  ;;  %v1123_v10 = vrot.slane %v1122_v55, 4  ;;  %v1000_v13 = vmul.f32 %v6510_v32, %v900_v7  ;;  %v957_v15 = vpop.f32.mrf.mxu2  ;;  %v4685_v7 = vor.u32 %v5772_v29, %v4684_v33  ;;  %v4652_v29 = vld [vmem:[#allocation14 + $0x320] sm:$0xf] }
 0x2b0   :  { %v1140_v18 = vmax.f32 %v1138_v53, %v1139_v5  ;;  %v1144_v20 = vrot.slane %v1143_v58, 4  ;;  %v1003_v21 = vmul.f32 %v6524_v12, %v957_v15  ;;  %v921_v22 = vpop.f32.mrf.mxu0 }
 0x2b1   :  { %v1134_v59 = vrot.slane %v1133_v9, 1  ;;  %v1124_v28 = vmax.f32 %v1122_v55, %v1123_v10  ;;  %v6579_v30 = vadd.f32 %v6530_v11, %v1000_v13  ;;  %v1009_v0 = vmul.f32 %v6488_v14, %v921_v22  ;;  %v940_v31 = vpop.f32.mrf.mxu1  ;;  %v5668_v10 = vld [vmem:[#allocation14 + $0x2c] sm:$0xf0]  ;;  %2872 = vmatpush.bf16.msrb.mxu2 %v4685_v7 }
 0x2b2   :  { %v1141_v35 = vrot.slane %v1140_v18, 1  ;;  %v1145_v36 = vmax.f32 %v1143_v58, %v1144_v20  ;;  %v6583_v37 = vadd.f32 %v6533_v34, %v1003_v21  ;;  %v1010_v38 = vmul.f32 %v6492_v19, %v940_v31  ;;  %v4396_v21 = vld [vmem:[#allocation14 + $0x120] sm:$0xf]  ;;  %v5700_v22 = vld [vmem:[#allocation14 + $0x12c] sm:$0xf0] }
 0x2b3   :  { %v6586_v40 = vmax.f32 %v1133_v9, %v1134_v59  ;;  %v1125_v42 = vrot.slane %v1124_v28, 2  ;;  %v1082_v14 = vmax.f32 %v6579_v30, 0.0  ;;  %v1059_v43 = vadd.f32 %v6502_v8, %v1009_v0  ;;  %v5768_v8 = vld [vmem:[#allocation14 + $0x34c] sm:$0xf0]  ;;  %v4268_v9 = vld [vmem:[#allocation14 + $0x20] sm:$0xf] }
 0x2b4   :  { %v6590_v47 = vmax.f32 %v1140_v18, %v1141_v35  ;;  %v1146_v48 = vrot.slane %v1145_v36, 2  ;;  %v1085_v49 = vmax.f32 %v6583_v37, 0.0  ;;  %v1060_v19 = vadd.f32 %v6507_v27, %v1010_v38  ;;  %v5732_v0 = vld [vmem:[#allocation14 + $0x22c] sm:$0xf0] }
 0x2b5   :  { %v1162_v53 = vrot.slane %v6586_v40, 3  ;;  %v1126_v54 = vmax.f32 %v1124_v28, %v1125_v42  ;;  %v1091_v62 = vmax.f32 %v1059_v43, 0.0  ;;  %v4557_v55 = vor.u32 %v5740_v26, %v4556_v25  ;;  %v4524_v28 = vld [vmem:[#allocation14 + $0x220] sm:$0xf]  ;;  %v5764_v35 = vld [vmem:[#allocation14 + $0x32c] sm:$0xf0] }
 0x2b6   :  { %v1163_v1 = vrot.slane %v6590_v47, 2  ;;  %v1147_v2 = vmax.f32 %v1145_v36, %v1146_v48  ;;  %v1092_v5 = vmax.f32 %v1060_v19, 0.0  ;;  %v902_v58 = vpop.f32.mrf.mxu3  ;;  %v4285_v20 = vor.u32 %v5672_v39, %v4284_v46 }
 0x2b7   :  { %v1127_v13 = vrot.slane %v1126_v54, 1  ;;  %v1216_v27 = vmax.f32 %v1083_v6, %v1091_v62  ;;  %v1008_v15 = vmul.f32 %v6510_v32, %v902_v58  ;;  %v959_v18 = vpop.f32.mrf.mxu2  ;;  %2859 = vmatpush.bf16.msra.mxu1 %v4557_v55  ;;  %v4413_v59 = vor.u32 %v5704_v45, %v4412_v44  ;;  %v4380_v44 = vld [vmem:[#allocation14 + $0x100] sm:$0xf]  ;;  %v5696_v45 = vld [vmem:[#allocation14 + $0x10c] sm:$0xf0] }
 0x2b8   :  { %v1148_v24 = vrot.slane %v1147_v2, 1  ;;  %v1223_v25 = vmax.f32 %v1084_v61, %v1092_v5  ;;  %v1011_v26 = vmul.f32 %v6524_v12, %v959_v18  ;;  %2834 = vmatpush.bf16.msra.mxu3 %v4285_v20  ;;  %v4541_v32 = vor.u32 %v5736_v51, %v4540_v50  ;;  %v4252_v61 = vld [vmem:[#allocation14] sm:$0xf]  ;;  %v5664_v12 = vld [vmem:[#allocation14 + $0xc] sm:$0xf0] }
 0x2b9   :  { %v1128_v31 = vmax.f32 %v1126_v54, %v1127_v13  ;;  %v1217_v33 = vrot.slane %v1216_v27, 4  ;;  %v1058_v6 = vadd.f32 %v6530_v11, %v1008_v15  ;;  %2847 = vmatpush.bf16.msra.mxu0 %v4413_v59  ;;  %v4669_v57 = vor.u32 %v5768_v8, %v4668_v63  ;;  %v4508_v50 = vld [vmem:[#allocation14 + $0x200] sm:$0xf]  ;;  %v5728_v51 = vld [vmem:[#allocation14 + $0x20c] sm:$0xf0] }
 0x2ba   :  { %v1149_v36 = vmax.f32 %v1147_v2, %v1148_v24  ;;  %v1224_v38 = vrot.slane %v1223_v25, 4  ;;  %v1061_v46 = vadd.f32 %v6533_v34, %v1011_v26  ;;  %v4269_v43 = vor.u32 %v5668_v10, %v4268_v9  ;;  %v4636_v54 = vld [vmem:[#allocation14 + $0x300] sm:$0xf]  ;;  %v5760_v34 = vld [vmem:[#allocation14 + $0x30c] sm:$0xf0] }
 0x2bb   :  { %v1161_v39 = vrot.slane %v1128_v31, 4  ;;  %v1218_v40 = vmax.f32 %v1216_v27, %v1217_v33  ;;  %v1090_v42 = vmax.f32 %v1058_v6, 0.0  ;;  %2860 = vmatpush.bf16.msra.mxu1 %v4541_v32  ;;  %2873 = vmatpush.bf16.msrb.mxu2 %v4669_v57  ;;  %v4397_v19 = vor.u32 %v5700_v22, %v4396_v21  ;;  %v4876_v2 = vld [vmem:[#allocation14 + $0x4e0] sm:$0xf]  ;;  %v5820_v5 = vld [vmem:[#allocation14 + $0x4ec] sm:$0xf0] }
 0x2bc   :  { %v1164_v11 = vrot.slane %v1149_v36, 1  ;;  %v1225_v47 = vmax.f32 %v1223_v25, %v1224_v38  ;;  %v1093_v48 = vmax.f32 %v1061_v46, 0.0  ;;  %2835 = vmatpush.bf16.msra.mxu3 %v4269_v43  ;;  %v4525_v8 = vor.u32 %v5732_v0, %v4524_v28  ;;  %v5004_v58 = vld [vmem:[#allocation14 + $0x5e0] sm:$0xf]  ;;  %v5852_v27 = vld [vmem:[#allocation14 + $0x5ec] sm:$0xf0] }
 0x2bd   :  { %v1172_v62 = vsel %vm1171_vm6, %v1161_v39, %v1162_v53  ;;  %v1219_v55 = vrot.slane %v1218_v40, 2  ;;  %v1209_v63 = vmax.f32 %v1082_v14, %v1090_v42  ;;  %2848 = vmatpush.bf16.msra.mxu0 %v4397_v19  ;;  %v4653_v13 = vor.u32 %v5764_v35, %v4652_v29  ;;  %v5132_v15 = vld [vmem:[#allocation14 + $0x6e0] sm:$0xf]  ;;  %v5884_v20 = vld [vmem:[#allocation14 + $0x6ec] sm:$0xf0] }
 0x2be   :  { %v1174_v7 = vsel %vm1173_vm7, %v1163_v1, %v1164_v11  ;;  %v1226_v9 = vrot.slane %v1225_v47, 2  ;;  %v1230_v10 = vmax.f32 %v1085_v49, %v1093_v48  ;;  %v4253_v14 = vor.u32 %v5664_v12, %v4252_v61  ;;  %v5260_v21 = vld [vmem:[#allocation14 + $0x7e0] sm:$0xf]  ;;  %v5916_v49 = vld [vmem:[#allocation14 + $0x7ec] sm:$0xf0] }
 0x2bf   :  { %v1176_v53 = vsel %vm1175_vm8, %v1172_v62, %v1174_v7  ;;  %v1220_v18 = vmax.f32 %v1218_v40, %v1219_v55  ;;  %v1210_v30 = vrot.slane %v1209_v63, 4  ;;  %2861 = vmatpush.bf16.msra.mxu1 %v4525_v8  ;;  %2874 = vmatpush.bf16.msrb.mxu2 %v4653_v13  ;;  %v4381_v37 = vor.u32 %v5696_v45, %v4380_v44  ;;  %v4860_v25 = vld [vmem:[#allocation14 + $0x4c0] sm:$0xf]  ;;  %v5816_v0 = vld [vmem:[#allocation14 + $0x4cc] sm:$0xf0] }
 0x2c0   :  { %v1178_v22 = vsel %vm1177_vm9, %v6549_v17, %v1176_v53  ;;  %v1227_v1 = vmax.f32 %v1225_v47, %v1226_v9  ;;  %v1231_v24 = vrot.slane %v1230_v10, 4  ;;  %2836 = vmatpush.bf16.msra.mxu3 %v4253_v14  ;;  %v4509_v59 = vor.u32 %v5728_v51, %v4508_v50  ;;  %v4988_v31 = vld [vmem:[#allocation14 + $0x5c0] sm:$0xf]  ;;  %v5848_v29 = vld [vmem:[#allocation14 + $0x5cc] sm:$0xf0] }
 0x2c1   :  { %1180 = vst [vmem:[#allocation2] ss:$2 sm:$0xff] %v1178_v22  ;;  %v1211_v26 = vmax.f32 %v1209_v63, %v1210_v30  ;;  %v4637_v28 = vor.u32 %v5760_v34, %v4636_v54  ;;  %v6614_v33 = vmax.f32 %v6540_v56, %v1200_v23  ;;  %2849 = vmatpush.bf16.msra.mxu0 %v4381_v37  ;;  %v5116_v35 = vld [vmem:[#allocation14 + $0x6c0] sm:$0xf]  ;;  %v5880_v36 = vld [vmem:[#allocation14 + $0x6cc] sm:$0xf0] }
 0x2c2   :  { %v1232_v6 = vmax.f32 %v1230_v10, %v1231_v24  ;;  %v4877_v17 = vor.u32 %v5820_v5, %v4876_v2  ;;  %v5005_v32 = vor.u32 %v5852_v27, %v5004_v58  ;;  %v1221_v38 = vrot.slane %v1220_v18, 1  ;;  %v5244_v12 = vld [vmem:[#allocation14 + $0x7c0] sm:$0xf]  ;;  %v5912_v39 = vld [vmem:[#allocation14 + $0x7cc] sm:$0xf0] }
 0x2c3   :  { %v1212_v46 = vrot.slane %v1211_v26, 2  ;;  %2862 = vmatpush.bf16.msra.mxu1 %v4509_v59  ;;  %v5133_v57 = vor.u32 %v5884_v20, %v5132_v15  ;;  %v5261_v61 = vor.u32 %v5916_v49, %v5260_v21  ;;  %v1208_v40 = vmax.f32 %v6561_v41, %v1207_v3  ;;  %2875 = vmatpush.bf16.msrb.mxu2 %v4637_v28  ;;  %v4844_v11 = vld [vmem:[#allocation14 + $0x4a0] sm:$0xf]  ;;  %v5812_v47 = vld [vmem:[#allocation14 + $0x4ac] sm:$0xf0] }
 0x2c4   :  { %v1228_v56 = vrot.slane %v1227_v1, 1  ;;  %v1233_v23 = vrot.slane %v1232_v6, 2  ;;  %2881 = vmatpush.bf16.msrb.mxu3 %v4877_v17  ;;  %v4861_v42 = vor.u32 %v5816_v0, %v4860_v25  ;;  %v4989_v44 = vor.u32 %v5848_v29, %v4988_v31  ;;  %v4972_v48 = vld [vmem:[#allocation14 + $0x5a0] sm:$0xf]  ;;  %v5844_v51 = vld [vmem:[#allocation14 + $0x5ac] sm:$0xf0] }
 0x2c5   :  { %v1213_v43 = vmax.f32 %v1211_v26, %v1212_v46  ;;  %2894 = vmatpush.bf16.msrb.mxu0 %v5005_v32  ;;  %v5117_v45 = vor.u32 %v5880_v36, %v5116_v35  ;;  %v5245_v50 = vor.u32 %v5912_v39, %v5244_v12  ;;  %v5100_v54 = vld [vmem:[#allocation14 + $0x6a0] sm:$0xf]  ;;  %v5876_v34 = vld [vmem:[#allocation14 + $0x6ac] sm:$0xf0]  ;;  %v1246_v41 = vrot.slane %v6614_v33, 6 }
 0x2c6   :  { %v1234_v19 = vmax.f32 %v1232_v6, %v1233_v23  ;;  %v1222_v3 = vmax.f32 %v1220_v18, %v1221_v38  ;;  %v5228_v55 = vld [vmem:[#allocation14 + $0x7a0] sm:$0xf]  ;;  %v5908_v63 = vld [vmem:[#allocation14 + $0x7ac] sm:$0xf0]  ;;  %v1247_v8 = vrot.slane %v1208_v40, 5  ;;  %v1229_v2 = vmax.f32 %v1227_v1, %v1228_v56 }
 0x2c7   :  { %2907 = vmatpush.bf16.msrb.mxu1 %v5133_v57  ;;  %2920 = vmatpush.bf16.msra.mxu2 %v5261_v61  ;;  %v1214_v62 = vrot.slane %v1213_v43, 1  ;;  %v4845_v58 = vor.u32 %v5812_v47, %v4844_v11  ;;  %v4973_v9 = vor.u32 %v5844_v51, %v4972_v48  ;;  %v5101_v10 = vor.u32 %v5876_v34, %v5100_v54  ;;  %v4828_v13 = vld [vmem:[#allocation14 + $0x480] sm:$0xf]  ;;  %v5808_v27 = vld [vmem:[#allocation14 + $0x48c] sm:$0xf0] }
 0x2c8   :  { %v1235_v5 = vrot.slane %v1234_v19, 1  ;;  %2882 = vmatpush.bf16.msrb.mxu3 %v4861_v42  ;;  %v4956_v15 = vld [vmem:[#allocation14 + $0x580] sm:$0xf]  ;;  %v1187_v53 = vmax.f32 %v6557_v4, %v1186_v60  ;;  %v5229_v30 = vor.u32 %v5908_v63, %v5228_v55  ;;  %v5840_v14 = vld [vmem:[#allocation14 + $0x58c] sm:$0xf0]  ;;  %v1249_v22 = vrot.slane %v1222_v3, 3 }
 0x2c9   :  { %v1215_v7 = vmax.f32 %v1213_v43, %v1214_v62  ;;  %2895 = vmatpush.bf16.msrb.mxu0 %v4989_v44  ;;  %v5084_v20 = vld [vmem:[#allocation14 + $0x680] sm:$0xf]  ;;  %v5872_v21 = vld [vmem:[#allocation14 + $0x68c] sm:$0xf0]  ;;  %v1253_v49 = vsel %vm1167_vm3, %v1246_v41, %v1247_v8  ;;  %v1250_v25 = vrot.slane %v1229_v2, 2  ;;  %v4829_v59 = vor.u32 %v5808_v27, %v4828_v13 }
 0x2ca   :  { %v1236_v18 = vmax.f32 %v1234_v19, %v1235_v5  ;;  %v5212_v24 = vld [vmem:[#allocation14 + $0x780] sm:$0xf]  ;;  %v5904_v37 = vld [vmem:[#allocation14 + $0x78c] sm:$0xf0]  ;;  %v4957_v4 = vor.u32 %v5840_v14, %v4956_v15  ;;  %v5085_v60 = vor.u32 %v5872_v21, %v5084_v20  ;;  %v1252_v6 = vsel %vm1165_vm4, %v1187_v53, %v1245_v52 }
 0x2cb   :  { %2908 = vmatpush.bf16.msrb.mxu1 %v5117_v45  ;;  %2921 = vmatpush.bf16.msra.mxu2 %v5245_v50  ;;  %v1248_v1 = vrot.slane %v1215_v7, 4  ;;  %v4812_v0 = vld [vmem:[#allocation14 + $0x460] sm:$0xf]  ;;  %v5804_v31 = vld [vmem:[#allocation14 + $0x46c] sm:$0xf0]  ;;  %v5213_v32 = vor.u32 %v5904_v37, %v5212_v24  ;;  %v1254_v38 = vsel %vm1169_vm5, %v1252_v6, %v1253_v49 }
 0x2cc   :  { %v1251_v26 = vrot.slane %v1236_v18, 1  ;;  %2883 = vmatpush.bf16.msrb.mxu3 %v4845_v58  ;;  %v4940_v33 = vld [vmem:[#allocation14 + $0x560] sm:$0xf]  ;;  %v5836_v29 = vld [vmem:[#allocation14 + $0x56c] sm:$0xf0]  ;;  %v4813_v39 = vor.u32 %v5804_v31, %v4812_v0 }
 0x2cd   :  { %v1255_v28 = vsel %vm1171_vm6, %v1248_v1, %v1249_v22  ;;  %2896 = vmatpush.bf16.msrb.mxu0 %v4973_v9  ;;  %v5068_v35 = vld [vmem:[#allocation14 + $0x660] sm:$0xf]  ;;  %v5868_v36 = vld [vmem:[#allocation14 + $0x66c] sm:$0xf0]  ;;  %v4941_v52 = vor.u32 %v5836_v29, %v4940_v33  ;;  %v5690_v24 = vld [vmem:[#allocation14 + $0xe4] sm:$0xf] }
 0x2ce   :  { %v1256_v17 = vsel %vm1173_vm7, %v1250_v25, %v1251_v26  ;;  %v5196_v57 = vld [vmem:[#allocation14 + $0x760] sm:$0xf]  ;;  %v5900_v61 = vld [vmem:[#allocation14 + $0x76c] sm:$0xf0]  ;;  %v5069_v40 = vor.u32 %v5868_v36, %v5068_v35  ;;  %v4366_v37 = vld [vmem:[#allocation14 + $0xf0] sm:$0xf0] }
 0x2cf   :  { %2909 = vmatpush.bf16.msrb.mxu1 %v5101_v10  ;;  %2922 = vmatpush.bf16.msra.mxu2 %v5229_v30  ;;  %v1257_v46 = vsel %vm1175_vm8, %v1255_v28, %v1256_v17  ;;  %v5800_v56 = vld [vmem:[#allocation14 + $0x44c] sm:$0xf0]  ;;  %v4924_v23 = vld [vmem:[#allocation14 + $0x540] sm:$0xf]  ;;  %v5197_v42 = vor.u32 %v5900_v61, %v5196_v57  ;;  %v5722_v25 = vld [vmem:[#allocation14 + $0x1e4] sm:$0xf]  ;;  %v4369_v33 = vor.u32 %v5690_v24, %v4366_v37 }
 0x2d0   :  { %v1258_v12 = vsel %vm1177_vm9, %v1254_v38, %v1257_v46  ;;  %2884 = vmatpush.bf16.msrb.mxu3 %v4829_v59  ;;  %v5832_v43 = vld [vmem:[#allocation14 + $0x54c] sm:$0xf0]  ;;  %v5052_v44 = vld [vmem:[#allocation14 + $0x640] sm:$0xf]  ;;  %v4797_v48 = vor.u32 %v5800_v56, %v4796_v16  ;;  %v4494_v26 = vld [vmem:[#allocation14 + $0x1f0] sm:$0xf0] }
 0x2d1   :  { %1261 = vst [vmem:[#allocation2 + $0x1] ss:$2 sm:$0xff] %v1258_v12  ;;  %2897 = vmatpush.bf16.msrb.mxu0 %v4957_v4  ;;  %v5864_v45 = vld [vmem:[#allocation14 + $0x64c] sm:$0xf0]  ;;  %v5180_v11 = vld [vmem:[#allocation14 + $0x740] sm:$0xf]  ;;  %v4925_v19 = vor.u32 %v5832_v43, %v4924_v23  ;;  %v4497_v38 = vor.u32 %v5722_v25, %v4494_v26 }
 0x2d2   :  { %v5896_v47 = vld [vmem:[#allocation14 + $0x74c] sm:$0xf0]  ;;  %v5053_v50 = vor.u32 %v5864_v45, %v5052_v44  ;;  %v4780_v51 = vld [vmem:[#allocation14 + $0x420] sm:$0xf]  ;;  %v5754_v59 = vld [vmem:[#allocation14 + $0x2e4] sm:$0xf] }
 0x2d3   :  { %2910 = vmatpush.bf16.msrb.mxu1 %v5085_v60  ;;  %2923 = vmatpush.bf16.msra.mxu2 %v5213_v32  ;;  %v5796_v54 = vld [vmem:[#allocation14 + $0x42c] sm:$0xf0]  ;;  %v4908_v34 = vld [vmem:[#allocation14 + $0x520] sm:$0xf]  ;;  %v5181_v41 = vor.u32 %v5896_v47, %v5180_v11  ;;  %v4622_v28 = vld [vmem:[#allocation14 + $0x2f0] sm:$0xf0] }
 0x2d4   :  { %2885 = vmatpush.bf16.msrb.mxu3 %v4813_v39  ;;  %v5828_v3 = vld [vmem:[#allocation14 + $0x52c] sm:$0xf0]  ;;  %v5036_v62 = vld [vmem:[#allocation14 + $0x620] sm:$0xf]  ;;  %v4781_v5 = vor.u32 %v5796_v54, %v4780_v51  ;;  %v5786_v4 = vld [vmem:[#allocation14 + $0x3e4] sm:$0xf]  ;;  %v4625_v61 = vor.u32 %v5754_v59, %v4622_v28 }
 0x2d5   :  { %2898 = vmatpush.bf16.msrb.mxu0 %v4941_v52  ;;  %v5860_v55 = vld [vmem:[#allocation14 + $0x62c] sm:$0xf0]  ;;  %v5164_v63 = vld [vmem:[#allocation14 + $0x720] sm:$0xf]  ;;  %v4909_v10 = vor.u32 %v5828_v3, %v4908_v34  ;;  %v4750_v60 = vld [vmem:[#allocation14 + $0x3f0] sm:$0xf0] }
 0x2d6   :  { %v5892_v8 = vld [vmem:[#allocation14 + $0x72c] sm:$0xf0]  ;;  %v4764_v2 = vld [vmem:[#allocation14 + $0x400] sm:$0xf]  ;;  %v5037_v13 = vor.u32 %v5860_v55, %v5036_v62  ;;  %v5686_v6 = vld [vmem:[#allocation14 + $0xc4] sm:$0xf]  ;;  %v4753_v12 = vor.u32 %v5786_v4, %v4750_v60 }
 0x2d7   :  { %2911 = vmatpush.bf16.msrb.mxu1 %v5069_v40  ;;  %2924 = vmatpush.bf16.msra.mxu2 %v5197_v42  ;;  %v5792_v58 = vld [vmem:[#allocation14 + $0x40c] sm:$0xf0]  ;;  %v4892_v27 = vld [vmem:[#allocation14 + $0x500] sm:$0xf]  ;;  %v5165_v53 = vor.u32 %v5892_v8, %v5164_v63  ;;  %v4350_v17 = vld [vmem:[#allocation14 + $0xd0] sm:$0xf0] }
 0x2d8   :  { %2886 = vmatpush.bf16.msrb.mxu3 %v4797_v48  ;;  %v1262_v7 = vld [vmem:[#allocation2] sm:$0xff]  ;;  %v1263_v9 = vld [vmem:[#allocation2 + $0x8] sm:$0xff]  ;;  %v5020_v18 = vld [vmem:[#allocation14 + $0x600] sm:$0xf]  ;;  %v4765_v21 = vor.u32 %v5792_v58, %v4764_v2  ;;  %v4353_v42 = vor.u32 %v5686_v6, %v4350_v17 }
 0x2d9   :  { %2899 = vmatpush.bf16.msrb.mxu0 %v4925_v19  ;;  %v5824_v15 = vld [vmem:[#allocation14 + $0x50c] sm:$0xf0]  ;;  %1266 = vst [vmem:[#allocation1] ss:$4 sm:$0xff] %v1262_v7  ;;  %v5148_v14 = vld [vmem:[#allocation14 + $0x700] sm:$0xf] }
 0x2da   :  { %v5856_v30 = vld [vmem:[#allocation14 + $0x60c] sm:$0xf0]  ;;  %1268 = vst [vmem:[#allocation1 + $0x20] ss:$4 sm:$0xff] %v1263_v9  ;;  %v4893_v22 = vor.u32 %v5824_v15, %v4892_v27  ;;  %v5718_v39 = vld [vmem:[#allocation14 + $0x1c4] sm:$0xf] }
 0x2db   :  { %2912 = vmatpush.bf16.msrb.mxu1 %v5053_v50  ;;  %2925 = vmatpush.bf16.msra.mxu2 %v5181_v41  ;;  %v5888_v20 = vld [vmem:[#allocation14 + $0x70c] sm:$0xf0]  ;;  %v5021_v1 = vor.u32 %v5856_v30, %v5020_v18  ;;  %v4478_v16 = vld [vmem:[#allocation14 + $0x1d0] sm:$0xf0]  ;;  %v5750_v52 = vld [vmem:[#allocation14 + $0x2c4] sm:$0xf] }
 0x2dc   :  { %2887 = vmatpush.bf16.msrb.mxu3 %v4781_v5  ;;  %v5149_v49 = vor.u32 %v5888_v20, %v5148_v14  ;;  %v4606_v40 = vld [vmem:[#allocation14 + $0x2d0] sm:$0xf0]  ;;  %v5782_v56 = vld [vmem:[#allocation14 + $0x3c4] sm:$0xf]  ;;  %v4481_v43 = vor.u32 %v5718_v39, %v4478_v16 }
 0x2dd   :  { %2900 = vmatpush.bf16.msrb.mxu0 %v4909_v10  ;;  %v4734_v23 = vld [vmem:[#allocation14 + $0x3d0] sm:$0xf0]  ;;  %v5682_v44 = vld [vmem:[#allocation14 + $0xa4] sm:$0xf]  ;;  %v4609_v11 = vor.u32 %v5750_v52, %v4606_v40 }
 0x2de   :  { %v4334_v45 = vld [vmem:[#allocation14 + $0xb0] sm:$0xf0]  ;;  %v4737_v47 = vor.u32 %v5782_v56, %v4734_v23  ;;  %v5714_v48 = vld [vmem:[#allocation14 + $0x1a4] sm:$0xf] }
 0x2df   :  { %2913 = vmatpush.bf16.msrb.mxu1 %v5037_v13  ;;  %2926 = vmatpush.bf16.msra.mxu2 %v5165_v53  ;;  %v4462_v19 = vld [vmem:[#allocation14 + $0x1b0] sm:$0xf0]  ;;  %v5746_v50 = vld [vmem:[#allocation14 + $0x2a4] sm:$0xf]  ;;  %v4337_v3 = vor.u32 %v5682_v44, %v4334_v45 }
 0x2e0   :  { %2888 = vmatpush.bf16.msrb.mxu3 %v4765_v21  ;;  %v1269_v0 = vld.sshfl [vmem:[#allocation1] sm:$0xff pattern:$0x73625140]  ;;  %v1270_v31 = vld.sshfl [vmem:[#allocation1 + $0x8] sm:$0xff pattern:$0x73625140]  ;;  %v4465_v62 = vor.u32 %v5714_v48, %v4462_v19 }
 0x2e1   :  { %2901 = vmatpush.bf16.msrb.mxu0 %v4893_v22  ;;  %v6632_v32 = vpack.c.bf16 %v1269_v0, %v1269_v0  ;;  %v6634_v29 = vpack.c.bf16 %v1270_v31, %v1270_v31  ;;  %v1271_v35 = vld.sshfl [vmem:[#allocation1 + $0x10] sm:$0xff pattern:$0x73625140]  ;;  %v1272_v36 = vld.sshfl [vmem:[#allocation1 + $0x18] sm:$0xff pattern:$0x73625140] }
 0x2e2   :  { %v6636_v46 = vpack.c.bf16 %v1271_v35, %v1271_v35  ;;  %v6638_v57 = vpack.c.bf16 %v1272_v36, %v1272_v36  ;;  %v4590_v51 = vld [vmem:[#allocation14 + $0x2b0] sm:$0xf0]  ;;  %v5778_v54 = vld [vmem:[#allocation14 + $0x3a4] sm:$0xf] }
 0x2e3   :  { %2914 = vmatpush.bf16.msrb.mxu1 %v5021_v1  ;;  %2927 = vmatpush.bf16.msra.mxu2 %v5149_v49  ;;  %v4718_v34 = vld [vmem:[#allocation14 + $0x3b0] sm:$0xf0]  ;;  %v5678_v41 = vld [vmem:[#allocation14 + $0x84] sm:$0xf]  ;;  %v4593_v2 = vor.u32 %v5746_v50, %v4590_v51 }
 0x2e4   :  { %2837 = vmatmul.bf16.vlgmr.msra.gmra.mxu3 %v6632_v32  ;;  %2850 = vmatmul.bf16.vlgmr.msra.gmra.mxu0 %v6634_v29  ;;  %v4318_v55 = vld [vmem:[#allocation14 + $0x90] sm:$0xf0]  ;;  %v5710_v63 = vld [vmem:[#allocation14 + $0x184] sm:$0xf]  ;;  %v4721_v5 = vor.u32 %v5778_v54, %v4718_v34 }
 0x2e5   :  { %2863 = vmatmul.bf16.vlgmr.msra.gmra.mxu1 %v6636_v46  ;;  %2876 = vmatmul.bf16.vlgmr.msrb.gmra.mxu2 %v6638_v57  ;;  %v4446_v8 = vld [vmem:[#allocation14 + $0x190] sm:$0xf0]  ;;  %v5742_v58 = vld [vmem:[#allocation14 + $0x284] sm:$0xf]  ;;  %v4321_v30 = vor.u32 %v5678_v41, %v4318_v55 }
 0x2e6   :  { %2933 = vmatpush.bf16.msra.mxu3 %v4369_v33  ;;  %2946 = vmatpush.bf16.msra.mxu0 %v4497_v38  ;;  %v4574_v7 = vld [vmem:[#allocation14 + $0x290] sm:$0xf0]  ;;  %v5774_v9 = vld [vmem:[#allocation14 + $0x384] sm:$0xf]  ;;  %v4449_v14 = vor.u32 %v5710_v63, %v4446_v8 }
 0x2e7   :  { %2959 = vmatpush.bf16.msra.mxu1 %v4625_v61  ;;  %2972 = vmatpush.bf16.msrb.mxu2 %v4753_v12  ;;  %v4702_v10 = vld [vmem:[#allocation14 + $0x390] sm:$0xf0]  ;;  %v5674_v13 = vld [vmem:[#allocation14 + $0x64] sm:$0xf]  ;;  %v4577_v1 = vor.u32 %v5742_v58, %v4574_v7 }
 0x2e8   :  { %v4302_v27 = vld [vmem:[#allocation14 + $0x70] sm:$0xf0]  ;;  %v5706_v15 = vld [vmem:[#allocation14 + $0x164] sm:$0xf]  ;;  %v4705_v24 = vor.u32 %v5774_v9, %v4702_v10 }
 0x2e9   :  { %v4430_v53 = vld [vmem:[#allocation14 + $0x170] sm:$0xf0]  ;;  %v5738_v18 = vld [vmem:[#allocation14 + $0x264] sm:$0xf]  ;;  %v4305_v59 = vor.u32 %v5674_v13, %v4302_v27 }
 0x2ea   :  { %2934 = vmatpush.bf16.msra.mxu3 %v4353_v42  ;;  %2947 = vmatpush.bf16.msra.mxu0 %v4481_v43  ;;  %v4558_v20 = vld [vmem:[#allocation14 + $0x270] sm:$0xf0]  ;;  %v5770_v21 = vld [vmem:[#allocation14 + $0x364] sm:$0xf]  ;;  %v4433_v28 = vor.u32 %v5706_v15, %v4430_v53 }
 0x2eb   :  { %2960 = vmatpush.bf16.msra.mxu1 %v4609_v11  ;;  %2973 = vmatpush.bf16.msrb.mxu2 %v4737_v47  ;;  %v4686_v22 = vld [vmem:[#allocation14 + $0x370] sm:$0xf0]  ;;  %v1273_v37 = vld.sshfl [vmem:[#allocation1 + $0x20] sm:$0xff pattern:$0x73625140]  ;;  %v4561_v0 = vor.u32 %v5738_v18, %v4558_v20 }
 0x2ec   :  { %v1274_v49 = vld.sshfl [vmem:[#allocation1 + $0x28] sm:$0xff pattern:$0x73625140]  ;;  %v1275_v25 = vld.sshfl [vmem:[#allocation1 + $0x30] sm:$0xff pattern:$0x73625140]  ;;  %v6644_v4 = vpack.c.bf16 %v1273_v37, %v1273_v37  ;;  %v4689_v35 = vor.u32 %v5770_v21, %v4686_v22 }
 0x2ed   :  { %v1276_v26 = vld.sshfl [vmem:[#allocation1 + $0x38] sm:$0xff pattern:$0x73625140]  ;;  %v6646_v60 = vpack.c.bf16 %v1274_v49, %v1274_v49  ;;  %v5670_v31 = vld [vmem:[#allocation14 + $0x44] sm:$0xf]  ;;  %v6648_v6 = vpack.c.bf16 %v1275_v25, %v1275_v25 }
 0x2ee   :  { %2935 = vmatpush.bf16.msra.mxu3 %v4337_v3  ;;  %2948 = vmatpush.bf16.msra.mxu0 %v4465_v62  ;;  %v4286_v33 = vld [vmem:[#allocation14 + $0x50] sm:$0xf0]  ;;  %v6650_v17 = vpack.c.bf16 %v1276_v26, %v1276_v26  ;;  %v5702_v36 = vld [vmem:[#allocation14 + $0x144] sm:$0xf] }
 0x2ef   :  { %2961 = vmatpush.bf16.msra.mxu1 %v4593_v2  ;;  %2974 = vmatpush.bf16.msrb.mxu2 %v4721_v5  ;;  %v4414_v38 = vld [vmem:[#allocation14 + $0x150] sm:$0xf0]  ;;  %v5734_v61 = vld [vmem:[#allocation14 + $0x244] sm:$0xf]  ;;  %v4289_v52 = vor.u32 %v5670_v31, %v4286_v33 }
 0x2f0   :  { %v4542_v12 = vld [vmem:[#allocation14 + $0x250] sm:$0xf0]  ;;  %v5766_v39 = vld [vmem:[#allocation14 + $0x344] sm:$0xf]  ;;  %v4417_v40 = vor.u32 %v5702_v36, %v4414_v38 }
 0x2f1   :  { %v4670_v16 = vld [vmem:[#allocation14 + $0x350] sm:$0xf0]  ;;  %v5666_v56 = vld [vmem:[#allocation14 + $0x24] sm:$0xf]  ;;  %v4545_v42 = vor.u32 %v5734_v61, %v4542_v12 }
 0x2f2   :  { %2936 = vmatpush.bf16.msra.mxu3 %v4321_v30  ;;  %2949 = vmatpush.bf16.msra.mxu0 %v4449_v14  ;;  %v4270_v23 = vld [vmem:[#allocation14 + $0x30] sm:$0xf0]  ;;  %v4673_v43 = vor.u32 %v5766_v39, %v4670_v16  ;;  %v5698_v44 = vld [vmem:[#allocation14 + $0x124] sm:$0xf] }
 0x2f3   :  { %2962 = vmatpush.bf16.msra.mxu1 %v4577_v1  ;;  %2975 = vmatpush.bf16.msrb.mxu2 %v4705_v24  ;;  %v4398_v45 = vld [vmem:[#allocation14 + $0x130] sm:$0xf0]  ;;  %v5730_v11 = vld [vmem:[#allocation14 + $0x224] sm:$0xf]  ;;  %v4273_v51 = vor.u32 %v5666_v56, %v4270_v23 }
 0x2f4   :  { %2889 = vmatmul.bf16.vlgmr.msrb.gmra.mxu3 %v6644_v4  ;;  %2902 = vmatmul.bf16.vlgmr.msrb.gmra.mxu0 %v6646_v60  ;;  %v4526_v47 = vld [vmem:[#allocation14 + $0x230] sm:$0xf0]  ;;  %v5762_v48 = vld [vmem:[#allocation14 + $0x324] sm:$0xf]  ;;  %v4401_v54 = vor.u32 %v5698_v44, %v4398_v45 }
 0x2f5   :  { %2915 = vmatmul.bf16.vlgmr.msrb.gmra.mxu1 %v6648_v6  ;;  %2928 = vmatmul.bf16.vlgmr.msra.gmra.mxu2 %v6650_v17  ;;  %v4654_v19 = vld [vmem:[#allocation14 + $0x330] sm:$0xf0]  ;;  %v5662_v50 = vld [vmem:[#allocation14 + $0x4] sm:$0xf]  ;;  %v4529_v62 = vor.u32 %v5730_v11, %v4526_v47 }
 0x2f6   :  { %2937 = vmatpush.bf16.msra.mxu3 %v4305_v59  ;;  %2950 = vmatpush.bf16.msra.mxu0 %v4433_v28  ;;  %v4254_v34 = vld [vmem:[#allocation14 + $0x10] sm:$0xf0]  ;;  %v5694_v41 = vld [vmem:[#allocation14 + $0x104] sm:$0xf]  ;;  %v4657_v55 = vor.u32 %v5762_v48, %v4654_v19 }
 0x2f7   :  { %2963 = vmatpush.bf16.msra.mxu1 %v4561_v0  ;;  %2976 = vmatpush.bf16.msrb.mxu2 %v4689_v35  ;;  %v4382_v3 = vld [vmem:[#allocation14 + $0x110] sm:$0xf0]  ;;  %v5726_v63 = vld [vmem:[#allocation14 + $0x204] sm:$0xf]  ;;  %v4257_v27 = vor.u32 %v5662_v50, %v4254_v34 }
 0x2f8   :  { %v4510_v8 = vld [vmem:[#allocation14 + $0x210] sm:$0xf0]  ;;  %v5758_v2 = vld [vmem:[#allocation14 + $0x304] sm:$0xf]  ;;  %v4385_v15 = vor.u32 %v5694_v41, %v4382_v3 }
 0x2f9   :  { %v4638_v5 = vld [vmem:[#allocation14 + $0x310] sm:$0xf0]  ;;  %v5818_v58 = vld [vmem:[#allocation14 + $0x4e4] sm:$0xf]  ;;  %v4513_v14 = vor.u32 %v5726_v63, %v4510_v8 }
 0x2fa   :  { %2938 = vmatpush.bf16.msra.mxu3 %v4289_v52  ;;  %2951 = vmatpush.bf16.msra.mxu0 %v4417_v40  ;;  %v4878_v7 = vld [vmem:[#allocation14 + $0x4f0] sm:$0xf0]  ;;  %v5850_v9 = vld [vmem:[#allocation14 + $0x5e4] sm:$0xf]  ;;  %v4641_v20 = vor.u32 %v5758_v2, %v4638_v5 }
 0x2fb   :  { %2964 = vmatpush.bf16.msra.mxu1 %v4545_v42  ;;  %2977 = vmatpush.bf16.msrb.mxu2 %v4673_v43  ;;  %v5006_v10 = vld [vmem:[#allocation14 + $0x5f0] sm:$0xf0]  ;;  %v5882_v13 = vld [vmem:[#allocation14 + $0x6e4] sm:$0xf]  ;;  %v4881_v21 = vor.u32 %v5818_v58, %v4878_v7 }
 0x2fc   :  { %v5134_v53 = vld [vmem:[#allocation14 + $0x6f0] sm:$0xf0]  ;;  %v5914_v18 = vld [vmem:[#allocation14 + $0x7e4] sm:$0xf]  ;;  %v5009_v22 = vor.u32 %v5850_v9, %v5006_v10 }
 0x2fd   :  { %v5262_v30 = vld [vmem:[#allocation14 + $0x7f0] sm:$0xf0]  ;;  %v5814_v1 = vld [vmem:[#allocation14 + $0x4c4] sm:$0xf]  ;;  %v5137_v37 = vor.u32 %v5882_v13, %v5134_v53 }
 0x2fe   :  { %2939 = vmatpush.bf16.msra.mxu3 %v4273_v51  ;;  %2952 = vmatpush.bf16.msra.mxu0 %v4401_v54  ;;  %v4862_v24 = vld [vmem:[#allocation14 + $0x4d0] sm:$0xf0]  ;;  %v5265_v49 = vor.u32 %v5914_v18, %v5262_v30  ;;  %v5846_v25 = vld [vmem:[#allocation14 + $0x5c4] sm:$0xf] }
 0x2ff   :  { %2965 = vmatpush.bf16.msra.mxu1 %v4529_v62  ;;  %2978 = vmatpush.bf16.msrb.mxu2 %v4657_v55  ;;  %v4990_v26 = vld [vmem:[#allocation14 + $0x5d0] sm:$0xf0]  ;;  %v5878_v59 = vld [vmem:[#allocation14 + $0x6c4] sm:$0xf]  ;;  %v4865_v33 = vor.u32 %v5814_v1, %v4862_v24 }
 0x300   :  { %v5118_v28 = vld [vmem:[#allocation14 + $0x6d0] sm:$0xf0]  ;;  %v5910_v0 = vld [vmem:[#allocation14 + $0x7c4] sm:$0xf]  ;;  %v4993_v35 = vor.u32 %v5846_v25, %v4990_v26 }
 0x301   :  { %v5246_v31 = vld [vmem:[#allocation14 + $0x7d0] sm:$0xf0]  ;;  %v5810_v36 = vld [vmem:[#allocation14 + $0x4a4] sm:$0xf]  ;;  %v5121_v61 = vor.u32 %v5878_v59, %v5118_v28 }
 0x302   :  { %2940 = vmatpush.bf16.msra.mxu3 %v4257_v27  ;;  %2953 = vmatpush.bf16.msra.mxu0 %v4385_v15  ;;  %v4846_v38 = vld [vmem:[#allocation14 + $0x4b0] sm:$0xf0]  ;;  %v5249_v12 = vor.u32 %v5910_v0, %v5246_v31  ;;  %v5842_v39 = vld [vmem:[#allocation14 + $0x5a4] sm:$0xf] }
 0x303   :  { %2966 = vmatpush.bf16.msra.mxu1 %v4513_v14  ;;  %2979 = vmatpush.bf16.msrb.mxu2 %v4641_v20  ;;  %v4974_v16 = vld [vmem:[#allocation14 + $0x5b0] sm:$0xf0]  ;;  %v5874_v52 = vld [vmem:[#allocation14 + $0x6a4] sm:$0xf]  ;;  %v4849_v42 = vor.u32 %v5810_v36, %v4846_v38 }
 0x304   :  { %v5102_v40 = vld [vmem:[#allocation14 + $0x6b0] sm:$0xf0]  ;;  %v5906_v56 = vld [vmem:[#allocation14 + $0x7a4] sm:$0xf]  ;;  %v4977_v43 = vor.u32 %v5842_v39, %v4974_v16 }
 0x305   :  { %2941 = vmatmul.bf16.vlgmr.msra.gmra.mxu3 %v6632_v32  ;;  %2954 = vmatmul.bf16.vlgmr.msra.gmra.mxu0 %v6634_v29  ;;  %v5230_v23 = vld [vmem:[#allocation14 + $0x7b0] sm:$0xf0]  ;;  %v5806_v44 = vld [vmem:[#allocation14 + $0x484] sm:$0xf]  ;;  %v5105_v11 = vor.u32 %v5874_v52, %v5102_v40 }
 0x306   :  { %2985 = vmatpush.bf16.msrb.mxu3 %v4881_v21  ;;  %2998 = vmatpush.bf16.msrb.mxu0 %v5009_v22  ;;  %v4830_v45 = vld [vmem:[#allocation14 + $0x490] sm:$0xf0]  ;;  %v5233_v47 = vor.u32 %v5906_v56, %v5230_v23  ;;  %v5838_v48 = vld [vmem:[#allocation14 + $0x584] sm:$0xf] }
 0x307   :  { %3011 = vmatpush.bf16.msrb.mxu1 %v5137_v37  ;;  %3024 = vmatpush.bf16.msra.mxu2 %v5265_v49  ;;  %v4958_v19 = vld [vmem:[#allocation14 + $0x590] sm:$0xf0]  ;;  %v5870_v50 = vld [vmem:[#allocation14 + $0x684] sm:$0xf]  ;;  %v4833_v41 = vor.u32 %v5806_v44, %v4830_v45 }
 0x308   :  { %2967 = vmatmul.bf16.vlgmr.msra.gmra.mxu1 %v6636_v46  ;;  %2980 = vmatmul.bf16.vlgmr.msrb.gmra.mxu2 %v6638_v57  ;;  %v5086_v51 = vld [vmem:[#allocation14 + $0x690] sm:$0xf0]  ;;  %v5902_v54 = vld [vmem:[#allocation14 + $0x784] sm:$0xf]  ;;  %v4961_v3 = vor.u32 %v5838_v48, %v4958_v19  ;;  %v4500_v48 = vld [vmem:[#allocation14 + $0x1e8] sm:$0xf] }
 0x309   :  { %v5214_v34 = vld [vmem:[#allocation14 + $0x790] sm:$0xf0]  ;;  %v5802_v62 = vld [vmem:[#allocation14 + $0x464] sm:$0xf]  ;;  %v5089_v63 = vor.u32 %v5870_v50, %v5086_v51  ;;  %v5725_v19 = vld [vmem:[#allocation14 + $0x1f4] sm:$0xf0] }
 0x30a   :  { %2986 = vmatpush.bf16.msrb.mxu3 %v4865_v33  ;;  %2999 = vmatpush.bf16.msrb.mxu0 %v4993_v35  ;;  %v4814_v55 = vld [vmem:[#allocation14 + $0x470] sm:$0xf0]  ;;  %v5217_v8 = vor.u32 %v5902_v54, %v5214_v34  ;;  %v5834_v2 = vld [vmem:[#allocation14 + $0x564] sm:$0xf]  ;;  %v4628_v50 = vld [vmem:[#allocation14 + $0x2e8] sm:$0xf] }
 0x30b   :  { %3012 = vmatpush.bf16.msrb.mxu1 %v5121_v61  ;;  %3025 = vmatpush.bf16.msra.mxu2 %v5249_v12  ;;  %v4942_v5 = vld [vmem:[#allocation14 + $0x570] sm:$0xf0]  ;;  %v5866_v58 = vld [vmem:[#allocation14 + $0x664] sm:$0xf]  ;;  %v4817_v13 = vor.u32 %v5802_v62, %v4814_v55  ;;  %v5757_v34 = vld [vmem:[#allocation14 + $0x2f4] sm:$0xf0] }
 0x30c   :  { %v5070_v7 = vld [vmem:[#allocation14 + $0x670] sm:$0xf0]  ;;  %v5898_v9 = vld [vmem:[#allocation14 + $0x764] sm:$0xf]  ;;  %v4945_v27 = vor.u32 %v5834_v2, %v4942_v5  ;;  %v4356_v2 = vld [vmem:[#allocation14 + $0xc8] sm:$0xf] }
 0x30d   :  { %v5198_v10 = vld [vmem:[#allocation14 + $0x770] sm:$0xf0]  ;;  %v5798_v15 = vld [vmem:[#allocation14 + $0x444] sm:$0xf]  ;;  %v5073_v18 = vor.u32 %v5866_v58, %v5070_v7  ;;  %v5689_v5 = vld [vmem:[#allocation14 + $0xd4] sm:$0xf0]  ;;  %v4629_v58 = vor.u32 %v5757_v34, %v4628_v50 }
 0x30e   :  { %2987 = vmatpush.bf16.msrb.mxu3 %v4849_v42  ;;  %3000 = vmatpush.bf16.msrb.mxu0 %v4977_v43  ;;  %v4798_v53 = vld [vmem:[#allocation14 + $0x450] sm:$0xf0]  ;;  %v5201_v30 = vor.u32 %v5898_v9, %v5198_v10  ;;  %v5830_v14 = vld [vmem:[#allocation14 + $0x544] sm:$0xf]  ;;  %v4484_v9 = vld [vmem:[#allocation14 + $0x1c8] sm:$0xf] }
 0x30f   :  { %3013 = vmatpush.bf16.msrb.mxu1 %v5105_v11  ;;  %3026 = vmatpush.bf16.msra.mxu2 %v5233_v47  ;;  %v4926_v20 = vld [vmem:[#allocation14 + $0x550] sm:$0xf0]  ;;  %v5862_v21 = vld [vmem:[#allocation14 + $0x644] sm:$0xf]  ;;  %v4801_v37 = vor.u32 %v5798_v15, %v4798_v53  ;;  %v4372_v11 = vld [vmem:[#allocation14 + $0xe8] sm:$0xf] }
 0x310   :  { %v5054_v22 = vld [vmem:[#allocation14 + $0x650] sm:$0xf0]  ;;  %v5894_v1 = vld [vmem:[#allocation14 + $0x744] sm:$0xf]  ;;  %v4929_v49 = vor.u32 %v5830_v14, %v4926_v20  ;;  %v5693_v47 = vld [vmem:[#allocation14 + $0xf4] sm:$0xf0] }
 0x311   :  { %v5182_v24 = vld [vmem:[#allocation14 + $0x750] sm:$0xf0]  ;;  %v5794_v25 = vld [vmem:[#allocation14 + $0x424] sm:$0xf]  ;;  %v5057_v59 = vor.u32 %v5862_v21, %v5054_v22  ;;  %v5721_v10 = vld [vmem:[#allocation14 + $0x1d4] sm:$0xf0] }
 0x312   :  { %2988 = vmatpush.bf16.msrb.mxu3 %v4833_v41  ;;  %3001 = vmatpush.bf16.msrb.mxu0 %v4961_v3  ;;  %v4782_v26 = vld [vmem:[#allocation14 + $0x430] sm:$0xf0]  ;;  %v5185_v28 = vor.u32 %v5894_v1, %v5182_v24  ;;  %v5826_v0 = vld [vmem:[#allocation14 + $0x524] sm:$0xf]  ;;  %v4756_v41 = vld [vmem:[#allocation14 + $0x3e8] sm:$0xf] }
 0x313   :  { %3014 = vmatpush.bf16.msrb.mxu1 %v5089_v63  ;;  %3027 = vmatpush.bf16.msra.mxu2 %v5217_v8  ;;  %v4910_v31 = vld [vmem:[#allocation14 + $0x530] sm:$0xf0]  ;;  %v5858_v33 = vld [vmem:[#allocation14 + $0x624] sm:$0xf]  ;;  %v4785_v12 = vor.u32 %v5794_v25, %v4782_v26  ;;  %v5789_v3 = vld [vmem:[#allocation14 + $0x3f4] sm:$0xf0]  ;;  %v4373_v63 = vor.u32 %v5693_v47, %v4372_v11  ;;  %v4501_v8 = vor.u32 %v5725_v19, %v4500_v48 }
 0x314   :  { %v5038_v35 = vld [vmem:[#allocation14 + $0x630] sm:$0xf0]  ;;  %v5890_v36 = vld [vmem:[#allocation14 + $0x724] sm:$0xf]  ;;  %v4913_v39 = vor.u32 %v5826_v0, %v4910_v31  ;;  %v4757_v7 = vor.u32 %v5789_v3, %v4756_v41  ;;  %v4740_v15 = vld [vmem:[#allocation14 + $0x3c8] sm:$0xf] }
 0x315   :  { %v5166_v38 = vld [vmem:[#allocation14 + $0x730] sm:$0xf0]  ;;  %v5790_v61 = vld [vmem:[#allocation14 + $0x404] sm:$0xf]  ;;  %v5041_v56 = vor.u32 %v5858_v33, %v5038_v35  ;;  %v5785_v53 = vld [vmem:[#allocation14 + $0x3d4] sm:$0xf0] }
 0x316   :  { %2989 = vmatpush.bf16.msrb.mxu3 %v4817_v13  ;;  %3002 = vmatpush.bf16.msrb.mxu0 %v4945_v27  ;;  %v4766_v16 = vld [vmem:[#allocation14 + $0x410] sm:$0xf0]  ;;  %v5822_v52 = vld [vmem:[#allocation14 + $0x504] sm:$0xf]  ;;  %v5169_v23 = vor.u32 %v5890_v36, %v5166_v38  ;;  %v4612_v13 = vld [vmem:[#allocation14 + $0x2c8] sm:$0xf]  ;;  %v4741_v22 = vor.u32 %v5785_v53, %v4740_v15 }
 0x317   :  { %3015 = vmatpush.bf16.msrb.mxu1 %v5073_v18  ;;  %3028 = vmatpush.bf16.msra.mxu2 %v5201_v30  ;;  %v4894_v40 = vld [vmem:[#allocation14 + $0x510] sm:$0xf0]  ;;  %v5854_v42 = vld [vmem:[#allocation14 + $0x604] sm:$0xf]  ;;  %v4769_v51 = vor.u32 %v5790_v61, %v4766_v16  ;;  %v5753_v27 = vld [vmem:[#allocation14 + $0x2d4] sm:$0xf0]  ;;  %v4357_v18 = vor.u32 %v5689_v5, %v4356_v2  ;;  %v4485_v30 = vor.u32 %v5721_v10, %v4484_v9 }
 0x318   :  { %v5022_v43 = vld [vmem:[#allocation14 + $0x610] sm:$0xf0]  ;;  %v5886_v44 = vld [vmem:[#allocation14 + $0x704] sm:$0xf]  ;;  %v4897_v54 = vor.u32 %v5822_v52, %v4894_v40  ;;  %v4340_v14 = vld [vmem:[#allocation14 + $0xa8] sm:$0xf]  ;;  %v4613_v21 = vor.u32 %v5753_v27, %v4612_v13 }
 0x319   :  { %v5150_v45 = vld [vmem:[#allocation14 + $0x710] sm:$0xf0]  ;;  %v5025_v62 = vor.u32 %v5854_v42, %v5022_v43  ;;  %v5685_v20 = vld [vmem:[#allocation14 + $0xb4] sm:$0xf0]  ;;  %v4468_v1 = vld [vmem:[#allocation14 + $0x1a8] sm:$0xf] }
 0x31a   :  { %2990 = vmatpush.bf16.msrb.mxu3 %v4801_v37  ;;  %3003 = vmatpush.bf16.msrb.mxu0 %v4929_v49  ;;  %v5153_v55 = vor.u32 %v5886_v44, %v5150_v45  ;;  %v5717_v24 = vld [vmem:[#allocation14 + $0x1b4] sm:$0xf0]  ;;  %v4596_v37 = vld [vmem:[#allocation14 + $0x2a8] sm:$0xf] }
 0x31b   :  { %3016 = vmatpush.bf16.msrb.mxu1 %v5057_v59  ;;  %3029 = vmatpush.bf16.msra.mxu2 %v5185_v28  ;;  %v5749_v49 = vld [vmem:[#allocation14 + $0x2b4] sm:$0xf0]  ;;  %v4724_v25 = vld [vmem:[#allocation14 + $0x3a8] sm:$0xf]  ;;  %v4341_v59 = vor.u32 %v5685_v20, %v4340_v14  ;;  %v4469_v28 = vor.u32 %v5717_v24, %v4468_v1 }
 0x31c   :  { %v5781_v26 = vld [vmem:[#allocation14 + $0x3b4] sm:$0xf0]  ;;  %v4324_v0 = vld [vmem:[#allocation14 + $0x88] sm:$0xf]  ;;  %v4597_v33 = vor.u32 %v5749_v49, %v4596_v37 }
 0x31d   :  { %v5681_v31 = vld [vmem:[#allocation14 + $0x94] sm:$0xf0]  ;;  %v4725_v35 = vor.u32 %v5781_v26, %v4724_v25  ;;  %v4452_v36 = vld [vmem:[#allocation14 + $0x188] sm:$0xf] }
 0x31e   :  { %2991 = vmatpush.bf16.msrb.mxu3 %v4785_v12  ;;  %3004 = vmatpush.bf16.msrb.mxu0 %v4913_v39  ;;  %v5713_v38 = vld [vmem:[#allocation14 + $0x194] sm:$0xf0]  ;;  %v4580_v61 = vld [vmem:[#allocation14 + $0x288] sm:$0xf]  ;;  %v4325_v52 = vor.u32 %v5681_v31, %v4324_v0 }
 0x31f   :  { %3017 = vmatpush.bf16.msrb.mxu1 %v5041_v56  ;;  %3030 = vmatpush.bf16.msra.mxu2 %v5169_v23  ;;  %v5745_v12 = vld [vmem:[#allocation14 + $0x294] sm:$0xf0]  ;;  %v4708_v39 = vld [vmem:[#allocation14 + $0x388] sm:$0xf]  ;;  %v4453_v40 = vor.u32 %v5713_v38, %v4452_v36 }
 0x320   :  { %v5777_v16 = vld [vmem:[#allocation14 + $0x394] sm:$0xf0]  ;;  %v4308_v56 = vld [vmem:[#allocation14 + $0x68] sm:$0xf]  ;;  %v4581_v42 = vor.u32 %v5745_v12, %v4580_v61 }
 0x321   :  { %v5677_v23 = vld [vmem:[#allocation14 + $0x74] sm:$0xf0]  ;;  %v4709_v43 = vor.u32 %v5777_v16, %v4708_v39  ;;  %v4436_v44 = vld [vmem:[#allocation14 + $0x168] sm:$0xf] }
 0x322   :  { %2992 = vmatpush.bf16.msrb.mxu3 %v4769_v51  ;;  %3005 = vmatpush.bf16.msrb.mxu0 %v4897_v54  ;;  %v5709_v45 = vld [vmem:[#allocation14 + $0x174] sm:$0xf0]  ;;  %v4564_v11 = vld [vmem:[#allocation14 + $0x268] sm:$0xf]  ;;  %v4309_v50 = vor.u32 %v5677_v23, %v4308_v56 }
 0x323   :  { %3018 = vmatpush.bf16.msrb.mxu1 %v5025_v62  ;;  %3031 = vmatpush.bf16.msra.mxu2 %v5153_v55  ;;  %v5741_v47 = vld [vmem:[#allocation14 + $0x274] sm:$0xf0]  ;;  %v4692_v48 = vld [vmem:[#allocation14 + $0x368] sm:$0xf]  ;;  %v4437_v51 = vor.u32 %v5709_v45, %v4436_v44 }
 0x324   :  { %v5773_v19 = vld [vmem:[#allocation14 + $0x374] sm:$0xf0]  ;;  %v4292_v54 = vld [vmem:[#allocation14 + $0x48] sm:$0xf]  ;;  %v4565_v41 = vor.u32 %v5741_v47, %v4564_v11 }
 0x325   :  { %2993 = vmatmul.bf16.vlgmr.msrb.gmra.mxu3 %v6644_v4  ;;  %3006 = vmatmul.bf16.vlgmr.msrb.gmra.mxu0 %v6646_v60  ;;  %v5673_v34 = vld [vmem:[#allocation14 + $0x54] sm:$0xf0]  ;;  %v4693_v3 = vor.u32 %v5773_v19, %v4692_v48  ;;  %v4420_v62 = vld [vmem:[#allocation14 + $0x148] sm:$0xf] }
 0x326   :  { %3037 = vmatpush.bf16.msra.mxu3 %v4373_v63  ;;  %3050 = vmatpush.bf16.msra.mxu0 %v4501_v8  ;;  %v5705_v55 = vld [vmem:[#allocation14 + $0x154] sm:$0xf0]  ;;  %v4548_v63 = vld [vmem:[#allocation14 + $0x248] sm:$0xf] }
 0x327   :  { %3063 = vmatpush.bf16.msra.mxu1 %v4629_v58  ;;  %3076 = vmatpush.bf16.msrb.mxu2 %v4757_v7  ;;  %v5737_v8 = vld [vmem:[#allocation14 + $0x254] sm:$0xf0]  ;;  %v4676_v2 = vld [vmem:[#allocation14 + $0x348] sm:$0xf]  ;;  %v4293_v58 = vor.u32 %v5673_v34, %v4292_v54  ;;  %v4421_v7 = vor.u32 %v5705_v55, %v4420_v62 }
 0x328   :  { %3019 = vmatmul.bf16.vlgmr.msrb.gmra.mxu1 %v6648_v6  ;;  %3032 = vmatmul.bf16.vlgmr.msra.gmra.mxu2 %v6650_v17  ;;  %v5769_v5 = vld [vmem:[#allocation14 + $0x354] sm:$0xf0]  ;;  %v4276_v9 = vld [vmem:[#allocation14 + $0x28] sm:$0xf]  ;;  %v4549_v13 = vor.u32 %v5737_v8, %v4548_v63 }
 0x329   :  { %v5669_v10 = vld [vmem:[#allocation14 + $0x34] sm:$0xf0]  ;;  %v4677_v27 = vor.u32 %v5769_v5, %v4676_v2  ;;  %v4404_v15 = vld [vmem:[#allocation14 + $0x128] sm:$0xf] }
 0x32a   :  { %3038 = vmatpush.bf16.msra.mxu3 %v4357_v18  ;;  %3051 = vmatpush.bf16.msra.mxu0 %v4485_v30  ;;  %v5701_v53 = vld [vmem:[#allocation14 + $0x134] sm:$0xf0]  ;;  %v4532_v18 = vld [vmem:[#allocation14 + $0x228] sm:$0xf] }
 0x32b   :  { %3064 = vmatpush.bf16.msra.mxu1 %v4613_v21  ;;  %3077 = vmatpush.bf16.msrb.mxu2 %v4741_v22  ;;  %v5733_v30 = vld [vmem:[#allocation14 + $0x234] sm:$0xf0]  ;;  %v4660_v14 = vld [vmem:[#allocation14 + $0x328] sm:$0xf]  ;;  %v4277_v22 = vor.u32 %v5669_v10, %v4276_v9  ;;  %v4405_v1 = vor.u32 %v5701_v53, %v4404_v15 }
 0x32c   :  { %v5765_v20 = vld [vmem:[#allocation14 + $0x334] sm:$0xf0]  ;;  %v4260_v21 = vld [vmem:[#allocation14 + $0x8] sm:$0xf]  ;;  %v4533_v25 = vor.u32 %v5733_v30, %v4532_v18 }
 0x32d   :  { %v5665_v24 = vld [vmem:[#allocation14 + $0x14] sm:$0xf0]  ;;  %v4388_v37 = vld [vmem:[#allocation14 + $0x108] sm:$0xf]  ;;  %v4661_v26 = vor.u32 %v5765_v20, %v4660_v14 }
 0x32e   :  { %3039 = vmatpush.bf16.msra.mxu3 %v4341_v59  ;;  %3052 = vmatpush.bf16.msra.mxu0 %v4469_v28  ;;  %v5697_v49 = vld [vmem:[#allocation14 + $0x114] sm:$0xf0]  ;;  %v4516_v59 = vld [vmem:[#allocation14 + $0x208] sm:$0xf]  ;;  %v4261_v12 = vor.u32 %v5665_v24, %v4260_v21 }
 0x32f   :  { %3065 = vmatpush.bf16.msra.mxu1 %v4597_v33  ;;  %3078 = vmatpush.bf16.msrb.mxu2 %v4725_v35  ;;  %v5729_v28 = vld [vmem:[#allocation14 + $0x214] sm:$0xf0]  ;;  %v4644_v0 = vld [vmem:[#allocation14 + $0x308] sm:$0xf]  ;;  %v4389_v39 = vor.u32 %v5697_v49, %v4388_v37 }
 0x330   :  { %v5761_v31 = vld [vmem:[#allocation14 + $0x314] sm:$0xf0]  ;;  %v4884_v33 = vld [vmem:[#allocation14 + $0x4e8] sm:$0xf]  ;;  %v4517_v56 = vor.u32 %v5729_v28, %v4516_v59 }
 0x331   :  { %v5821_v35 = vld [vmem:[#allocation14 + $0x4f4] sm:$0xf0]  ;;  %v5012_v36 = vld [vmem:[#allocation14 + $0x5e8] sm:$0xf]  ;;  %v4645_v23 = vor.u32 %v5761_v31, %v4644_v0 }
 0x332   :  { %3040 = vmatpush.bf16.msra.mxu3 %v4325_v52  ;;  %3053 = vmatpush.bf16.msra.mxu0 %v4453_v40  ;;  %v5853_v38 = vld [vmem:[#allocation14 + $0x5f4] sm:$0xf0]  ;;  %v5140_v61 = vld [vmem:[#allocation14 + $0x6e8] sm:$0xf] }
 0x333   :  { %3066 = vmatpush.bf16.msra.mxu1 %v4581_v42  ;;  %3079 = vmatpush.bf16.msrb.mxu2 %v4709_v43  ;;  %v5885_v16 = vld [vmem:[#allocation14 + $0x6f4] sm:$0xf0]  ;;  %v5268_v52 = vld [vmem:[#allocation14 + $0x7e8] sm:$0xf]  ;;  %v4885_v42 = vor.u32 %v5821_v35, %v4884_v33  ;;  %v5013_v43 = vor.u32 %v5853_v38, %v5012_v36 }
 0x334   :  { %v5917_v40 = vld [vmem:[#allocation14 + $0x7f4] sm:$0xf0]  ;;  %v4868_v44 = vld [vmem:[#allocation14 + $0x4c8] sm:$0xf]  ;;  %v5141_v11 = vor.u32 %v5885_v16, %v5140_v61 }
 0x335   :  { %v5817_v45 = vld [vmem:[#allocation14 + $0x4d4] sm:$0xf0]  ;;  %v5269_v47 = vor.u32 %v5917_v40, %v5268_v52  ;;  %v4996_v48 = vld [vmem:[#allocation14 + $0x5c8] sm:$0xf] }
 0x336   :  { %3041 = vmatpush.bf16.msra.mxu3 %v4309_v50  ;;  %3054 = vmatpush.bf16.msra.mxu0 %v4437_v51  ;;  %v5849_v19 = vld [vmem:[#allocation14 + $0x5d4] sm:$0xf0]  ;;  %v5124_v50 = vld [vmem:[#allocation14 + $0x6c8] sm:$0xf] }
 0x337   :  { %3067 = vmatpush.bf16.msra.mxu1 %v4565_v41  ;;  %3080 = vmatpush.bf16.msrb.mxu2 %v4693_v3  ;;  %v5881_v51 = vld [vmem:[#allocation14 + $0x6d4] sm:$0xf0]  ;;  %v5252_v54 = vld [vmem:[#allocation14 + $0x7c8] sm:$0xf]  ;;  %v4869_v41 = vor.u32 %v5817_v45, %v4868_v44  ;;  %v4997_v3 = vor.u32 %v5849_v19, %v4996_v48 }
 0x338   :  { %v5913_v34 = vld [vmem:[#allocation14 + $0x7d4] sm:$0xf0]  ;;  %v4852_v62 = vld [vmem:[#allocation14 + $0x4a8] sm:$0xf]  ;;  %v5125_v63 = vor.u32 %v5881_v51, %v5124_v50 }
 0x339   :  { %v5813_v55 = vld [vmem:[#allocation14 + $0x4b4] sm:$0xf0]  ;;  %v5253_v8 = vor.u32 %v5913_v34, %v5252_v54  ;;  %v4980_v2 = vld [vmem:[#allocation14 + $0x5a8] sm:$0xf] }
 0x33a   :  { %3042 = vmatpush.bf16.msra.mxu3 %v4293_v58  ;;  %3055 = vmatpush.bf16.msra.mxu0 %v4421_v7  ;;  %v5845_v5 = vld [vmem:[#allocation14 + $0x5b4] sm:$0xf0]  ;;  %v5108_v58 = vld [vmem:[#allocation14 + $0x6a8] sm:$0xf] }
 0x33b   :  { %3068 = vmatpush.bf16.msra.mxu1 %v4549_v13  ;;  %3081 = vmatpush.bf16.msrb.mxu2 %v4677_v27  ;;  %v5877_v7 = vld [vmem:[#allocation14 + $0x6b4] sm:$0xf0]  ;;  %v5236_v9 = vld [vmem:[#allocation14 + $0x7a8] sm:$0xf]  ;;  %v4853_v13 = vor.u32 %v5813_v55, %v4852_v62  ;;  %v4981_v27 = vor.u32 %v5845_v5, %v4980_v2 }
 0x33c   :  { %v5909_v10 = vld [vmem:[#allocation14 + $0x7b4] sm:$0xf0]  ;;  %v4836_v15 = vld [vmem:[#allocation14 + $0x488] sm:$0xf]  ;;  %v5109_v18 = vor.u32 %v5877_v7, %v5108_v58 }
 0x33d   :  { %v5809_v53 = vld [vmem:[#allocation14 + $0x494] sm:$0xf0]  ;;  %v5237_v30 = vor.u32 %v5909_v10, %v5236_v9  ;;  %v4964_v14 = vld [vmem:[#allocation14 + $0x588] sm:$0xf] }
 0x33e   :  { %3043 = vmatpush.bf16.msra.mxu3 %v4277_v22  ;;  %3056 = vmatpush.bf16.msra.mxu0 %v4405_v1  ;;  %v5841_v20 = vld [vmem:[#allocation14 + $0x594] sm:$0xf0]  ;;  %v5092_v21 = vld [vmem:[#allocation14 + $0x688] sm:$0xf]  ;;  %v4837_v37 = vor.u32 %v5809_v53, %v4836_v15 }
 0x33f   :  { %3069 = vmatpush.bf16.msra.mxu1 %v4533_v25  ;;  %3082 = vmatpush.bf16.msrb.mxu2 %v4661_v26  ;;  %v5873_v22 = vld [vmem:[#allocation14 + $0x694] sm:$0xf0]  ;;  %v5220_v1 = vld [vmem:[#allocation14 + $0x788] sm:$0xf]  ;;  %v4965_v49 = vor.u32 %v5841_v20, %v4964_v14  ;;  %v5723_v14 = vld [vmem:[#allocation14 + $0x1ec] sm:$0xf] }
 0x340   :  { %v5905_v24 = vld [vmem:[#allocation14 + $0x794] sm:$0xf0]  ;;  %v4820_v25 = vld [vmem:[#allocation14 + $0x468] sm:$0xf]  ;;  %v5093_v59 = vor.u32 %v5873_v22, %v5092_v21  ;;  %v4502_v20 = vld [vmem:[#allocation14 + $0x1f8] sm:$0xf0] }
 0x341   :  { %v5805_v26 = vld [vmem:[#allocation14 + $0x474] sm:$0xf0]  ;;  %v5221_v28 = vor.u32 %v5905_v24, %v5220_v1  ;;  %v4948_v0 = vld [vmem:[#allocation14 + $0x568] sm:$0xf]  ;;  %v5755_v21 = vld [vmem:[#allocation14 + $0x2ec] sm:$0xf] }
 0x342   :  { %3044 = vmatpush.bf16.msra.mxu3 %v4261_v12  ;;  %3057 = vmatpush.bf16.msra.mxu0 %v4389_v39  ;;  %v5837_v31 = vld [vmem:[#allocation14 + $0x574] sm:$0xf0]  ;;  %v5076_v33 = vld [vmem:[#allocation14 + $0x668] sm:$0xf]  ;;  %v4821_v61 = vor.u32 %v5805_v26, %v4820_v25  ;;  %v4630_v24 = vld [vmem:[#allocation14 + $0x2f8] sm:$0xf0] }
 0x343   :  { %3070 = vmatpush.bf16.msra.mxu1 %v4517_v56  ;;  %3083 = vmatpush.bf16.msrb.mxu2 %v4645_v23  ;;  %v5869_v35 = vld [vmem:[#allocation14 + $0x674] sm:$0xf0]  ;;  %v5204_v36 = vld [vmem:[#allocation14 + $0x768] sm:$0xf]  ;;  %v4949_v12 = vor.u32 %v5837_v31, %v4948_v0  ;;  %v5687_v0 = vld [vmem:[#allocation14 + $0xcc] sm:$0xf] }
 0x344   :  { %v5901_v38 = vld [vmem:[#allocation14 + $0x774] sm:$0xf0]  ;;  %v4804_v39 = vld [vmem:[#allocation14 + $0x448] sm:$0xf]  ;;  %v5077_v52 = vor.u32 %v5869_v35, %v5076_v33  ;;  %v4358_v31 = vld [vmem:[#allocation14 + $0xd8] sm:$0xf0]  ;;  %v4633_v33 = vor.u32 %v5755_v21, %v4630_v24 }
 0x345   :  { %3045 = vmatmul.bf16.vlgmr.msra.gmra.mxu3 %v6632_v32  ;;  %3058 = vmatmul.bf16.vlgmr.msra.gmra.mxu0 %v6634_v29  ;;  %v5801_v16 = vld [vmem:[#allocation14 + $0x454] sm:$0xf0]  ;;  %v5205_v40 = vor.u32 %v5901_v38, %v5204_v36  ;;  %v4932_v56 = vld [vmem:[#allocation14 + $0x548] sm:$0xf]  ;;  %v5719_v36 = vld [vmem:[#allocation14 + $0x1cc] sm:$0xf] }
 0x346   :  { %3089 = vmatpush.bf16.msrb.mxu3 %v4885_v42  ;;  %3102 = vmatpush.bf16.msrb.mxu0 %v5013_v43  ;;  %v5833_v23 = vld [vmem:[#allocation14 + $0x554] sm:$0xf0]  ;;  %v5060_v42 = vld [vmem:[#allocation14 + $0x648] sm:$0xf]  ;;  %v4486_v38 = vld [vmem:[#allocation14 + $0x1d8] sm:$0xf0] }
 0x347   :  { %3115 = vmatpush.bf16.msrb.mxu1 %v5141_v11  ;;  %3128 = vmatpush.bf16.msra.mxu2 %v5269_v47  ;;  %v5865_v43 = vld [vmem:[#allocation14 + $0x654] sm:$0xf0]  ;;  %v5188_v44 = vld [vmem:[#allocation14 + $0x748] sm:$0xf]  ;;  %v4805_v11 = vor.u32 %v5801_v16, %v4804_v39  ;;  %v4933_v47 = vor.u32 %v5833_v23, %v4932_v56  ;;  %v5783_v39 = vld [vmem:[#allocation14 + $0x3cc] sm:$0xf] }
 0x348   :  { %3071 = vmatmul.bf16.vlgmr.msra.gmra.mxu1 %v6636_v46  ;;  %3084 = vmatmul.bf16.vlgmr.msrb.gmra.mxu2 %v6638_v57  ;;  %v5897_v45 = vld [vmem:[#allocation14 + $0x754] sm:$0xf0]  ;;  %v4788_v48 = vld [vmem:[#allocation14 + $0x428] sm:$0xf]  ;;  %v5061_v50 = vor.u32 %v5865_v43, %v5060_v42  ;;  %v4742_v16 = vld [vmem:[#allocation14 + $0x3d8] sm:$0xf0] }
 0x349   :  { %v5797_v19 = vld [vmem:[#allocation14 + $0x434] sm:$0xf0]  ;;  %v5189_v51 = vor.u32 %v5897_v45, %v5188_v44  ;;  %v4916_v54 = vld [vmem:[#allocation14 + $0x528] sm:$0xf]  ;;  %v5683_v56 = vld [vmem:[#allocation14 + $0xac] sm:$0xf]  ;;  %v4745_v43 = vor.u32 %v5783_v39, %v4742_v16 }
 0x34a   :  { %3090 = vmatpush.bf16.msrb.mxu3 %v4869_v41  ;;  %3103 = vmatpush.bf16.msrb.mxu0 %v4997_v3  ;;  %v5829_v34 = vld [vmem:[#allocation14 + $0x534] sm:$0xf0]  ;;  %v5044_v41 = vld [vmem:[#allocation14 + $0x628] sm:$0xf]  ;;  %v4342_v23 = vld [vmem:[#allocation14 + $0xb8] sm:$0xf0] }
 0x34b   :  { %3116 = vmatpush.bf16.msrb.mxu1 %v5125_v63  ;;  %3129 = vmatpush.bf16.msra.mxu2 %v5253_v8  ;;  %v5861_v3 = vld [vmem:[#allocation14 + $0x634] sm:$0xf0]  ;;  %v5172_v62 = vld [vmem:[#allocation14 + $0x728] sm:$0xf]  ;;  %v4789_v8 = vor.u32 %v5797_v19, %v4788_v48  ;;  %v4917_v2 = vor.u32 %v5829_v34, %v4916_v54  ;;  %v5715_v44 = vld [vmem:[#allocation14 + $0x1ac] sm:$0xf] }
 0x34c   :  { %v5893_v55 = vld [vmem:[#allocation14 + $0x734] sm:$0xf0]  ;;  %v4772_v63 = vld [vmem:[#allocation14 + $0x408] sm:$0xf]  ;;  %v5045_v9 = vor.u32 %v5861_v3, %v5044_v41  ;;  %v4470_v45 = vld [vmem:[#allocation14 + $0x1b8] sm:$0xf0] }
 0x34d   :  { %v5793_v5 = vld [vmem:[#allocation14 + $0x414] sm:$0xf0]  ;;  %v4900_v58 = vld [vmem:[#allocation14 + $0x508] sm:$0xf]  ;;  %v5173_v10 = vor.u32 %v5893_v55, %v5172_v62  ;;  %v5779_v48 = vld [vmem:[#allocation14 + $0x3ac] sm:$0xf]  ;;  %v4473_v54 = vor.u32 %v5715_v44, %v4470_v45 }
 0x34e   :  { %3091 = vmatpush.bf16.msrb.mxu3 %v4853_v13  ;;  %3104 = vmatpush.bf16.msrb.mxu0 %v4981_v27  ;;  %v5825_v7 = vld [vmem:[#allocation14 + $0x514] sm:$0xf0]  ;;  %v5028_v13 = vld [vmem:[#allocation14 + $0x608] sm:$0xf]  ;;  %v4773_v22 = vor.u32 %v5793_v5, %v4772_v63  ;;  %v4726_v19 = vld [vmem:[#allocation14 + $0x3b8] sm:$0xf0] }
 0x34f   :  { %3117 = vmatpush.bf16.msrb.mxu1 %v5109_v18  ;;  %3130 = vmatpush.bf16.msra.mxu2 %v5237_v30  ;;  %v5857_v27 = vld [vmem:[#allocation14 + $0x614] sm:$0xf0]  ;;  %v5156_v15 = vld [vmem:[#allocation14 + $0x708] sm:$0xf]  ;;  %v5691_v18 = vld [vmem:[#allocation14 + $0xec] sm:$0xf]  ;;  %v4901_v1 = vor.u32 %v5825_v7, %v4900_v58  ;;  %v4729_v55 = vor.u32 %v5779_v48, %v4726_v19 }
 0x350   :  { %v5889_v53 = vld [vmem:[#allocation14 + $0x714] sm:$0xf0]  ;;  %v4374_v30 = vld [vmem:[#allocation14 + $0xf8] sm:$0xf0]  ;;  %v5029_v25 = vor.u32 %v5857_v27, %v5028_v13  ;;  %v5679_v41 = vld [vmem:[#allocation14 + $0x8c] sm:$0xf] }
 0x351   :  { %v5157_v26 = vor.u32 %v5889_v53, %v5156_v15  ;;  %v4326_v3 = vld [vmem:[#allocation14 + $0x98] sm:$0xf0]  ;;  %v5711_v63 = vld [vmem:[#allocation14 + $0x18c] sm:$0xf] }
 0x352   :  { %3092 = vmatpush.bf16.msrb.mxu3 %v4837_v37  ;;  %3105 = vmatpush.bf16.msrb.mxu0 %v4965_v49  ;;  %v5787_v37 = vld [vmem:[#allocation14 + $0x3ec] sm:$0xf]  ;;  %v4758_v49 = vld [vmem:[#allocation14 + $0x3f8] sm:$0xf0] }
 0x353   :  { %3118 = vmatpush.bf16.msrb.mxu1 %v5093_v59  ;;  %3131 = vmatpush.bf16.msra.mxu2 %v5221_v28  ;;  %v4377_v59 = vor.u32 %v5691_v18, %v4374_v30  ;;  %v4505_v28 = vor.u32 %v5723_v14, %v4502_v20  ;;  %v4761_v35 = vor.u32 %v5787_v37, %v4758_v49  ;;  %v4582_v5 = vld [vmem:[#allocation14 + $0x298] sm:$0xf0]  ;;  %v5775_v58 = vld [vmem:[#allocation14 + $0x38c] sm:$0xf] }
 0x354   :  { %v4710_v7 = vld [vmem:[#allocation14 + $0x398] sm:$0xf0]  ;;  %v5675_v13 = vld [vmem:[#allocation14 + $0x6c] sm:$0xf] }
 0x355   :  { %v4310_v27 = vld [vmem:[#allocation14 + $0x78] sm:$0xf0]  ;;  %v4713_v53 = vor.u32 %v5775_v58, %v4710_v7  ;;  %v5707_v30 = vld [vmem:[#allocation14 + $0x16c] sm:$0xf] }
 0x356   :  { %3093 = vmatpush.bf16.msrb.mxu3 %v4821_v61  ;;  %3106 = vmatpush.bf16.msrb.mxu0 %v4949_v12  ;;  %v5751_v61 = vld [vmem:[#allocation14 + $0x2cc] sm:$0xf]  ;;  %v4614_v12 = vld [vmem:[#allocation14 + $0x2d8] sm:$0xf0] }
 0x357   :  { %3119 = vmatpush.bf16.msrb.mxu1 %v5077_v52  ;;  %3132 = vmatpush.bf16.msra.mxu2 %v5205_v40  ;;  %v4361_v52 = vor.u32 %v5687_v0, %v4358_v31  ;;  %v4489_v40 = vor.u32 %v5719_v36, %v4486_v38  ;;  %v4617_v42 = vor.u32 %v5751_v61, %v4614_v12  ;;  %v4438_v14 = vld [vmem:[#allocation14 + $0x178] sm:$0xf0]  ;;  %v5739_v20 = vld [vmem:[#allocation14 + $0x26c] sm:$0xf] }
 0x358   :  { %v5771_v24 = vld [vmem:[#allocation14 + $0x36c] sm:$0xf]  ;;  %v4694_v37 = vld [vmem:[#allocation14 + $0x378] sm:$0xf0] }
 0x359   :  { %v5671_v0 = vld [vmem:[#allocation14 + $0x4c] sm:$0xf]  ;;  %v4294_v31 = vld [vmem:[#allocation14 + $0x58] sm:$0xf0] }
 0x35a   :  { %3094 = vmatpush.bf16.msrb.mxu3 %v4805_v11  ;;  %3107 = vmatpush.bf16.msrb.mxu0 %v4933_v47  ;;  %v5747_v11 = vld [vmem:[#allocation14 + $0x2ac] sm:$0xf]  ;;  %v4598_v47 = vld [vmem:[#allocation14 + $0x2b8] sm:$0xf0] }
 0x35b   :  { %3120 = vmatpush.bf16.msrb.mxu1 %v5061_v50  ;;  %3133 = vmatpush.bf16.msra.mxu2 %v5189_v51  ;;  %v4345_v51 = vor.u32 %v5683_v56, %v4342_v23  ;;  %v4601_v62 = vor.u32 %v5747_v11, %v4598_v47  ;;  %v5703_v36 = vld [vmem:[#allocation14 + $0x14c] sm:$0xf]  ;;  %v4422_v38 = vld [vmem:[#allocation14 + $0x158] sm:$0xf0] }
 0x35c   :  { %v5735_v61 = vld [vmem:[#allocation14 + $0x24c] sm:$0xf]  ;;  %v4550_v12 = vld [vmem:[#allocation14 + $0x258] sm:$0xf0] }
 0x35d   :  { %v5767_v39 = vld [vmem:[#allocation14 + $0x34c] sm:$0xf]  ;;  %v4678_v16 = vld [vmem:[#allocation14 + $0x358] sm:$0xf0] }
 0x35e   :  { %3095 = vmatpush.bf16.msrb.mxu3 %v4789_v8  ;;  %3108 = vmatpush.bf16.msrb.mxu0 %v4917_v2  ;;  %v4454_v8 = vld [vmem:[#allocation14 + $0x198] sm:$0xf0]  ;;  %v5743_v2 = vld [vmem:[#allocation14 + $0x28c] sm:$0xf] }
 0x35f   :  { %3121 = vmatpush.bf16.msrb.mxu1 %v5045_v9  ;;  %3134 = vmatpush.bf16.msra.mxu2 %v5173_v10  ;;  %v4329_v9 = vor.u32 %v5679_v41, %v4326_v3  ;;  %v4457_v10 = vor.u32 %v5711_v63, %v4454_v8  ;;  %v4585_v15 = vor.u32 %v5743_v2, %v4582_v5  ;;  %v5667_v56 = vld [vmem:[#allocation14 + $0x2c] sm:$0xf]  ;;  %v4278_v23 = vld [vmem:[#allocation14 + $0x38] sm:$0xf0] }
 0x360   :  { %v5699_v45 = vld [vmem:[#allocation14 + $0x12c] sm:$0xf]  ;;  %v4406_v11 = vld [vmem:[#allocation14 + $0x138] sm:$0xf0]  ;;  %v4281_v41 = vor.u32 %v5667_v56, %v4278_v23 }
 0x361   :  { %v2851_v50 = vpop.f32.mrf.mxu0  ;;  %v5731_v47 = vld [vmem:[#allocation14 + $0x22c] sm:$0xf]  ;;  %v4534_v19 = vld [vmem:[#allocation14 + $0x238] sm:$0xf0]  ;;  %v4409_v3 = vor.u32 %v5699_v45, %v4406_v11 }
 0x362   :  { %3096 = vmatpush.bf16.msrb.mxu3 %v4773_v22  ;;  %3109 = vmatpush.bf16.msrb.mxu0 %v4901_v1  ;;  %v2864_v34 = vpop.f32.mrf.mxu1  ;;  %v4566_v1 = vld [vmem:[#allocation14 + $0x278] sm:$0xf0]  ;;  %v5695_v63 = vld [vmem:[#allocation14 + $0x10c] sm:$0xf]  ;;  %v4537_v2 = vor.u32 %v5731_v47, %v4534_v19 }
 0x363   :  { %3122 = vmatpush.bf16.msrb.mxu1 %v5029_v25  ;;  %3135 = vmatpush.bf16.msra.mxu2 %v5157_v26  ;;  %v4313_v26 = vor.u32 %v5675_v13, %v4310_v27  ;;  %v4390_v8 = vld [vmem:[#allocation14 + $0x118] sm:$0xf0]  ;;  %v5727_v58 = vld [vmem:[#allocation14 + $0x20c] sm:$0xf] }
 0x364   :  { %v4518_v7 = vld [vmem:[#allocation14 + $0x218] sm:$0xf0]  ;;  %v5819_v13 = vld [vmem:[#allocation14 + $0x4ec] sm:$0xf] }
 0x365   :  { %3097 = vmatmul.bf16.vlgmr.msrb.gmra.mxu3 %v6644_v4  ;;  %3110 = vmatmul.bf16.vlgmr.msrb.gmra.mxu0 %v6646_v60  ;;  %v4886_v27 = vld [vmem:[#allocation14 + $0x4f8] sm:$0xf0]  ;;  %v5843_v11 = vld [vmem:[#allocation14 + $0x5ac] sm:$0xf] }
 0x366   :  { %3141 = vmatpush.bf16.msra.mxu3 %v4377_v59  ;;  %3154 = vmatpush.bf16.msra.mxu0 %v4505_v28  ;;  %v4441_v59 = vor.u32 %v5707_v30, %v4438_v14  ;;  %v4393_v14 = vor.u32 %v5695_v63, %v4390_v8  ;;  %v4982_v47 = vld [vmem:[#allocation14 + $0x5b8] sm:$0xf0]  ;;  %v5807_v63 = vld [vmem:[#allocation14 + $0x48c] sm:$0xf] }
 0x367   :  { %3167 = vmatpush.bf16.msra.mxu1 %v4633_v33  ;;  %3180 = vmatpush.bf16.msrb.mxu2 %v4761_v35  ;;  %v2838_v18 = vpop.f32.mrf.mxu3  ;;  %v4569_v33 = vor.u32 %v5739_v20, %v4566_v1  ;;  %v4697_v35 = vor.u32 %v5771_v24, %v4694_v37  ;;  %v5142_v20 = vld [vmem:[#allocation14 + $0x6f8] sm:$0xf0]  ;;  %v4521_v24 = vor.u32 %v5727_v58, %v4518_v7  ;;  %v5871_v58 = vld [vmem:[#allocation14 + $0x68c] sm:$0xf] }
 0x368   :  { %3123 = vmatmul.bf16.vlgmr.msrb.gmra.mxu1 %v6648_v6  ;;  %3136 = vmatmul.bf16.vlgmr.msra.gmra.mxu2 %v6650_v17  ;;  %v2852_v21 = vadd.f32 %v2851_v50, %v2838_v18  ;;  %v6672_v22 = vpop.f32.mrf.mxu2  ;;  %v5763_v50 = vld [vmem:[#allocation14 + $0x32c] sm:$0xf]  ;;  %v5270_v1 = vld [vmem:[#allocation14 + $0x7f8] sm:$0xf0] }
 0x369   :  { %v2853_v49 = vpop.f32.mrf.mxu0  ;;  %v5883_v18 = vld [vmem:[#allocation14 + $0x6ec] sm:$0xf]  ;;  %v5110_v19 = vld [vmem:[#allocation14 + $0x6b8] sm:$0xf0] }
 0x36a   :  { %3142 = vmatpush.bf16.msra.mxu3 %v4361_v52  ;;  %3155 = vmatpush.bf16.msra.mxu0 %v4489_v40  ;;  %v6674_v25 = vadd.f32 %v2864_v34, %v2852_v21  ;;  %v2866_v28 = vpop.f32.mrf.mxu1  ;;  %v4297_v52 = vor.u32 %v5671_v0, %v4294_v31  ;;  %v4425_v40 = vor.u32 %v5703_v36, %v4422_v38  ;;  %v5663_v34 = vld [vmem:[#allocation14 + $0xc] sm:$0xf]  ;;  %v4870_v31 = vld [vmem:[#allocation14 + $0x4d8] sm:$0xf0] }
 0x36b   :  { %3168 = vmatpush.bf16.msra.mxu1 %v4617_v42  ;;  %3181 = vmatpush.bf16.msrb.mxu2 %v4745_v43  ;;  %v4553_v42 = vor.u32 %v5735_v61, %v4550_v12  ;;  %v4681_v43 = vor.u32 %v5767_v39, %v4678_v16  ;;  %v5915_v21 = vld [vmem:[#allocation14 + $0x7ec] sm:$0xf]  ;;  %v4998_v61 = vld [vmem:[#allocation14 + $0x5d8] sm:$0xf0] }
 0x36c   :  { %v5815_v0 = vld [vmem:[#allocation14 + $0x4cc] sm:$0xf]  ;;  %v5126_v16 = vld [vmem:[#allocation14 + $0x6d8] sm:$0xf0] }
 0x36d   :  { %v5847_v38 = vld [vmem:[#allocation14 + $0x5cc] sm:$0xf]  ;;  %v4873_v56 = vor.u32 %v5815_v0, %v4870_v31  ;;  %v4838_v8 = vld [vmem:[#allocation14 + $0x498] sm:$0xf0] }
 0x36e   :  { %3143 = vmatpush.bf16.msra.mxu3 %v4345_v51  ;;  %3156 = vmatpush.bf16.msra.mxu0 %v4473_v54  ;;  %v4662_v51 = vld [vmem:[#allocation14 + $0x338] sm:$0xf0]  ;;  %v5879_v12 = vld [vmem:[#allocation14 + $0x6cc] sm:$0xf]  ;;  %v5001_v23 = vor.u32 %v5847_v38, %v4998_v61 }
 0x36f   :  { %3169 = vmatpush.bf16.msra.mxu1 %v4601_v62  ;;  %3182 = vmatpush.bf16.msrb.mxu2 %v4729_v55  ;;  %v2840_v44 = vpop.f32.mrf.mxu3  ;;  %v4262_v55 = vld [vmem:[#allocation14 + $0x18] sm:$0xf0]  ;;  %v4665_v5 = vor.u32 %v5763_v50, %v4662_v51  ;;  %v5907_v50 = vld [vmem:[#allocation14 + $0x7ac] sm:$0xf] }
 0x370   :  { %v2879_v48 = vpop.f32.mrf.mxu2  ;;  %v4265_v30 = vor.u32 %v5663_v34, %v4262_v55  ;;  %v5129_v44 = vor.u32 %v5879_v12, %v5126_v16  ;;  %v5238_v51 = vld [vmem:[#allocation14 + $0x7b8] sm:$0xf0]  ;;  %v5799_v0 = vld [vmem:[#allocation14 + $0x44c] sm:$0xf] }
 0x371   :  { %v6676_v54 = vpop.f32.mrf.mxu0  ;;  %v5875_v48 = vld [vmem:[#allocation14 + $0x6ac] sm:$0xf]  ;;  %v5094_v7 = vld [vmem:[#allocation14 + $0x698] sm:$0xf0] }
 0x372   :  { %3144 = vmatpush.bf16.msra.mxu3 %v4329_v9  ;;  %3157 = vmatpush.bf16.msra.mxu0 %v4457_v10  ;;  %v6678_v62 = vpop.f32.mrf.mxu1  ;;  %v5759_v9 = vld [vmem:[#allocation14 + $0x30c] sm:$0xf]  ;;  %v4646_v10 = vld [vmem:[#allocation14 + $0x318] sm:$0xf0] }
 0x373   :  { %3170 = vmatpush.bf16.msra.mxu1 %v4585_v15  ;;  %3183 = vmatpush.bf16.msrb.mxu2 %v4713_v53  ;;  %v5851_v15 = vld [vmem:[#allocation14 + $0x5ec] sm:$0xf]  ;;  %v5014_v53 = vld [vmem:[#allocation14 + $0x5f8] sm:$0xf0]  ;;  %v4649_v37 = vor.u32 %v5759_v9, %v4646_v10 }
 0x374   :  { %v5903_v9 = vld [vmem:[#allocation14 + $0x78c] sm:$0xf]  ;;  %v4806_v31 = vld [vmem:[#allocation14 + $0x458] sm:$0xf0] }
 0x375   :  { %v5831_v38 = vld [vmem:[#allocation14 + $0x54c] sm:$0xf]  ;;  %v4934_v61 = vld [vmem:[#allocation14 + $0x558] sm:$0xf0] }
 0x376   :  { %3145 = vmatpush.bf16.msra.mxu3 %v4313_v26  ;;  %3158 = vmatpush.bf16.msra.mxu0 %v4441_v59  ;;  %v4889_v26 = vor.u32 %v5819_v13, %v4886_v27  ;;  %v5017_v59 = vor.u32 %v5851_v15, %v5014_v53  ;;  %v4841_v13 = vor.u32 %v5807_v63, %v4838_v8  ;;  %v5803_v15 = vld [vmem:[#allocation14 + $0x46c] sm:$0xf]  ;;  %v4822_v53 = vld [vmem:[#allocation14 + $0x478] sm:$0xf0] }
 0x377   :  { %3171 = vmatpush.bf16.msra.mxu1 %v4569_v33  ;;  %3184 = vmatpush.bf16.msrb.mxu2 %v4697_v35  ;;  %v6680_v49 = vpop.f32.mrf.mxu3  ;;  %v5145_v33 = vor.u32 %v5883_v18, %v5142_v20  ;;  %v5273_v35 = vor.u32 %v5915_v21, %v5270_v1  ;;  %v5097_v18 = vor.u32 %v5871_v58, %v5094_v7  ;;  %v4950_v20 = vld [vmem:[#allocation14 + $0x578] sm:$0xf0]  ;;  %v5867_v21 = vld [vmem:[#allocation14 + $0x66c] sm:$0xf] }
 0x378   :  { %v6682_v28 = vpop.f32.mrf.mxu2  ;;  %v5078_v1 = vld [vmem:[#allocation14 + $0x678] sm:$0xf0]  ;;  %v5863_v12 = vld [vmem:[#allocation14 + $0x64c] sm:$0xf] }
 0x379   :  { %v2905_v36 = vpop.f32.mrf.mxu0  ;;  %v5062_v16 = vld [vmem:[#allocation14 + $0x658] sm:$0xf0]  ;;  %v5791_v63 = vld [vmem:[#allocation14 + $0x40c] sm:$0xf] }
 0x37a   :  { %3146 = vmatpush.bf16.msra.mxu3 %v4297_v52  ;;  %3159 = vmatpush.bf16.msra.mxu0 %v4425_v40  ;;  %v2918_v39 = vpop.f32.mrf.mxu1  ;;  %v5911_v52 = vld [vmem:[#allocation14 + $0x7cc] sm:$0xf]  ;;  %v5254_v40 = vld [vmem:[#allocation14 + $0x7d8] sm:$0xf0] }
 0x37b   :  { %3172 = vmatpush.bf16.msra.mxu1 %v4553_v42  ;;  %3185 = vmatpush.bf16.msrb.mxu2 %v4681_v43  ;;  %v5811_v42 = vld [vmem:[#allocation14 + $0x4ac] sm:$0xf]  ;;  %v4854_v43 = vld [vmem:[#allocation14 + $0x4b8] sm:$0xf0]  ;;  %v5257_v45 = vor.u32 %v5911_v52, %v5254_v40 }
 0x37c   :  { %v5895_v52 = vld [vmem:[#allocation14 + $0x74c] sm:$0xf]  ;;  %v5190_v40 = vld [vmem:[#allocation14 + $0x758] sm:$0xf0] }
 0x37d   :  { %v4774_v8 = vld [vmem:[#allocation14 + $0x418] sm:$0xf0]  ;;  %v5855_v7 = vld [vmem:[#allocation14 + $0x60c] sm:$0xf] }
 0x37e   :  { %3147 = vmatpush.bf16.msra.mxu3 %v4281_v41  ;;  %3160 = vmatpush.bf16.msra.mxu0 %v4409_v3  ;;  %v4857_v41 = vor.u32 %v5811_v42, %v4854_v43  ;;  %v4985_v3 = vor.u32 %v5843_v11, %v4982_v47  ;;  %v4809_v42 = vor.u32 %v5799_v0, %v4806_v31  ;;  %v4902_v58 = vld [vmem:[#allocation14 + $0x518] sm:$0xf0]  ;;  %v5931_v0 = vld [vmem:[#allocation15 + $0x64] sm:$0xf0]  ;;  %v5388_v31 = vld [vmem:[#allocation15 + $0xe0] sm:$0xf] }
 0x37f   :  { %3173 = vmatpush.bf16.msra.mxu1 %v4537_v2  ;;  %3186 = vmatpush.bf16.msrb.mxu2 %v4665_v5  ;;  %v2892_v34 = vpop.f32.mrf.mxu3  ;;  %v5241_v2 = vor.u32 %v5907_v50, %v5238_v51  ;;  %v4966_v5 = vld [vmem:[#allocation14 + $0x598] sm:$0xf0]  ;;  %v4937_v43 = vor.u32 %v5831_v38, %v4934_v61  ;;  %v5065_v11 = vor.u32 %v5863_v12, %v5062_v16  ;;  %v5859_v50 = vld [vmem:[#allocation14 + $0x62c] sm:$0xf]  ;;  %v5316_v12 = vld [vmem:[#allocation15 + $0x50] sm:$0xf] }
 0x380   :  { %v2931_v55 = vpop.f32.mrf.mxu2  ;;  %v5193_v47 = vor.u32 %v5895_v52, %v5190_v40  ;;  %v5046_v51 = vld [vmem:[#allocation14 + $0x638] sm:$0xf0]  ;;  %v5891_v34 = vld [vmem:[#allocation14 + $0x72c] sm:$0xf]  ;;  %v5929_v16 = vld [vmem:[#allocation15 + $0x54] sm:$0xf0] }
 0x381   :  { %v5317_v40 = vor.u32 %v5929_v16, %v5316_v12  ;;  %v5932_v16 = vld [vmem:[#allocation15 + $0x74] sm:$0xf] }
 0x382   :  { %3148 = vmatpush.bf16.msra.mxu3 %v4265_v30  ;;  %3161 = vmatpush.bf16.msra.mxu0 %v4393_v14  ;;  %v6688_v10 = vpop.f32.mrf.mxu0  ;;  %v5835_v14 = vld [vmem:[#allocation14 + $0x56c] sm:$0xf] }
 0x383   :  { %3174 = vmatpush.bf16.msra.mxu1 %v4521_v24  ;;  %3187 = vmatpush.bf16.msrb.mxu2 %v4649_v37  ;;  %v5899_v24 = vld [vmem:[#allocation14 + $0x76c] sm:$0xf]  ;;  %v5206_v37 = vld [vmem:[#allocation14 + $0x778] sm:$0xf0] }
 0x385   :  { %3149 = vmatmul.bf16.vlgmr.msra.gmra.mxu3 %v6632_v32  ;;  %3162 = vmatmul.bf16.vlgmr.msra.gmra.mxu0 %v6634_v29  ;;  %v5113_v32 = vor.u32 %v5875_v48, %v5110_v19  ;;  %v5839_v29 = vld [vmem:[#allocation14 + $0x58c] sm:$0xf]  ;;  %v4918_v19 = vld [vmem:[#allocation14 + $0x538] sm:$0xf0] }
 0x386   :  { %3193 = vmatpush.bf16.msrb.mxu3 %v4889_v26  ;;  %3206 = vmatpush.bf16.msrb.mxu0 %v5017_v59  ;;  %v4969_v27 = vor.u32 %v5839_v29, %v4966_v5  ;;  %v4825_v26 = vor.u32 %v5803_v15, %v4822_v53  ;;  %v4953_v59 = vor.u32 %v5835_v14, %v4950_v20  ;;  %v5827_v48 = vld [vmem:[#allocation14 + $0x52c] sm:$0xf]  ;;  %v5332_v15 = vld [vmem:[#allocation15 + $0x70] sm:$0xf]  ;;  %v5933_v53 = vld [vmem:[#allocation15 + $0x74] sm:$0xf0] }
 0x387   :  { %3219 = vmatpush.bf16.msrb.mxu1 %v5145_v33  ;;  %3232 = vmatpush.bf16.msra.mxu2 %v5273_v35  ;;  %v5081_v33 = vor.u32 %v5867_v21, %v5078_v1  ;;  %v5209_v35 = vor.u32 %v5899_v24, %v5206_v37  ;;  %v4921_v55 = vor.u32 %v5827_v48, %v4918_v19  ;;  %v5941_v48 = vld [vmem:[#allocation15 + $0xb4] sm:$0xf0] }
 0x388   :  { %3175 = vmatmul.bf16.vlgmr.msra.gmra.mxu1 %v6636_v46  ;;  %3188 = vmatmul.bf16.vlgmr.msrb.gmra.mxu2 %v6638_v57  ;;  %v5222_v46 = vld [vmem:[#allocation14 + $0x798] sm:$0xf0]  ;;  %v6690_v57 = vpop.f32.mrf.mxu1  ;;  %v6692_v36 = vpop.f32.mrf.mxu3  ;;  %v4777_v14 = vor.u32 %v5791_v63, %v4774_v8  ;;  %v5333_v24 = vor.u32 %v5933_v53, %v5332_v15  ;;  %v5939_v8 = vld [vmem:[#allocation15 + $0xa4] sm:$0xf0]  ;;  %v5284_v15 = vld [vmem:[#allocation15 + $0x10] sm:$0xf] }
 0x389   :  { %v5225_v30 = vor.u32 %v5903_v9, %v5222_v46  ;;  %v5030_v9 = vld [vmem:[#allocation14 + $0x618] sm:$0xf0]  ;;  %v2956_v52 = vadd.f32 %v6688_v10, %v6692_v36  ;;  %v5921_v53 = vld [vmem:[#allocation15 + $0x14] sm:$0xf0] }
 0x38a   :  { %3194 = vmatpush.bf16.msrb.mxu3 %v4873_v56  ;;  %3207 = vmatpush.bf16.msrb.mxu0 %v5001_v23  ;;  %v2957_v56 = vpop.f32.mrf.mxu0  ;;  %v5033_v21 = vor.u32 %v5855_v7, %v5030_v9 }
 0x38b   :  { %3220 = vmatpush.bf16.msrb.mxu1 %v5129_v44  ;;  %3233 = vmatpush.bf16.msra.mxu2 %v5257_v45  ;;  %v6694_v39 = vpop.f32.mrf.mxu2  ;;  %v5795_v44 = vld [vmem:[#allocation14 + $0x42c] sm:$0xf]  ;;  %v4790_v45 = vld [vmem:[#allocation14 + $0x438] sm:$0xf0] }
 0x38e   :  { %3195 = vmatpush.bf16.msrb.mxu3 %v4857_v41  ;;  %3208 = vmatpush.bf16.msrb.mxu0 %v4985_v3  ;;  %v5174_v41 = vld [vmem:[#allocation14 + $0x738] sm:$0xf0]  ;;  %v4793_v3 = vor.u32 %v5795_v44, %v4790_v45  ;;  %v5300_v45 = vld [vmem:[#allocation15 + $0x30] sm:$0xf] }
 0x38f   :  { %3221 = vmatpush.bf16.msrb.mxu1 %v5113_v32  ;;  %3234 = vmatpush.bf16.msra.mxu2 %v5241_v2  ;;  %v5823_v32 = vld [vmem:[#allocation14 + $0x50c] sm:$0xf]  ;;  %v5049_v2 = vor.u32 %v5859_v50, %v5046_v51  ;;  %v5177_v29 = vor.u32 %v5891_v34, %v5174_v41  ;;  %v6718_v50 = vld [vmem:[%s6769_s12] sm:$0xf] }
 0x390   :  { %v2970_v23 = vpop.f32.mrf.mxu1  ;;  %v2944_v5 = vpop.f32.mrf.mxu3  ;;  %v4905_v20 = vor.u32 %v5823_v32, %v4902_v58  ;;  %v5292_v41 = vld [vmem:[#allocation15 + $0x20] sm:$0xf]  ;;  %v5460_v32 = vld [vmem:[#allocation15 + $0x170] sm:$0xf]  ;;  %v3261_v7 = vperm.slane %v6718_v50, 0 }
 0x391   :  { %v5308_v23 = vld [vmem:[#allocation15 + $0x40] sm:$0xf] }
 0x392   :  { %3196 = vmatpush.bf16.msrb.mxu3 %v4841_v13  ;;  %3209 = vmatpush.bf16.msrb.mxu0 %v4969_v27  ;;  %v5887_v13 = vld [vmem:[#allocation14 + $0x70c] sm:$0xf]  ;;  %v5158_v27 = vld [vmem:[#allocation14 + $0x718] sm:$0xf0] }
 0x393   :  { %3222 = vmatpush.bf16.msrb.mxu1 %v5097_v18  ;;  %3235 = vmatpush.bf16.msra.mxu2 %v5225_v30  ;;  %v2983_v46 = vpop.f32.mrf.mxu2  ;;  %v5396_v18 = vld [vmem:[#allocation15 + $0xf0] sm:$0xf]  ;;  %v5949_v30 = vld [vmem:[#allocation15 + $0xf4] sm:$0xf0]  ;;  %v5161_v1 = vor.u32 %v5887_v13, %v5158_v27 }
 0x394   :  { %v5397_v37 = vor.u32 %v5949_v30, %v5396_v18  ;;  %v5348_v18 = vld [vmem:[#allocation15 + $0x90] sm:$0xf]  ;;  %v5937_v30 = vld [vmem:[#allocation15 + $0x94] sm:$0xf0] }
 0x396   :  { %3197 = vmatpush.bf16.msrb.mxu3 %v4825_v26  ;;  %3210 = vmatpush.bf16.msrb.mxu0 %v4953_v59  ;;  %v5324_v26 = vld [vmem:[#allocation15 + $0x60] sm:$0xf]  ;;  %v2878_v59 = vadd.f32 %v6672_v22, %v6674_v25  ;;  %v5380_v22 = vld [vmem:[#allocation15 + $0xd0] sm:$0xf]  ;;  %v5945_v25 = vld [vmem:[#allocation15 + $0xd4] sm:$0xf0] }
 0x397   :  { %3223 = vmatpush.bf16.msrb.mxu1 %v5081_v33  ;;  %3236 = vmatpush.bf16.msra.mxu2 %v5209_v35  ;;  %v5947_v33 = vld [vmem:[#allocation15 + $0xe4] sm:$0xf0]  ;;  %v5325_v38 = vor.u32 %v5931_v0, %v5324_v26  ;;  %v5381_v56 = vor.u32 %v5945_v25, %v5380_v22  ;;  %v3262_v26 = vperm.slane %v6718_v50, 1  ;;  %v5444_v22 = vld [vmem:[#allocation15 + $0x150] sm:$0xf] }
 0x398   :  { %v2891_v35 = vadd.f32 %v6680_v49, %v2878_v59  ;;  %v5389_v61 = vor.u32 %v5947_v33, %v5388_v31  ;;  %v5276_v59 = vld [vmem:[#allocation15] sm:$0xf]  ;;  %v5285_v31 = vor.u32 %v5921_v53, %v5284_v15  ;;  %v5349_v33 = vor.u32 %v5937_v30, %v5348_v18  ;;  %v5961_v25 = vld [vmem:[#allocation15 + $0x154] sm:$0xf0]  ;;  %v5412_v15 = vld [vmem:[#allocation15 + $0x110] sm:$0xf] }
 0x399   :  { %v5953_v53 = vld [vmem:[#allocation15 + $0x114] sm:$0xf0] }
 0x39a   :  { %3198 = vmatpush.bf16.msrb.mxu3 %v4809_v42  ;;  %3211 = vmatpush.bf16.msrb.mxu0 %v4937_v43  ;;  %v2904_v49 = vadd.f32 %v6676_v54, %v2891_v35  ;;  %v5372_v42 = vld [vmem:[#allocation15 + $0xc0] sm:$0xf]  ;;  %v5919_v35 = vld [vmem:[#allocation15 + $0x4] sm:$0xf0] }
 0x39b   :  { %3224 = vmatpush.bf16.msrb.mxu1 %v5065_v11  ;;  %3237 = vmatpush.bf16.msra.mxu2 %v5193_v47  ;;  %v5925_v11 = vld [vmem:[#allocation15 + $0x34] sm:$0xf0]  ;;  %v5364_v47 = vld [vmem:[#allocation15 + $0xb0] sm:$0xf] }
 0x39c   :  { %v2917_v43 = vadd.f32 %v6678_v62, %v2904_v49  ;;  %v5301_v51 = vor.u32 %v5925_v11, %v5300_v45  ;;  %v5365_v34 = vor.u32 %v5941_v48, %v5364_v47  ;;  %v5436_v45 = vld [vmem:[#allocation15 + $0x140] sm:$0xf]  ;;  %v5959_v11 = vld [vmem:[#allocation15 + $0x144] sm:$0xf0]  ;;  %v5946_v48 = vld [vmem:[#allocation15 + $0xe4] sm:$0xf] }
 0x39e   :  { %3199 = vmatpush.bf16.msrb.mxu3 %v4793_v3  ;;  %3212 = vmatpush.bf16.msrb.mxu0 %v4921_v55  ;;  %v2930_v19 = vadd.f32 %v6682_v28, %v2917_v43  ;;  %v5923_v3 = vld [vmem:[#allocation15 + $0x24] sm:$0xf0]  ;;  %v5356_v55 = vld [vmem:[#allocation15 + $0xa0] sm:$0xf]  ;;  %v5965_v28 = vld [vmem:[#allocation15 + $0x174] sm:$0xf0]  ;;  %v5277_v43 = vor.u32 %v5919_v35, %v5276_v59 }
 0x39f   :  { %3225 = vmatpush.bf16.msrb.mxu1 %v5049_v2  ;;  %3238 = vmatpush.bf16.msra.mxu2 %v5177_v29  ;;  %v5461_v5 = vor.u32 %v5965_v28, %v5460_v32  ;;  %v5293_v13 = vor.u32 %v5923_v3, %v5292_v41  ;;  %v5357_v27 = vor.u32 %v5939_v8, %v5356_v55  ;;  %v5318_v8 = vld [vmem:[#allocation15 + $0x58] sm:$0xf0]  ;;  %v5944_v32 = vld [vmem:[#allocation15 + $0xd4] sm:$0xf]  ;;  %v5922_v59 = vld [vmem:[#allocation15 + $0x24] sm:$0xf] }
 0x3a0   :  { %v5382_v28 = vld [vmem:[#allocation15 + $0xd8] sm:$0xf0]  ;;  %v5938_v35 = vld [vmem:[#allocation15 + $0xa4] sm:$0xf] }
 0x3a2   :  { %3200 = vmatpush.bf16.msrb.mxu3 %v4777_v14  ;;  %3213 = vmatpush.bf16.msrb.mxu0 %v4905_v20  ;;  %v3007_v44 = vpop.f32.mrf.mxu0  ;;  %v5452_v14 = vld [vmem:[#allocation15 + $0x160] sm:$0xf]  ;;  %v5963_v20 = vld [vmem:[#allocation15 + $0x164] sm:$0xf0] }
 0x3a3   :  { %3226 = vmatpush.bf16.msrb.mxu1 %v5033_v21  ;;  %3239 = vmatpush.bf16.msra.mxu2 %v5161_v1 }
 0x3a5   :  { %3201 = vmatmul.bf16.vlgmr.msrb.gmra.mxu3 %v6644_v4  ;;  %3214 = vmatmul.bf16.vlgmr.msrb.gmra.mxu0 %v6646_v60  ;;  %v5927_v4 = vld [vmem:[#allocation15 + $0x44] sm:$0xf0]  ;;  %v3020_v54 = vpop.f32.mrf.mxu1 }
 0x3a6   :  { %3665 = vmatpush.bf16.msra.mxu3 %v5333_v24  ;;  %3678 = vmatpush.bf16.msra.mxu0 %v5397_v37  ;;  %v5943_v60 = vld [vmem:[#allocation15 + $0xc4] sm:$0xf0]  ;;  %v5309_v10 = vor.u32 %v5927_v4, %v5308_v23  ;;  %v5453_v24 = vor.u32 %v5963_v20, %v5452_v14  ;;  %v5398_v23 = vld [vmem:[#allocation15 + $0xf8] sm:$0xf0]  ;;  %v5445_v4 = vor.u32 %v5961_v25, %v5444_v22  ;;  %v5924_v20 = vld [vmem:[#allocation15 + $0x34] sm:$0xf] }
 0x3a7   :  { %3227 = vmatmul.bf16.vlgmr.msrb.gmra.mxu1 %v6648_v6  ;;  %3240 = vmatmul.bf16.vlgmr.msra.gmra.mxu2 %v6650_v17  ;;  %v6710_v6 = vld [vmem:[%s6768_s11] sm:$0xf]  ;;  %v2969_v17 = vadd.f32 %v6690_v57, %v2956_v52  ;;  %v5373_v36 = vor.u32 %v5943_v60, %v5372_v42  ;;  %v5964_v22 = vld [vmem:[#allocation15 + $0x174] sm:$0xf]  ;;  %v5462_v25 = vld [vmem:[#allocation15 + $0x178] sm:$0xf0] }
 0x3a8   :  { %v3247_v62 = vperm.slane %v6710_v6, 0  ;;  %v2994_v63 = vpop.f32.mrf.mxu3  ;;  %3691 = vmatpush.bf16.msra.mxu1 %v5461_v5  ;;  %v3248_v1 = vperm.slane %v6710_v6, 1  ;;  %v5955_v5 = vld [vmem:[#allocation15 + $0x124] sm:$0xf0] }
 0x3a9   :  { %v2982_v57 = vadd.f32 %v6694_v39, %v2969_v17  ;;  %v5930_v17 = vld [vmem:[#allocation15 + $0x64] sm:$0xf] }
 0x3aa   :  { %3666 = vmatpush.bf16.msra.mxu3 %v5325_v38  ;;  %3679 = vmatpush.bf16.msra.mxu0 %v5389_v61  ;;  %v3255_v58 = vmul.f32 %v3247_v62, %v2930_v19  ;;  %v3009_v9 = vpop.f32.mrf.mxu0  ;;  %v5340_v38 = vld [vmem:[#allocation15 + $0x80] sm:$0xf]  ;;  %v5935_v61 = vld [vmem:[#allocation15 + $0x84] sm:$0xf0]  ;;  %v5390_v19 = vld [vmem:[#allocation15 + $0xe8] sm:$0xf0]  ;;  %v5437_v62 = vor.u32 %v5959_v11, %v5436_v45 }
 0x3ab   :  { %v2995_v2 = vadd.f32 %v2994_v63, %v2982_v57  ;;  %v3033_v29 = vpop.f32.mrf.mxu2  ;;  %v5393_v55 = vor.u32 %v5946_v48, %v5390_v19  ;;  %v5928_v63 = vld [vmem:[#allocation15 + $0x54] sm:$0xf]  ;;  %v5926_v9 = vld [vmem:[#allocation15 + $0x44] sm:$0xf]  ;;  %v5278_v48 = vld [vmem:[#allocation15 + $0x8] sm:$0xf0] }
 0x3ac   :  { %v3269_v37 = vadd.f32 %v3261_v7, %v3255_v58  ;;  %3692 = vmatpush.bf16.msra.mxu1 %v5453_v24  ;;  %v5321_v58 = vor.u32 %v5928_v63, %v5318_v8  ;;  %v5385_v7 = vor.u32 %v5944_v32, %v5382_v28  ;;  %v5940_v24 = vld [vmem:[#allocation15 + $0xb4] sm:$0xf]  ;;  %v5934_v19 = vld [vmem:[#allocation15 + $0x84] sm:$0xf] }
 0x3ad   :  { %v3008_v39 = vadd.f32 %v3007_v44, %v2995_v2  ;;  %v3022_v46 = vpop.f32.mrf.mxu1  ;;  %v5341_v44 = vor.u32 %v5935_v61, %v5340_v38  ;;  %v5404_v38 = vld [vmem:[#allocation15 + $0x100] sm:$0xf]  ;;  %v5951_v61 = vld [vmem:[#allocation15 + $0x104] sm:$0xf0]  ;;  %v5958_v28 = vld [vmem:[#allocation15 + $0x144] sm:$0xf] }
 0x3ae   :  { %3667 = vmatpush.bf16.msra.mxu3 %v5317_v40  ;;  %3680 = vmatpush.bf16.msra.mxu0 %v5381_v56  ;;  %v5334_v40 = vld [vmem:[#allocation15 + $0x78] sm:$0xf0]  ;;  %v5948_v56 = vld [vmem:[#allocation15 + $0xf4] sm:$0xf]  ;;  %v3273_v42 = vmax.f32 %v3269_v37, 0.0 }
 0x3af   :  { %v3021_v21 = vadd.f32 %v3020_v54, %v3008_v39  ;;  %v5337_v54 = vor.u32 %v5932_v16, %v5334_v40  ;;  %v5310_v39 = vld [vmem:[#allocation15 + $0x48] sm:$0xf0]  ;;  %v5942_v46 = vld [vmem:[#allocation15 + $0xc4] sm:$0xf]  ;;  %v5366_v37 = vld [vmem:[#allocation15 + $0xb8] sm:$0xf0]  ;;  %v5405_v16 = vor.u32 %v5951_v61, %v5404_v38 }
 0x3b0   :  { %v2996_v12 = vpop.f32.mrf.mxu3  ;;  %3693 = vmatpush.bf16.msra.mxu1 %v5445_v4  ;;  %v6726_v41 = vpack.c.bf16 %v3273_v42, %v3273_v42  ;;  %v5313_v30 = vor.u32 %v5926_v9, %v5310_v39  ;;  %v5920_v42 = vld [vmem:[#allocation15 + $0x14] sm:$0xf]  ;;  %v5954_v9 = vld [vmem:[#allocation15 + $0x124] sm:$0xf]  ;;  %v5422_v39 = vld [vmem:[#allocation15 + $0x128] sm:$0xf0] }
 0x3b1   :  { %v3034_v0 = vadd.f32 %v3033_v29, %v3021_v21  ;;  %v5420_v29 = vld [vmem:[#allocation15 + $0x120] sm:$0xf]  ;;  %v5358_v12 = vld [vmem:[#allocation15 + $0xa8] sm:$0xf0]  ;;  %v5979_v38 = vld [vmem:[#allocation15 + $0x1e4] sm:$0xf0] }
 0x3b2   :  { %3668 = vmatpush.bf16.msra.mxu3 %v5309_v10  ;;  %3681 = vmatpush.bf16.msra.mxu0 %v5373_v36  ;;  %v5401_v10 = vor.u32 %v5948_v56, %v5398_v23  ;;  %v5326_v36 = vld [vmem:[#allocation15 + $0x68] sm:$0xf0]  ;;  %v5361_v4 = vor.u32 %v5938_v35, %v5358_v12  ;;  %v5516_v35 = vld [vmem:[#allocation15 + $0x1e0] sm:$0xf] }
 0x3b3   :  { %v3256_v49 = vmul.f32 %v3248_v1, %v3034_v0  ;;  %v3035_v52 = vpop.f32.mrf.mxu2  ;;  %v5329_v3 = vor.u32 %v5930_v17, %v5326_v36  ;;  %v5302_v1 = vld [vmem:[#allocation15 + $0x38] sm:$0xf0]  ;;  %v5294_v0 = vld [vmem:[#allocation15 + $0x28] sm:$0xf0]  ;;  %v5517_v12 = vor.u32 %v5979_v38, %v5516_v35 }
 0x3b4   :  { %3694 = vmatpush.bf16.msra.mxu1 %v5437_v62  ;;  %v5465_v52 = vor.u32 %v5964_v22, %v5462_v25  ;;  %v5297_v23 = vor.u32 %v5922_v59, %v5294_v0  ;;  %v5350_v17 = vld [vmem:[#allocation15 + $0x98] sm:$0xf0]  ;;  %v5342_v62 = vld [vmem:[#allocation15 + $0x88] sm:$0xf0]  ;;  %v3249_v22 = vperm.slane %v6710_v6, 2 }
 0x3b5   :  { %v3270_v60 = vadd.f32 %v3262_v26, %v3256_v49  ;;  %v5413_v26 = vor.u32 %v5953_v53, %v5412_v15  ;;  %v5345_v32 = vor.u32 %v5934_v19, %v5342_v62  ;;  %v5414_v15 = vld [vmem:[#allocation15 + $0x118] sm:$0xf0]  ;;  %v5508_v25 = vld [vmem:[#allocation15 + $0x1d0] sm:$0xf] }
 0x3b6   :  { %3669 = vmatpush.bf16.msra.mxu3 %v5301_v51  ;;  %3682 = vmatpush.bf16.msra.mxu0 %v5365_v34  ;;  %v5428_v51 = vld [vmem:[#allocation15 + $0x130] sm:$0xf]  ;;  %v5957_v34 = vld [vmem:[#allocation15 + $0x134] sm:$0xf0] }
 0x3b7   :  { %v3274_v47 = vmax.f32 %v3270_v60, 0.0  ;;  %v5429_v2 = vor.u32 %v5957_v34, %v5428_v51  ;;  %v5286_v60 = vld [vmem:[#allocation15 + $0x18] sm:$0xf0]  ;;  %v5960_v51 = vld [vmem:[#allocation15 + $0x154] sm:$0xf] }
 0x3b8   :  { %v5289_v45 = vor.u32 %v5920_v42, %v5286_v60  ;;  %v5446_v34 = vld [vmem:[#allocation15 + $0x158] sm:$0xf0]  ;;  %v5476_v62 = vld [vmem:[#allocation15 + $0x190] sm:$0xf] }
 0x3b9   :  { %v6724_v57 = vpack.c.bf16 %v3274_v47, %v3274_v47  ;;  %3695 = vmatpush.bf16.msra.mxu1 %v5429_v2  ;;  %v5918_v47 = vld [vmem:[#allocation15 + $0x4] sm:$0xf]  ;;  %v5438_v2 = vld [vmem:[#allocation15 + $0x148] sm:$0xf0] }
 0x3ba   :  { %3670 = vmatpush.bf16.msra.mxu3 %v5293_v13  ;;  %3683 = vmatpush.bf16.msra.mxu0 %v5357_v27  ;;  %v5374_v13 = vld [vmem:[#allocation15 + $0xc8] sm:$0xf0]  ;;  %v5421_v27 = vor.u32 %v5955_v5, %v5420_v29  ;;  %v5281_v8 = vor.u32 %v5918_v47, %v5278_v48  ;;  %v5441_v29 = vor.u32 %v5958_v28, %v5438_v2  ;;  %v5956_v5 = vld [vmem:[#allocation15 + $0x134] sm:$0xf]  ;;  %v5971_v47 = vld [vmem:[#allocation15 + $0x1a4] sm:$0xf0] }
 0x3bb   :  { %v5377_v14 = vor.u32 %v5942_v46, %v5374_v13  ;;  %v5425_v46 = vor.u32 %v5954_v9, %v5422_v39  ;;  %v5980_v28 = vld [vmem:[#allocation15 + $0x1f4] sm:$0xf]  ;;  %v5526_v2 = vld [vmem:[#allocation15 + $0x1f8] sm:$0xf0]  ;;  %v5518_v9 = vld [vmem:[#allocation15 + $0x1e8] sm:$0xf0] }
 0x3bd   :  { %3696 = vmatpush.bf16.msra.mxu1 %v5421_v27  ;;  %v5952_v27 = vld [vmem:[#allocation15 + $0x114] sm:$0xf] }
 0x3be   :  { %3671 = vmatpush.bf16.msra.mxu3 %v5285_v31  ;;  %3684 = vmatpush.bf16.msra.mxu0 %v5349_v33  ;;  %v5305_v31 = vor.u32 %v5924_v20, %v5302_v1  ;;  %v5369_v33 = vor.u32 %v5940_v24, %v5366_v37  ;;  %v5950_v1 = vld [vmem:[#allocation15 + $0x104] sm:$0xf]  ;;  %v5406_v24 = vld [vmem:[#allocation15 + $0x108] sm:$0xf0]  ;;  %v5524_v37 = vld [vmem:[#allocation15 + $0x1f0] sm:$0xf] }
 0x3c1   :  { %3697 = vmatpush.bf16.msra.mxu1 %v5413_v26 }
 0x3c2   :  { %3672 = vmatpush.bf16.msra.mxu3 %v5277_v43  ;;  %3685 = vmatpush.bf16.msra.mxu0 %v5341_v44  ;;  %v6730_v18 = vpop.f32.mrf.mxu0  ;;  %v5936_v43 = vld [vmem:[#allocation15 + $0x94] sm:$0xf] }
 0x3c3   :  { %v5353_v11 = vor.u32 %v5936_v43, %v5350_v17  ;;  %v5492_v17 = vld [vmem:[#allocation15 + $0x1b0] sm:$0xf] }
 0x3c5   :  { %3673 = vmatmul.bf16.vlgmr.msra.gmra.mxu3 %v6726_v41  ;;  %3686 = vmatmul.bf16.vlgmr.msra.gmra.mxu0 %v6724_v57  ;;  %v6732_v21 = vpop.f32.mrf.mxu1 }
 0x3c6   :  { %3717 = vmatpush.bf16.msrb.mxu3 %v5337_v54  ;;  %3730 = vmatpush.bf16.msrb.mxu0 %v5401_v10  ;;  %v5962_v54 = vld [vmem:[#allocation15 + $0x164] sm:$0xf]  ;;  %v5454_v10 = vld [vmem:[#allocation15 + $0x168] sm:$0xf0] }
 0x3c7   :  { %3698 = vmatpush.bf16.msra.mxu1 %v5405_v16  ;;  %v5457_v36 = vor.u32 %v5962_v54, %v5454_v10  ;;  %v5973_v54 = vld [vmem:[#allocation15 + $0x1b4] sm:$0xf0] }
 0x3c8   :  { %v3046_v49 = vpop.f32.mrf.mxu3 }
 0x3c9   :  { %v3060_v13 = vadd.f32 %v6730_v18, %v3046_v49  ;;  %v5977_v49 = vld [vmem:[#allocation15 + $0x1d4] sm:$0xf0] }
 0x3ca   :  { %3718 = vmatpush.bf16.msrb.mxu3 %v5329_v3  ;;  %3731 = vmatpush.bf16.msrb.mxu0 %v5393_v55  ;;  %v3061_v56 = vpop.f32.mrf.mxu0  ;;  %v5449_v55 = vor.u32 %v5960_v51, %v5446_v34  ;;  %v5969_v51 = vld [vmem:[#allocation15 + $0x194] sm:$0xf0] }
 0x3cb   :  { %v6734_v40 = vpop.f32.mrf.mxu2  ;;  %3743 = vmatpush.bf16.msrb.mxu1 %v5465_v52  ;;  %v5509_v56 = vor.u32 %v5977_v49, %v5508_v25  ;;  %v5477_v34 = vor.u32 %v5969_v51, %v5476_v62 }
 0x3cd   :  { %v3074_v44 = vpop.f32.mrf.mxu1 }
 0x3ce   :  { %3719 = vmatpush.bf16.msrb.mxu3 %v5321_v58  ;;  %3732 = vmatpush.bf16.msrb.mxu0 %v5385_v7  ;;  %v5430_v58 = vld [vmem:[#allocation15 + $0x138] sm:$0xf0] }
 0x3cf   :  { %3744 = vmatpush.bf16.msrb.mxu1 %v5457_v36  ;;  %v5433_v7 = vor.u32 %v5956_v5, %v5430_v58 }
 0x3d0   :  { %v3048_v3 = vpop.f32.mrf.mxu3 }
 0x3d2   :  { %3720 = vmatpush.bf16.msrb.mxu3 %v5313_v30  ;;  %3733 = vmatpush.bf16.msrb.mxu0 %v5377_v14  ;;  %v5417_v30 = vor.u32 %v5952_v27, %v5414_v15  ;;  %v3073_v14 = vadd.f32 %v6732_v21, %v3060_v13  ;;  %v5976_v27 = vld [vmem:[#allocation15 + $0x1d4] sm:$0xf]  ;;  %v5510_v15 = vld [vmem:[#allocation15 + $0x1d8] sm:$0xf0] }
 0x3d3   :  { %v3087_v63 = vpop.f32.mrf.mxu2  ;;  %3745 = vmatpush.bf16.msrb.mxu1 %v5449_v55 }
 0x3d4   :  { %v3086_v26 = vadd.f32 %v6734_v40, %v3073_v14  ;;  %v3263_v40 = vperm.slane %v6718_v50, 2  ;;  %v5468_v63 = vld [vmem:[#allocation15 + $0x180] sm:$0xf] }
 0x3d6   :  { %3721 = vmatpush.bf16.msrb.mxu3 %v5305_v31  ;;  %3734 = vmatpush.bf16.msrb.mxu0 %v5369_v33 }
 0x3d7   :  { %3746 = vmatpush.bf16.msrb.mxu1 %v5441_v29  ;;  %v5529_v29 = vor.u32 %v5980_v28, %v5526_v2  ;;  %v5987_v28 = vld [vmem:[#allocation17 + $0x28] sm:$0xff] }
 0x3da   :  { %3722 = vmatpush.bf16.msrb.mxu3 %v5297_v23  ;;  %3735 = vmatpush.bf16.msrb.mxu0 %v5361_v4  ;;  %v5500_v23 = vld [vmem:[#allocation15 + $0x1c0] sm:$0xf]  ;;  %v5975_v4 = vld [vmem:[#allocation15 + $0x1c4] sm:$0xf0] }
 0x3db   :  { %3747 = vmatpush.bf16.msrb.mxu1 %v5433_v7  ;;  %v5501_v44 = vor.u32 %v5975_v4, %v5500_v23  ;;  %v5978_v7 = vld [vmem:[#allocation15 + $0x1e4] sm:$0xf] }
 0x3de   :  { %3723 = vmatpush.bf16.msrb.mxu3 %v5289_v45  ;;  %3736 = vmatpush.bf16.msrb.mxu0 %v5353_v11  ;;  %v5493_v45 = vor.u32 %v5973_v54, %v5492_v17  ;;  %v5484_v11 = vld [vmem:[#allocation15 + $0x1a0] sm:$0xf] }
 0x3df   :  { %3748 = vmatpush.bf16.msrb.mxu1 %v5425_v46  ;;  %v5485_v19 = vor.u32 %v5971_v47, %v5484_v11  ;;  %v5521_v46 = vor.u32 %v5978_v7, %v5518_v9 }
 0x3e2   :  { %3724 = vmatpush.bf16.msrb.mxu3 %v5281_v8  ;;  %3737 = vmatpush.bf16.msrb.mxu0 %v5345_v32  ;;  %v3111_v53 = vpop.f32.mrf.mxu0  ;;  %v5967_v8 = vld [vmem:[#allocation15 + $0x184] sm:$0xf0] }
 0x3e3   :  { %3749 = vmatpush.bf16.msrb.mxu1 %v5417_v30  ;;  %v5469_v32 = vor.u32 %v5967_v8, %v5468_v63  ;;  %v5989_v8 = vld [vmem:[#allocation17 + $0x38] sm:$0xff] }
 0x3e5   :  { %3725 = vmatmul.bf16.vlgmr.msrb.gmra.mxu3 %v6726_v41  ;;  %3738 = vmatmul.bf16.vlgmr.msrb.gmra.mxu0 %v6724_v57  ;;  %v3124_v20 = vpop.f32.mrf.mxu1  ;;  %v5409_v41 = vor.u32 %v5950_v1, %v5406_v24  ;;  %v5981_v57 = vld [vmem:[#allocation15 + $0x1f4] sm:$0xf0]  ;;  %v5502_v1 = vld [vmem:[#allocation15 + $0x1c8] sm:$0xf0] }
 0x3e6   :  { %v5525_v59 = vor.u32 %v5981_v57, %v5524_v37  ;;  %v5494_v37 = vld [vmem:[#allocation15 + $0x1b8] sm:$0xf0]  ;;  %3921 = vmatpush.bf16.msra.mxu3 %v5989_v8 }
 0x3e7   :  { %3750 = vmatpush.bf16.msrb.mxu1 %v5409_v41  ;;  %v5972_v41 = vld [vmem:[#allocation15 + $0x1b4] sm:$0xf] }
 0x3e8   :  { %v3098_v0 = vpop.f32.mrf.mxu3  ;;  %3704 = vmatpush.bf16.msrb.mxu2 %v5525_v59  ;;  %v5497_v57 = vor.u32 %v5972_v41, %v5494_v37  ;;  %v5486_v59 = vld [vmem:[#allocation15 + $0x1a8] sm:$0xf0]  ;;  %v3777_v41 = vld [vmem:[%s6772_s15] sm:$0x3] }
 0x3e9   :  { %v3099_v31 = vadd.f32 %v3098_v0, %v3086_v26  ;;  %v5970_v26 = vld [vmem:[#allocation15 + $0x1a4] sm:$0xf] }
 0x3ea   :  { %v3113_v33 = vpop.f32.mrf.mxu0  ;;  %v5489_v0 = vor.u32 %v5970_v26, %v5486_v59 }
 0x3eb   :  { %v3137_v18 = vpop.f32.mrf.mxu2  ;;  %v3112_v61 = vadd.f32 %v3111_v53, %v3099_v31  ;;  %v5513_v53 = vor.u32 %v5976_v27, %v5510_v15  ;;  %v5478_v33 = vld [vmem:[#allocation15 + $0x198] sm:$0xf0]  ;;  %v5995_v27 = vld [vmem:[#allocation17 + $0x68] sm:$0xff]  ;;  %v5982_v15 = vld [vmem:[#allocation17] sm:$0xff] }
 0x3ec   :  { %3705 = vmatpush.bf16.msrb.mxu2 %v5517_v12  ;;  %v5966_v12 = vld [vmem:[#allocation15 + $0x184] sm:$0xf] }
 0x3ed   :  { %v3126_v21 = vpop.f32.mrf.mxu1  ;;  %v3125_v16 = vadd.f32 %v3124_v20, %v3112_v61  ;;  %v5974_v20 = vld [vmem:[#allocation15 + $0x1c4] sm:$0xf] }
 0x3ee   :  { %v5505_v24 = vor.u32 %v5974_v20, %v5502_v1  ;;  %v5991_v20 = vld [vmem:[#allocation17 + $0x48] sm:$0xff]  ;;  %v5990_v1 = vld [vmem:[#allocation17 + $0x40] sm:$0xff] }
 0x3ef   :  { %v3138_v52 = vadd.f32 %v3137_v18, %v3125_v16  ;;  %v5968_v18 = vld [vmem:[#allocation15 + $0x194] sm:$0xf]  ;;  %v5470_v16 = vld [vmem:[#allocation15 + $0x188] sm:$0xf0] }
 0x3f0   :  { %v3100_v42 = vpop.f32.mrf.mxu3  ;;  %3706 = vmatpush.bf16.msrb.mxu2 %v5509_v56  ;;  %v5481_v35 = vor.u32 %v5968_v18, %v5478_v33 }
 0x3f1   :  { %v3257_v60 = vmul.f32 %v3249_v22, %v3138_v52  ;;  %v5473_v22 = vor.u32 %v5966_v12, %v5470_v16 }
 0x3f3   :  { %v3139_v43 = vpop.f32.mrf.mxu2  ;;  %v3271_v10 = vadd.f32 %v3263_v40, %v3257_v60  ;;  %v3250_v60 = vperm.slane %v6710_v6, 3 }
 0x3f4   :  { %3707 = vmatpush.bf16.msrb.mxu2 %v5501_v44  ;;  %v3264_v44 = vperm.slane %v6718_v50, 3  ;;  %v5997_v50 = vld [vmem:[#allocation17 + $0x78] sm:$0xff] }
 0x3f5   :  { %v3275_v36 = vmax.f32 %v3271_v10, 0.0  ;;  %3934 = vmatpush.bf16.msra.mxu0 %v5997_v50 }
 0x3f7   :  { %v3279_v48 = vpack.c.bf16 %v3275_v36, %v3275_v36 }
 0x3f8   :  { %3708 = vmatpush.bf16.msrb.mxu2 %v5493_v45 }
 0x3f9   :  { %3699 = vmatmul.bf16.vlgmr.msra.gmra.mxu1 %v3279_v48 }
 0x3fc   :  { %3709 = vmatpush.bf16.msrb.mxu2 %v5485_v19 }
 0x400   :  { %3710 = vmatpush.bf16.msrb.mxu2 %v5477_v34 }
 0x402   :  { %v3163_v3 = vpop.f32.mrf.mxu0 }
 0x404   :  { %3711 = vmatpush.bf16.msrb.mxu2 %v5469_v32  ;;  %v5988_v32 = vld [vmem:[#allocation17 + $0x30] sm:$0xff] }
 0x405   :  { %v3176_v55 = vpop.f32.mrf.mxu1  ;;  %3922 = vmatpush.bf16.msra.mxu3 %v5988_v32 }
 0x408   :  { %v3150_v5 = vpop.f32.mrf.mxu3  ;;  %3756 = vmatpush.bf16.msra.mxu2 %v5529_v29  ;;  %v5986_v29 = vld [vmem:[#allocation17 + $0x20] sm:$0xff] }
 0x409   :  { %3751 = vmatmul.bf16.vlgmr.msrb.gmra.mxu1 %v3279_v48  ;;  %v3164_v31 = vadd.f32 %v3163_v3, %v3150_v5  ;;  %3923 = vmatpush.bf16.msra.mxu3 %v5987_v28  ;;  %v5985_v5 = vld [vmem:[#allocation17 + $0x18] sm:$0xff] }
 0x40a   :  { %v3165_v39 = vpop.f32.mrf.mxu0 }
 0x40b   :  { %v3189_v58 = vpop.f32.mrf.mxu2  ;;  %v3177_v61 = vadd.f32 %v3176_v55, %v3164_v31  ;;  %v5984_v39 = vld [vmem:[#allocation17 + $0x10] sm:$0xff] }
 0x40c   :  { %3757 = vmatpush.bf16.msra.mxu2 %v5521_v46  ;;  %v5996_v46 = vld [vmem:[#allocation17 + $0x70] sm:$0xff] }
 0x40d   :  { %v3178_v13 = vpop.f32.mrf.mxu1  ;;  %v3190_v25 = vadd.f32 %v3189_v58, %v3177_v61  ;;  %3924 = vmatpush.bf16.msra.mxu3 %v5986_v29  ;;  %3935 = vmatpush.bf16.msra.mxu0 %v5996_v46 }
 0x40e   :  { %v5983_v13 = vld [vmem:[#allocation17 + $0x8] sm:$0xff] }
 0x410   :  { %v3152_v30 = vpop.f32.mrf.mxu3  ;;  %3758 = vmatpush.bf16.msra.mxu2 %v5513_v53  ;;  %v5994_v53 = vld [vmem:[#allocation17 + $0x60] sm:$0xff] }
 0x411   :  { %3925 = vmatpush.bf16.msra.mxu3 %v5985_v5  ;;  %3936 = vmatpush.bf16.msra.mxu0 %v5995_v27  ;;  %v5993_v30 = vld [vmem:[#allocation17 + $0x58] sm:$0xff] }
 0x413   :  { %v3191_v14 = vpop.f32.mrf.mxu2 }
 0x414   :  { %3759 = vmatpush.bf16.msra.mxu2 %v5505_v24  ;;  %v5992_v14 = vld [vmem:[#allocation17 + $0x50] sm:$0xff]  ;;  %v3769_v24 = vld [vmem:[%s6771_s14] sm:$0x3] }
 0x415   :  { %3926 = vmatpush.bf16.msra.mxu3 %v5984_v39  ;;  %3937 = vmatpush.bf16.msra.mxu0 %v5994_v53 }
 0x418   :  { %3760 = vmatpush.bf16.msra.mxu2 %v5497_v57  ;;  %v3771_v57 = vperm.slane %v3769_v24, 0 }
 0x419   :  { %3927 = vmatpush.bf16.msra.mxu3 %v5983_v13  ;;  %3938 = vmatpush.bf16.msra.mxu0 %v5993_v30 }
 0x41c   :  { %3761 = vmatpush.bf16.msra.mxu2 %v5489_v0  ;;  %v3779_v0 = vperm.slane %v3777_v41, 0 }
 0x41d   :  { %3928 = vmatpush.bf16.msra.mxu3 %v5982_v15  ;;  %3939 = vmatpush.bf16.msra.mxu0 %v5992_v14 }
 0x420   :  { %3762 = vmatpush.bf16.msra.mxu2 %v5481_v35 }
 0x421   :  { %3940 = vmatpush.bf16.msra.mxu0 %v5991_v20 }
 0x422   :  { %v3215_v38 = vpop.f32.mrf.mxu0 }
 0x424   :  { %v3228_v21 = vpop.f32.mrf.mxu1  ;;  %3763 = vmatpush.bf16.msra.mxu2 %v5473_v22  ;;  %v3780_v22 = vperm.slane %v3777_v41, 1 }
 0x425   :  { %3941 = vmatpush.bf16.msra.mxu0 %v5990_v1 }
 0x428   :  { %v3202_v49 = vpop.f32.mrf.mxu3 }
 0x429   :  { %v3203_v52 = vadd.f32 %v3202_v49, %v3190_v25 }
 0x42a   :  { %v3241_v40 = vpop.f32.mrf.mxu2  ;;  %v3217_v56 = vpop.f32.mrf.mxu0 }
 0x42b   :  { %v3216_v23 = vadd.f32 %v3215_v38, %v3203_v52 }
 0x42c   :  { %v3230_v4 = vpop.f32.mrf.mxu1 }
 0x42d   :  { %v3229_v42 = vadd.f32 %v3228_v21, %v3216_v23  ;;  %v3772_v21 = vperm.slane %v3769_v24, 1  ;;  %v6021_v4 = vld [vmem:[%s6774_s17] ss:$0 sm:$0xff] }
 0x42f   :  { %v3242_v43 = vadd.f32 %v3241_v40, %v3229_v42 }
 0x430   :  { %v3204_v17 = vpop.f32.mrf.mxu3 }
 0x431   :  { %v3258_v54 = vmul.f32 %v3250_v60, %v3242_v43 }
 0x432   :  { %v3243_v10 = vpop.f32.mrf.mxu2 }
 0x433   :  { %v3272_v36 = vadd.f32 %v3264_v44, %v3258_v54 }
 0x435   :  { %v3276_v45 = vmax.f32 %v3272_v36, 0.0 }
 0x437   :  { %v3280_v11 = vpack.c.bf16 %v3276_v45, %v3276_v45 }
 0x439   :  { %3712 = vmatmul.bf16.vlgmr.msrb.gmra.mxu2 %v3280_v11 }
 0x442   :  { %v3687_v47 = vpop.f32.mrf.mxu0 }
 0x448   :  { %v3674_v48 = vpop.f32.mrf.mxu3 }
 0x449   :  { %v3688_v19 = vadd.f32 %v3687_v47, %v3674_v48  ;;  %3764 = vmatmul.bf16.vlgmr.msra.gmra.mxu2 %v3280_v11 }
 0x44a   :  { %v3689_v62 = vpop.f32.mrf.mxu0 }
 0x450   :  { %v3676_v51 = vpop.f32.mrf.mxu3 }
 0x462   :  { %v3739_v34 = vpop.f32.mrf.mxu0 }
 0x468   :  { %v3726_v3 = vpop.f32.mrf.mxu3 }
 0x469   :  { %v3740_v55 = vadd.f32 %v3739_v34, %v3726_v3 }
 0x46a   :  { %v3741_v6 = vpop.f32.mrf.mxu0 }
 0x470   :  { %v3728_v63 = vpop.f32.mrf.mxu3 }
 0x476   :  { %v3700_v2 = vpop.f32.mrf.mxu1 }
 0x477   :  { %v3701_v37 = vadd.f32 %v3700_v2, %v3688_v19 }
 0x47e   :  { %v3702_v58 = vpop.f32.mrf.mxu1 }
 0x486   :  { %v3752_v7 = vpop.f32.mrf.mxu1 }
 0x487   :  { %v3753_v61 = vadd.f32 %v3752_v7, %v3740_v55 }
 0x48e   :  { %v3754_v9 = vpop.f32.mrf.mxu1 }
 0x4bc   :  { %v3713_v26 = vpop.f32.mrf.mxu2 }
 0x4bd   :  { %v3714_v59 = vadd.f32 %v3713_v26, %v3701_v37 }
 0x4bf   :  { %v3775_v31 = vmul.f32 %v3771_v57, %v3714_v59 }
 0x4c1   :  { %v3783_v18 = vadd.f32 %v3779_v0, %v3775_v31 }
 0x4c3   :  { %v3785_v33 = vmax.f32 %v3783_v18, 0.0 }
 0x4c4   :  { %v3715_v35 = vpop.f32.mrf.mxu2 }
 0x4c5   :  { %v3787_v38 = vpack.c.bf16 %v3785_v33, %v3785_v33 }
 0x4c7   :  { %3929 = vmatmul.bf16.vlgmr.msra.gmra.mxu3 %v3787_v38 }
 0x4cc   :  { %v3765_v12 = vpop.f32.mrf.mxu2 }
 0x4cd   :  { %v3766_v16 = vadd.f32 %v3765_v12, %v3753_v61 }
 0x4cf   :  { %v3776_v25 = vmul.f32 %v3772_v21, %v3766_v16 }
 0x4d1   :  { %v3784_v49 = vadd.f32 %v3780_v22, %v3776_v25 }
 0x4d3   :  { %v3786_v52 = vmax.f32 %v3784_v49, 0.0 }
 0x4d4   :  { %v3767_v40 = vpop.f32.mrf.mxu2 }
 0x4d5   :  { %v3788_v56 = vpack.c.bf16 %v3786_v52, %v3786_v52 }
 0x4d7   :  { %3942 = vmatmul.bf16.vlgmr.msra.gmra.mxu0 %v3788_v56 }
 0x54a   :  { %v3930_v23 = vpop.f32.mrf.mxu3 }
 0x54b   :  { %v3931_v60 = vadd.f32 %v6021_v4, %v3930_v23 }
 0x552   :  { %v3932_v42 = vpop.f32.mrf.mxu3 }
 0x554   :  { %v3943_v43 = vpop.f32.mrf.mxu0 }
 0x555   :  { %v3944_v44 = vadd.f32 %v3943_v43, %v3931_v60 }
 0x557   :  { %3947 = vst [vmem:[#allocation18] sm:$0x3] %v3944_v44 }
 0x558   :  { %3958 = dma.vmem_to_hbm [thread:$0]  %s3954_s2, 32, %s3956_s6, [#allocation5]  }
 0x55c   :  { %v3945_v17 = vpop.f32.mrf.mxu0 }
 0x55d   :  { %6272 = dma.done.wait [#allocation5], 32  }
 0x55e   :  { %6273 = vsyncadd [#allocation5], 4294967264 }
 0x55f   :  { %3963 = vsyncpa [#allocation4], 1 }
 0x560   :  { %3964 = vsyncpa [#allocation7], 1 }
 0x561   :  { %3965 = vsyncpa [#allocation10], 1 }
 0x562   :  { %3966 = vsyncpa [#allocation13], 1 }
 0x563   :  { %3967 = vsyncpa [#allocation16], 1 }
 0x564   :  { %3968 = vsyncpa [#allocation5], 1 }

</bundles_post_ra>
